<compile_context>
chip_gen: v6e
topology: v6e:2x2x1
jax: 0.10.0
libtpu: 0.0.40
codegen_flags: <defaults>
</compile_context>

<pallas_src>
import functools

import jax
import jax.numpy as jnp
from jax.experimental import pallas as pl
from jax.experimental.pallas import tpu as pltpu


# ----------------------------------------------------------------------------- kernel

def _mlp_kernel(x_ref, w1_ref, b1_ref, w2_ref, b2_ref, wo_ref, bo_ref, o_ref, *, vec_out):
    """relu(x @ w1 + b1) -> relu(@ w2 + b2) -> final layer.  All f32; MXU accumulates f32."""
    h1 = jnp.dot(x_ref[...], w1_ref[...], preferred_element_type=jnp.float32)
    h1 = jnp.maximum(h1 + b1_ref[...], 0.0)
    h2 = jnp.dot(h1, w2_ref[...], preferred_element_type=jnp.float32)
    h2 = jnp.maximum(h2 + b2_ref[...], 0.0)
    if vec_out:
        # out_size == 1: VPU multiply + lane reduce (keeps the MXU out of an N=1 matmul).
        out = jnp.sum(h2 * wo_ref[...], axis=-1, keepdims=True) + bo_ref[...]
    else:
        out = jnp.dot(h2, wo_ref[...], preferred_element_type=jnp.float32) + bo_ref[...]
    o_ref[...] = out.astype(o_ref.dtype)


# ------------------------------------------------------------------------ tile policy

_VMEM_TILE_BUDGET = 8 << 20  # ~8 MiB for the (double-buffered) x tile + out tile; very
                             # conservative vs. the 32 MiB scoped default on v7x.


def _max_tile_rows(in_size, out_size):
    per_row = 4 * (2 * in_size + 2 * out_size)  # f32, double-buffered x block + out block
    rows = _VMEM_TILE_BUDGET // max(per_row, 1)
    return max(8, (rows // 8) * 8)


def _resolve_tile(B, tile_b, in_size, out_size):
    """Pick / validate the batch tile.

    (8,128) rule: the second-to-last block dim (batch) must be a multiple of 8 or equal
    to B; all feature dims use full-extent blocks so they are always legal.
    """
    max_rows = _max_tile_rows(in_size, out_size)

    def valid(t):
        return 0 < t <= B and B % t == 0 and (t == B or t % 8 == 0)

    if tile_b is not None and valid(tile_b) and tile_b <= max_rows:
        return tile_b

    try:
        kind = jax.devices()[0].device_kind.lower()
    except Exception:  # non-TPU backend / interpret mode: any legal tile works
        kind = ""
    two_tc = "v7" in kind  # v7x has 2 TensorCores per chip

    if two_tc:
        # Guarantee an even grid >= 2 so ("parallel",) shards across both cores.
        half = B // 2
        if valid(half) and half <= max_rows and (B // half) % 2 == 0:
            return half
        for t in (8192, 4096, 2048, 1024, 512, 256, 128, 64, 32, 16, 8):
            if t <= max_rows and valid(t) and (B // t) % 2 == 0:
                return t
        return B  # tiny / odd batch: one tile (one core idle is acceptable at this size)

    # Single TC (v5e / v6e): one big tile — multiple grid steps are pure per-step
    # overhead since the x-tile DMA is far smaller than the ~0.35 us step cost.
    if B <= max_rows:
        return B
    for t in (32768, 16384, 8192, 4096, 2048, 1024, 512, 256, 128, 64, 32, 16, 8):
        if t <= max_rows and valid(t):
            return t
    return B


# --------------------------------------------------------------------------- wrapper

def prepare_params(p):
    """One-time param prep (hoisted out of the per-call path): biases as (1, F) f32 rows,
    out-weight reshaped to a row when out_size == 1.  Weights stay f32."""
    fan_in, out_size = p["wo"].shape  # wo is stored (fan_in, fan_out); fan_in == h2_size here
    prep = {
        "w1": p["w1"].astype(jnp.float32),
        "b1": p["b1"].reshape(1, -1).astype(jnp.float32),
        "w2": p["w2"].astype(jnp.float32),
        "b2": p["b2"].reshape(1, -1).astype(jnp.float32),
        "bo": p["bo"].reshape(1, out_size).astype(jnp.float32),
    }
    if out_size == 1:
        prep["wo"] = p["wo"].reshape(1, fan_in).astype(jnp.float32)  # row for the VPU reduce
    else:
        prep["wo"] = p["wo"].astype(jnp.float32)
    return prep


def gstarhat1_forward(x, prep, *, tile_b=None):
    """prep: output of prepare_params (called once, outside the hot path)."""
    if x.dtype != jnp.float32:
        x = x.astype(jnp.float32)
    B, in_size = x.shape
    h1_size = prep["w1"].shape[1]
    h2_size = prep["w2"].shape[1]
    out_size = prep["bo"].shape[1]
    vec_out = out_size == 1

    tile_b = _resolve_tile(B, tile_b, in_size, out_size)
    grid = (B // tile_b,)

    in_specs = [
        pl.BlockSpec((tile_b, in_size), lambda i: (i, 0)),    # x tile (pipelined over grid)
        pl.BlockSpec((in_size, h1_size), lambda i: (0, 0)),   # w1 (resident)
        pl.BlockSpec((1, h1_size), lambda i: (0, 0)),         # b1
        pl.BlockSpec((h1_size, h2_size), lambda i: (0, 0)),   # w2 (resident)
        pl.BlockSpec((1, h2_size), lambda i: (0, 0)),         # b2
    ]
    if vec_out:
        in_specs.append(pl.BlockSpec((1, h2_size), lambda i: (0, 0)))          # wo row
    else:
        in_specs.append(pl.BlockSpec((h2_size, out_size), lambda i: (0, 0)))   # wo matrix
    in_specs.append(pl.BlockSpec((1, out_size), lambda i: (0, 0)))             # bo

    flops = 2 * B * (in_size * h1_size + h1_size * h2_size + h2_size * out_size)
    bytes_accessed = 4 * (
        B * in_size                        # x (f32)
        + in_size * h1_size + h1_size      # w1 / b1
        + h1_size * h2_size + h2_size      # w2 / b2
        + h2_size * out_size + out_size    # wo / bo
        + B * out_size                     # output
    )
    ce = pl.CostEstimate(flops=flops, transcendentals=0, bytes_accessed=bytes_accessed)

    out2d = pl.pallas_call(
        functools.partial(_mlp_kernel, vec_out=vec_out),
        out_shape=jax.ShapeDtypeStruct((B, out_size), jnp.float32),
        grid_spec=pltpu.PrefetchScalarGridSpec(
            num_scalar_prefetch=0,
            grid=grid,
            in_specs=in_specs,
            out_specs=pl.BlockSpec((tile_b, out_size), lambda i: (i, 0)),
        ),
        compiler_params=pltpu.CompilerParams(dimension_semantics=("parallel",)),
        cost_estimate=ce,
    )(x, prep["w1"], prep["b1"], prep["w2"], prep["b2"], prep["wo"], prep["bo"])

    # torch's .squeeze(-1): reshape is metadata-only for out_size == 1
    return out2d.reshape(B) if out_size == 1 else out2d


# ------------------------------------------------------------------- init / reference

def init_params(key, in_size, h1_size, h2_size, h3_size, out_size):
    """Deterministic init mimicking nn.Linear (uniform +/- 1/sqrt(fan_in)).
    Weights are returned already transposed to (in_features, out_features)."""
    def linear(k, fan_in, fan_out):
        kw, kb = jax.random.split(k)
        bound = 1.0 / jnp.sqrt(fan_in)
        w = jax.random.uniform(kw, (fan_in, fan_out), jnp.float32, -bound, bound)
        b = jax.random.uniform(kb, (fan_out,), jnp.float32, -bound, bound)
        return w, b

    k1, k2, k3, k4 = jax.random.split(key, 4)
    w1, b1 = linear(k1, in_size, h1_size)
    w2, b2 = linear(k2, h1_size, h2_size)
    w3, b3 = linear(k3, h2_size, h3_size)   # h3 layer exists in the module but never reaches the output
    wo, bo = linear(k4, h3_size, out_size)  # `out` is Linear(h3_size, out_size), applied to h2_relu
    return {"w1": w1, "b1": b1, "w2": w2, "b2": b2,
            "w3": w3, "b3": b3, "wo": wo, "bo": bo}


def reference_forward(x, p):
    # pure-JAX f32 reference of the exact PyTorch semantics
    h1 = jnp.maximum(x @ p["w1"] + p["b1"], 0.0)
    h2 = jnp.maximum(h1 @ p["w2"] + p["b2"], 0.0)
    _h3 = jnp.maximum(h2 @ p["w3"] + p["b3"], 0.0)  # computed but unused, as in torch
    out = h2 @ p["wo"] + p["bo"]
    return jnp.squeeze(out, -1) if out.shape[-1] == 1 else out


# ------------------------------------------------------------------------------ main

if __name__ == "__main__":
    # h3_size == h2_size is required for the PyTorch forward to type-check
    # (self.out is Linear(h3_size, out_size) but is applied to h2_relu).
    B, in_size, h1_size, h2_size, h3_size, out_size = 1024, 32, 64, 48, 48, 1

    key = jax.random.PRNGKey(0)
    kx, kp = jax.random.split(key)
    x = jax.random.normal(kx, (B, in_size), jnp.float32)
    raw_params = init_params(kp, in_size, h1_size, h2_size, h3_size, out_size)
    prep = prepare_params(raw_params)   # one-time prep, outside the per-call path

    out = gstarhat1_forward(x, prep)    # 1-TC chips: grid=(1,); v7x: even grid >= 2
    out = jax.block_until_ready(out)

    ref = reference_forward(x, raw_params)
    assert out.shape == ref.shape == (B,)
    # f32 end-to-end; tolerance loose enough to cover MXU default-precision mantissa handling
    err = float(jnp.max(jnp.abs(out - ref)))
    assert jnp.allclose(out, ref, atol=2e-2, rtol=2e-2), f"mismatch vs reference, max abs err={err}"

    print("KERNEL_OK")
</pallas_src>

<mosaic_0001>
module attributes {stable_mosaic.version = 11 : i64} {
  func.func @_mlp_kernel(%arg0: i32, %arg1: memref<1024x32xf32, #tpu.memory_space<vmem>>, %arg2: memref<32x64xf32, #tpu.memory_space<vmem>>, %arg3: memref<1x64xf32, #tpu.memory_space<vmem>>, %arg4: memref<64x48xf32, #tpu.memory_space<vmem>>, %arg5: memref<1x48xf32, #tpu.memory_space<vmem>>, %arg6: memref<1x48xf32, #tpu.memory_space<vmem>>, %arg7: memref<1x1xf32, #tpu.memory_space<vmem>>, %arg8: memref<1024x1xf32, #tpu.memory_space<vmem>>) attributes {dimension_semantics = [#tpu.dimension_semantics<parallel>], iteration_bounds = array<i64: 1>, scalar_prefetch = 0 : i64, scratch_operands = 0 : i64, tpu.core_type = #tpu.core_type<tc>, window_params = [{transform_indices = @transform_0, window_bounds = array<i64: 1024, 32>}, {pipeline_mode = #tpu.pipeline_mode<synchronous>, transform_indices = @transform_1, window_bounds = array<i64: 32, 64>}, {pipeline_mode = #tpu.pipeline_mode<synchronous>, transform_indices = @transform_2, window_bounds = array<i64: 1, 64>}, {pipeline_mode = #tpu.pipeline_mode<synchronous>, transform_indices = @transform_3, window_bounds = array<i64: 64, 48>}, {pipeline_mode = #tpu.pipeline_mode<synchronous>, transform_indices = @transform_4, window_bounds = array<i64: 1, 48>}, {pipeline_mode = #tpu.pipeline_mode<synchronous>, transform_indices = @transform_5, window_bounds = array<i64: 1, 48>}, {pipeline_mode = #tpu.pipeline_mode<synchronous>, transform_indices = @transform_6, window_bounds = array<i64: 1, 1>}, {transform_indices = @transform_7, window_bounds = array<i64: 1024, 1>}]} {
    %c0 = arith.constant 0 : index
    %c0_0 = arith.constant 0 : index
    %0 = vector.load %arg1[%c0, %c0_0] : memref<1024x32xf32, #tpu.memory_space<vmem>>, vector<1024x32xf32>
    %c0_1 = arith.constant 0 : index
    %c0_2 = arith.constant 0 : index
    %1 = vector.load %arg2[%c0_1, %c0_2] : memref<32x64xf32, #tpu.memory_space<vmem>>, vector<32x64xf32>
    %cst = arith.constant dense<0.000000e+00> : vector<1024x64xf32>
    %2 = tpu.matmul %0, %1, %cst {dimension_numbers = #tpu.dot_dimension_numbers<[1], [0], [0], [1], [0, 0, 1, 1], [], []>} : vector<1024x32xf32>, vector<32x64xf32>, vector<1024x64xf32> -> vector<1024x64xf32>
    %c0_3 = arith.constant 0 : index
    %c0_4 = arith.constant 0 : index
    %3 = vector.load %arg3[%c0_3, %c0_4] : memref<1x64xf32, #tpu.memory_space<vmem>>, vector<1x64xf32>
    %4 = vector.broadcast %3 : vector<1x64xf32> to vector<1024x64xf32>
    %5 = arith.addf %2, %4 : vector<1024x64xf32>
    %cst_5 = arith.constant 0.000000e+00 : f32
    %6 = vector.broadcast %cst_5 : f32 to vector<1024x64xf32>
    %7 = arith.maximumf %5, %6 : vector<1024x64xf32>
    %c0_6 = arith.constant 0 : index
    %c0_7 = arith.constant 0 : index
    %8 = vector.load %arg4[%c0_6, %c0_7] : memref<64x48xf32, #tpu.memory_space<vmem>>, vector<64x48xf32>
    %cst_8 = arith.constant dense<0.000000e+00> : vector<1024x48xf32>
    %9 = tpu.matmul %7, %8, %cst_8 {dimension_numbers = #tpu.dot_dimension_numbers<[1], [0], [0], [1], [0, 0, 1, 1], [], []>} : vector<1024x64xf32>, vector<64x48xf32>, vector<1024x48xf32> -> vector<1024x48xf32>
    %c0_9 = arith.constant 0 : index
    %c0_10 = arith.constant 0 : index
    %10 = vector.load %arg5[%c0_9, %c0_10] : memref<1x48xf32, #tpu.memory_space<vmem>>, vector<1x48xf32>
    %11 = vector.broadcast %10 : vector<1x48xf32> to vector<1024x48xf32>
    %12 = arith.addf %9, %11 : vector<1024x48xf32>
    %cst_11 = arith.constant 0.000000e+00 : f32
    %13 = vector.broadcast %cst_11 : f32 to vector<1024x48xf32>
    %14 = arith.maximumf %12, %13 : vector<1024x48xf32>
    %c0_12 = arith.constant 0 : index
    %c0_13 = arith.constant 0 : index
    %15 = vector.load %arg6[%c0_12, %c0_13] : memref<1x48xf32, #tpu.memory_space<vmem>>, vector<1x48xf32>
    %16 = vector.broadcast %15 : vector<1x48xf32> to vector<1024x48xf32>
    %17 = arith.mulf %14, %16 : vector<1024x48xf32>
    %cst_14 = arith.constant dense<0.000000e+00> : vector<1024xf32>
    %18 = vector.multi_reduction <add>, %17, %cst_14 [1] : vector<1024x48xf32> to vector<1024xf32>
    %19 = vector.shape_cast %18 : vector<1024xf32> to vector<1024x1xf32>
    %c0_15 = arith.constant 0 : index
    %c0_16 = arith.constant 0 : index
    %20 = vector.load %arg7[%c0_15, %c0_16] : memref<1x1xf32, #tpu.memory_space<vmem>>, vector<1x1xf32>
    %21 = vector.broadcast %20 : vector<1x1xf32> to vector<1024x1xf32>
    %22 = arith.addf %19, %21 : vector<1024x1xf32>
    %c0_17 = arith.constant 0 : index
    %c0_18 = arith.constant 0 : index
    %23 = vector.load %arg8[%c0_17, %c0_18] : memref<1024x1xf32, #tpu.memory_space<vmem>>, vector<1024x1xf32>
    tpu.vector_store %arg8[%c0_17, %c0_18], %22 {strides = array<i32>} : memref<1024x1xf32, #tpu.memory_space<vmem>>, vector<1024x1xf32>,
    return
  }
  func.func @transform_0(%arg0: i32) -> (i32, i32) {
    %c0_i32 = arith.constant 0 : i32
    %c0_i32_0 = arith.constant 0 : i32
    return %arg0, %c0_i32 : i32, i32
  }
  func.func @transform_1(%arg0: i32) -> (i32, i32) {
    %c0_i32 = arith.constant 0 : i32
    %c0_i32_0 = arith.constant 0 : i32
    %c0_i32_1 = arith.constant 0 : i32
    return %c0_i32, %c0_i32_0 : i32, i32
  }
  func.func @transform_2(%arg0: i32) -> (i32, i32) {
    %c0_i32 = arith.constant 0 : i32
    %c0_i32_0 = arith.constant 0 : i32
    %c0_i32_1 = arith.constant 0 : i32
    return %c0_i32, %c0_i32_0 : i32, i32
  }
  func.func @transform_3(%arg0: i32) -> (i32, i32) {
    %c0_i32 = arith.constant 0 : i32
    %c0_i32_0 = arith.constant 0 : i32
    %c0_i32_1 = arith.constant 0 : i32
    return %c0_i32, %c0_i32_0 : i32, i32
  }
  func.func @transform_4(%arg0: i32) -> (i32, i32) {
    %c0_i32 = arith.constant 0 : i32
    %c0_i32_0 = arith.constant 0 : i32
    %c0_i32_1 = arith.constant 0 : i32
    return %c0_i32, %c0_i32_0 : i32, i32
  }
  func.func @transform_5(%arg0: i32) -> (i32, i32) {
    %c0_i32 = arith.constant 0 : i32
    %c0_i32_0 = arith.constant 0 : i32
    %c0_i32_1 = arith.constant 0 : i32
    return %c0_i32, %c0_i32_0 : i32, i32
  }
  func.func @transform_6(%arg0: i32) -> (i32, i32) {
    %c0_i32 = arith.constant 0 : i32
    %c0_i32_0 = arith.constant 0 : i32
    %c0_i32_1 = arith.constant 0 : i32
    return %c0_i32, %c0_i32_0 : i32, i32
  }
  func.func @transform_7(%arg0: i32) -> (i32, i32) {
    %c0_i32 = arith.constant 0 : i32
    %c0_i32_0 = arith.constant 0 : i32
    return %arg0, %c0_i32 : i32, i32
  }
}

</mosaic_0001>

<bundles_post_ra>
// kernel: tpu_custom_call.1
= control target key start
LH: loop header
LB: loop body
LE: loop exit
PB: predicated region body
PF: predicated region fallthrough
CT: control target
= control target key end

     0   :  { %vm167_vm0 = vcmask 261120   ;;  %vm1400_vm1 = vcmask 523264   ;;  %vm2753_vm2 = vcmask 392192   ;;  %vm3273_vm3 = vcmask 7168   ;;  %s6275_s1 = inlined_call_operand.vmem [shape: f32[32,64], index: 1, kind: input, shape index: {}]   ;;  %s6276_s0 = inlined_call_operand.vmem [shape: f32[1024,32], index: 0, kind: input, shape index: {}]   ;;  %s6277_s3 = inlined_call_operand.vmem [shape: f32[64,48], index: 3, kind: input, shape index: {}]   ;;  %s6278_s2 = inlined_call_operand.vmem [shape: f32[1,64], index: 2, kind: input, shape index: {}]   ;;  %s6279_s4 = inlined_call_operand.vmem [shape: f32[1,48], index: 4, kind: input, shape index: {}]   ;;  %s6280_s5 = inlined_call_operand.vmem [shape: f32[1,48], index: 5, kind: input, shape index: {}]   ;;  %s6281_s6 = inlined_call_operand.<no memory space> [shape: f32[1,1], index: 6, kind: input, shape index: {}]   ;;  %s6282_s7 = inlined_call_operand.vmem [shape: f32[1024,1], index: 7, kind: output, shape index: {}]  }
   0x1   :  { %v159_v0 = vld [vmem:[%s6275_s1 + $0x18] sm:$0xff]  ;;  %v158_v1 = vld [vmem:[%s6275_s1 + $0x10] sm:$0xff]  ;;  %v28_v2 = vld [vmem:[%s6276_s0] sm:$0xff] }
   0x2   :  { %3934 = vmatprep.subr.mxu0 %v159_v0  ;;  %v157_v3 = vld [vmem:[%s6275_s1 + $0x8] sm:$0xff]  ;;  %3942 = vmatprep.mubr.msk.f32.mxu0 %vm167_vm0, %v28_v2  ;;  %v1392_v4 = vld [vmem:[%s6277_s3 + $0x38] sm:$0xff]  ;;  %v156_v5 = vld [vmem:[%s6275_s1] sm:$0xff] }
   0x3   :  { %3935 = vmatpush3.msra.mxu0 %v159_v0  ;;  %4342 = vmatprep.subr.mxu1 %v1392_v4  ;;  %v29_v6 = vld [vmem:[%s6276_s0 + $0x8] sm:$0xff]  ;;  %v30_v7 = vld [vmem:[%s6276_s0 + $0x10] sm:$0xff]  ;;  %v31_v9 = vld [vmem:[%s6276_s0 + $0x18] sm:$0xff] }
   0x4   :  { %3936 = vmatprep.subr.mxu0 %v158_v1  ;;  %4350 = vmatpush3.msra.mxu1 %v1392_v4  ;;  %v1391_v8 = vld [vmem:[%s6277_s3 + $0x30] sm:$0xff]  ;;  %v32_v10 = vld [vmem:[%s6276_s0 + $0x20] sm:$0xff]  ;;  %v1390_v11 = vld [vmem:[%s6277_s3 + $0x28] sm:$0xff] }
   0x5   :  { %3937 = vmatpush3.msra.mxu0 %v158_v1  ;;  %4343 = vmatprep.subr.mxu1 %v1391_v8  ;;  %v33_v12 = vld [vmem:[%s6276_s0 + $0x28] sm:$0xff]  ;;  %v34_v13 = vld [vmem:[%s6276_s0 + $0x30] sm:$0xff]  ;;  %v35_v14 = vld [vmem:[%s6276_s0 + $0x38] sm:$0xff] }
   0x6   :  { %3938 = vmatprep.subr.mxu0 %v157_v3  ;;  %4351 = vmatpush3.msra.mxu1 %v1391_v8  ;;  %v36_v15 = vld [vmem:[%s6276_s0 + $0x40] sm:$0xff]  ;;  %v37_v17 = vld [vmem:[%s6276_s0 + $0x48] sm:$0xff]  ;;  %v38_v18 = vld [vmem:[%s6276_s0 + $0x50] sm:$0xff] }
   0x7   :  { %3939 = vmatpush3.msra.mxu0 %v157_v3  ;;  %4344 = vmatprep.subr.mxu1 %v1390_v11  ;;  %v1389_v16 = vld [vmem:[%s6277_s3 + $0x20] sm:$0xff]  ;;  %v1388_v19 = vld [vmem:[%s6277_s3 + $0x18] sm:$0xff]  ;;  %v41_v22 = vld [vmem:[%s6276_s0 + $0x68] sm:$0xff] }
   0x8   :  { %3940 = vmatprep.subr.mxu0 %v156_v5  ;;  %4352 = vmatpush3.msra.mxu1 %v1390_v11  ;;  %v39_v20 = vld [vmem:[%s6276_s0 + $0x58] sm:$0xff]  ;;  %v40_v21 = vld [vmem:[%s6276_s0 + $0x60] sm:$0xff]  ;;  %v42_v23 = vld [vmem:[%s6276_s0 + $0x70] sm:$0xff] }
   0x9   :  { %3941 = vmatpush3.msra.mxu0 %v156_v5  ;;  %4345 = vmatprep.subr.mxu1 %v1389_v16  ;;  %v43_v24 = vld [vmem:[%s6276_s0 + $0x78] sm:$0xff]  ;;  %v44_v25 = vld [vmem:[%s6276_s0 + $0x80] sm:$0xff]  ;;  %v45_v26 = vld [vmem:[%s6276_s0 + $0x88] sm:$0xff] }
   0xa   :  { %3943 = vmatmul.mubr.msk.f32.vlgmr.msra.gmra.mxu0 %vm167_vm0, %v29_v6  ;;  %4134 = vmatprep.subr.mxu0 %v1392_v4  ;;  %v46_v27 = vld [vmem:[%s6276_s0 + $0x90] sm:$0xff]  ;;  %v47_v29 = vld [vmem:[%s6276_s0 + $0x98] sm:$0xff]  ;;  %v48_v30 = vld [vmem:[%s6276_s0 + $0xa0] sm:$0xff] }
   0xb   :  { %4135 = vmatpush3.msra.mxu0 %v1392_v4  ;;  %3945 = vmatprep.mubr.msk.f32.mxu0 %vm167_vm0, %v30_v7  ;;  %v1387_v28 = vld [vmem:[%s6277_s3 + $0x10] sm:$0xff]  ;;  %v49_v31 = vld [vmem:[%s6276_s0 + $0xa8] sm:$0xff]  ;;  %v51_v33 = vld [vmem:[%s6276_s0 + $0xb8] sm:$0xff] }
   0xc   :  { %4136 = vmatprep.subr.mxu0 %v1391_v8  ;;  %4353 = vmatpush3.msra.mxu1 %v1389_v16  ;;  %v50_v32 = vld [vmem:[%s6276_s0 + $0xb0] sm:$0xff]  ;;  %v52_v34 = vld [vmem:[%s6276_s0 + $0xc0] sm:$0xff]  ;;  %v53_v35 = vld [vmem:[%s6276_s0 + $0xc8] sm:$0xff] }
   0xd   :  { %4137 = vmatpush3.msra.mxu0 %v1391_v8  ;;  %4346 = vmatprep.subr.mxu1 %v1388_v19  ;;  %v54_v36 = vld [vmem:[%s6276_s0 + $0xd0] sm:$0xff]  ;;  %v55_v37 = vld [vmem:[%s6276_s0 + $0xd8] sm:$0xff]  ;;  %v56_v38 = vld [vmem:[%s6276_s0 + $0xe0] sm:$0xff] }
   0xe   :  { %3946 = vmatmul.mubr.msk.f32.gmra.mxu0 %vm167_vm0, %v31_v9  ;;  %4138 = vmatprep.subr.mxu0 %v1390_v11  ;;  %v57_v39 = vld [vmem:[%s6276_s0 + $0xe8] sm:$0xff]  ;;  %v58_v40 = vld [vmem:[%s6276_s0 + $0xf0] sm:$0xff]  ;;  %v59_v41 = vld [vmem:[%s6276_s0 + $0xf8] sm:$0xff] }
   0xf   :  { %3948 = vmatprep.mubr.msk.f32.mxu0 %vm167_vm0, %v32_v10  ;;  %4139 = vmatpush3.msra.mxu0 %v1390_v11  ;;  %v60_v42 = vld [vmem:[%s6276_s0 + $0x100] sm:$0xff]  ;;  %v61_v43 = vld [vmem:[%s6276_s0 + $0x108] sm:$0xff]  ;;  %v62_v44 = vld [vmem:[%s6276_s0 + $0x110] sm:$0xff] }
  0x10   :  { %4140 = vmatprep.subr.mxu0 %v1389_v16  ;;  %4354 = vmatpush3.msra.mxu1 %v1388_v19  ;;  %v63_v45 = vld [vmem:[%s6276_s0 + $0x118] sm:$0xff]  ;;  %v64_v46 = vld [vmem:[%s6276_s0 + $0x120] sm:$0xff]  ;;  %v1386_v47 = vld [vmem:[%s6277_s3 + $0x8] sm:$0xff] }
  0x11   :  { %4141 = vmatpush3.msra.mxu0 %v1389_v16  ;;  %4347 = vmatprep.subr.mxu1 %v1387_v28  ;;  %v65_v48 = vld [vmem:[%s6276_s0 + $0x128] sm:$0xff]  ;;  %v66_v49 = vld [vmem:[%s6276_s0 + $0x130] sm:$0xff]  ;;  %v67_v50 = vld [vmem:[%s6276_s0 + $0x138] sm:$0xff] }
  0x12   :  { %3949 = vmatmul.mubr.msk.f32.gmra.mxu0 %vm167_vm0, %v33_v12  ;;  %4142 = vmatprep.subr.mxu0 %v1388_v19  ;;  %v1385_v51 = vld [vmem:[%s6277_s3] sm:$0xff]  ;;  %v69_v53 = vld [vmem:[%s6276_s0 + $0x148] sm:$0xff]  ;;  %v70_v54 = vld [vmem:[%s6276_s0 + $0x150] sm:$0xff] }
  0x13   :  { %3951 = vmatprep.mubr.msk.f32.mxu0 %vm167_vm0, %v34_v13  ;;  %4143 = vmatpush3.msra.mxu0 %v1388_v19  ;;  %v68_v52 = vld [vmem:[%s6276_s0 + $0x140] sm:$0xff]  ;;  %v71_v55 = vld [vmem:[%s6276_s0 + $0x158] sm:$0xff]  ;;  %v73_v57 = vld [vmem:[%s6276_s0 + $0x168] sm:$0xff] }
  0x14   :  { %4144 = vmatprep.subr.mxu0 %v1387_v28  ;;  %4355 = vmatpush3.msra.mxu1 %v1387_v28  ;;  %v72_v56 = vld [vmem:[%s6276_s0 + $0x160] sm:$0xff]  ;;  %v74_v58 = vld [vmem:[%s6276_s0 + $0x170] sm:$0xff]  ;;  %v75_v59 = vld [vmem:[%s6276_s0 + $0x178] sm:$0xff] }
  0x15   :  { %4145 = vmatpush3.msra.mxu0 %v1387_v28  ;;  %4348 = vmatprep.subr.mxu1 %v1386_v47  ;;  %v76_v60 = vld [vmem:[%s6276_s0 + $0x180] sm:$0xff]  ;;  %v77_v61 = vld [vmem:[%s6276_s0 + $0x188] sm:$0xff]  ;;  %v78_v62 = vld [vmem:[%s6276_s0 + $0x190] sm:$0xff] }
  0x16   :  { %3952 = vmatmul.mubr.msk.f32.gmra.mxu0 %vm167_vm0, %v35_v14  ;;  %4146 = vmatprep.subr.mxu0 %v1386_v47  ;;  %v79_v63 = vld [vmem:[%s6276_s0 + $0x198] sm:$0xff]  ;;  %v80_v0 = vld [vmem:[%s6276_s0 + $0x1a0] sm:$0xff]  ;;  %v81_v1 = vld [vmem:[%s6276_s0 + $0x1a8] sm:$0xff] }
  0x17   :  { %3954 = vmatprep.mubr.msk.f32.mxu0 %vm167_vm0, %v36_v15  ;;  %4147 = vmatpush3.msra.mxu0 %v1386_v47  ;;  %v82_v2 = vld [vmem:[%s6276_s0 + $0x1b0] sm:$0xff]  ;;  %v83_v3 = vld [vmem:[%s6276_s0 + $0x1b8] sm:$0xff]  ;;  %v84_v4 = vld [vmem:[%s6276_s0 + $0x1c0] sm:$0xff] }
  0x18   :  { %4356 = vmatpush3.msra.mxu1 %v1386_v47  ;;  %4148 = vmatprep.subr.mxu0 %v1385_v51  ;;  %v85_v5 = vld [vmem:[%s6276_s0 + $0x1c8] sm:$0xff]  ;;  %v86_v6 = vld [vmem:[%s6276_s0 + $0x1d0] sm:$0xff]  ;;  %v87_v7 = vld [vmem:[%s6276_s0 + $0x1d8] sm:$0xff] }
  0x19   :  { %4349 = vmatprep.subr.mxu1 %v1385_v51  ;;  %4149 = vmatpush3.msra.mxu0 %v1385_v51  ;;  %v88_v8 = vld [vmem:[%s6276_s0 + $0x1e0] sm:$0xff]  ;;  %v89_v9 = vld [vmem:[%s6276_s0 + $0x1e8] sm:$0xff]  ;;  %v90_v10 = vld [vmem:[%s6276_s0 + $0x1f0] sm:$0xff] }
  0x1a   :  { %3955 = vmatmul.mubr.msk.f32.gmra.mxu0 %vm167_vm0, %v37_v17  ;;  %4357 = vmatpush3.msra.mxu1 %v1385_v51  ;;  %v91_v11 = vld [vmem:[%s6276_s0 + $0x1f8] sm:$0xff]  ;;  %v92_v12 = vld [vmem:[%s6276_s0 + $0x200] sm:$0xff]  ;;  %v93_v13 = vld [vmem:[%s6276_s0 + $0x208] sm:$0xff] }
  0x1b   :  { %3957 = vmatprep.mubr.msk.f32.mxu0 %vm167_vm0, %v38_v18  ;;  %v94_v14 = vld [vmem:[%s6276_s0 + $0x210] sm:$0xff]  ;;  %v95_v15 = vld [vmem:[%s6276_s0 + $0x218] sm:$0xff]  ;;  %v96_v16 = vld [vmem:[%s6276_s0 + $0x220] sm:$0xff] }
  0x1c   :  { %v97_v17 = vld [vmem:[%s6276_s0 + $0x228] sm:$0xff]  ;;  %v98_v18 = vld [vmem:[%s6276_s0 + $0x230] sm:$0xff]  ;;  %v99_v19 = vld [vmem:[%s6276_s0 + $0x238] sm:$0xff] }
  0x1d   :  { %v108_v28 = vld [vmem:[%s6276_s0 + $0x280] sm:$0xff] }
  0x1e   :  { %3958 = vmatmul.mubr.msk.f32.gmra.mxu0 %vm167_vm0, %v39_v20  ;;  %v100_v20 = vld [vmem:[%s6276_s0 + $0x240] sm:$0xff] }
  0x1f   :  { %3960 = vmatprep.mubr.msk.f32.mxu0 %vm167_vm0, %v40_v21  ;;  %v101_v21 = vld [vmem:[%s6276_s0 + $0x248] sm:$0xff] }
  0x22   :  { %3961 = vmatmul.mubr.msk.f32.gmra.mxu0 %vm167_vm0, %v41_v22  ;;  %v102_v22 = vld [vmem:[%s6276_s0 + $0x250] sm:$0xff] }
  0x23   :  { %3963 = vmatprep.mubr.msk.f32.mxu0 %vm167_vm0, %v42_v23  ;;  %v103_v23 = vld [vmem:[%s6276_s0 + $0x258] sm:$0xff] }
  0x26   :  { %3964 = vmatmul.mubr.msk.f32.gmra.mxu0 %vm167_vm0, %v43_v24  ;;  %v104_v24 = vld [vmem:[%s6276_s0 + $0x260] sm:$0xff] }
  0x27   :  { %3966 = vmatprep.mubr.msk.f32.mxu0 %vm167_vm0, %v44_v25  ;;  %v105_v25 = vld [vmem:[%s6276_s0 + $0x268] sm:$0xff] }
  0x2a   :  { %3967 = vmatmul.mubr.msk.f32.gmra.mxu0 %vm167_vm0, %v45_v26  ;;  %v106_v26 = vld [vmem:[%s6276_s0 + $0x270] sm:$0xff] }
  0x2b   :  { %3969 = vmatprep.mubr.msk.f32.mxu0 %vm167_vm0, %v46_v27  ;;  %v107_v27 = vld [vmem:[%s6276_s0 + $0x278] sm:$0xff] }
  0x2e   :  { %3970 = vmatmul.mubr.msk.f32.gmra.mxu0 %vm167_vm0, %v47_v29  ;;  %v109_v29 = vld [vmem:[%s6276_s0 + $0x288] sm:$0xff] }
  0x2f   :  { %3972 = vmatprep.mubr.msk.f32.mxu0 %vm167_vm0, %v48_v30  ;;  %v110_v30 = vld [vmem:[%s6276_s0 + $0x290] sm:$0xff] }
  0x32   :  { %3973 = vmatmul.mubr.msk.f32.gmra.mxu0 %vm167_vm0, %v49_v31  ;;  %v111_v31 = vld [vmem:[%s6276_s0 + $0x298] sm:$0xff] }
  0x33   :  { %3975 = vmatprep.mubr.msk.f32.mxu0 %vm167_vm0, %v50_v32  ;;  %v112_v32 = vld [vmem:[%s6276_s0 + $0x2a0] sm:$0xff] }
  0x36   :  { %3976 = vmatmul.mubr.msk.f32.gmra.mxu0 %vm167_vm0, %v51_v33  ;;  %v113_v33 = vld [vmem:[%s6276_s0 + $0x2a8] sm:$0xff] }
  0x37   :  { %3978 = vmatprep.mubr.msk.f32.mxu0 %vm167_vm0, %v52_v34  ;;  %v114_v34 = vld [vmem:[%s6276_s0 + $0x2b0] sm:$0xff] }
  0x3a   :  { %3979 = vmatmul.mubr.msk.f32.gmra.mxu0 %vm167_vm0, %v53_v35  ;;  %v115_v35 = vld [vmem:[%s6276_s0 + $0x2b8] sm:$0xff] }
  0x3b   :  { %3981 = vmatprep.mubr.msk.f32.mxu0 %vm167_vm0, %v54_v36  ;;  %v116_v36 = vld [vmem:[%s6276_s0 + $0x2c0] sm:$0xff] }
  0x3e   :  { %3982 = vmatmul.mubr.msk.f32.gmra.mxu0 %vm167_vm0, %v55_v37  ;;  %v117_v37 = vld [vmem:[%s6276_s0 + $0x2c8] sm:$0xff] }
  0x3f   :  { %3984 = vmatprep.mubr.msk.f32.mxu0 %vm167_vm0, %v56_v38  ;;  %v118_v38 = vld [vmem:[%s6276_s0 + $0x2d0] sm:$0xff] }
  0x42   :  { %3985 = vmatmul.mubr.msk.f32.gmra.mxu0 %vm167_vm0, %v57_v39  ;;  %v119_v39 = vld [vmem:[%s6276_s0 + $0x2d8] sm:$0xff] }
  0x43   :  { %3987 = vmatprep.mubr.msk.f32.mxu0 %vm167_vm0, %v58_v40  ;;  %v120_v40 = vld [vmem:[%s6276_s0 + $0x2e0] sm:$0xff] }
  0x46   :  { %3988 = vmatmul.mubr.msk.f32.gmra.mxu0 %vm167_vm0, %v59_v41  ;;  %v121_v41 = vld [vmem:[%s6276_s0 + $0x2e8] sm:$0xff] }
  0x47   :  { %3990 = vmatprep.mubr.msk.f32.mxu0 %vm167_vm0, %v60_v42  ;;  %v122_v42 = vld [vmem:[%s6276_s0 + $0x2f0] sm:$0xff] }
  0x4a   :  { %3991 = vmatmul.mubr.msk.f32.gmra.mxu0 %vm167_vm0, %v61_v43  ;;  %v123_v43 = vld [vmem:[%s6276_s0 + $0x2f8] sm:$0xff] }
  0x4b   :  { %3993 = vmatprep.mubr.msk.f32.mxu0 %vm167_vm0, %v62_v44  ;;  %v124_v44 = vld [vmem:[%s6276_s0 + $0x300] sm:$0xff] }
  0x4e   :  { %3994 = vmatmul.mubr.msk.f32.gmra.mxu0 %vm167_vm0, %v63_v45  ;;  %v125_v45 = vld [vmem:[%s6276_s0 + $0x308] sm:$0xff] }
  0x4f   :  { %3996 = vmatprep.mubr.msk.f32.mxu0 %vm167_vm0, %v64_v46  ;;  %v126_v46 = vld [vmem:[%s6276_s0 + $0x310] sm:$0xff] }
  0x52   :  { %3997 = vmatmul.mubr.msk.f32.gmra.mxu0 %vm167_vm0, %v65_v48  ;;  %v127_v48 = vld [vmem:[%s6276_s0 + $0x318] sm:$0xff] }
  0x53   :  { %3999 = vmatprep.mubr.msk.f32.mxu0 %vm167_vm0, %v66_v49 }
  0x56   :  { %4000 = vmatmul.mubr.msk.f32.gmra.mxu0 %vm167_vm0, %v67_v50  ;;  %v128_v50 = vld [vmem:[%s6276_s0 + $0x320] sm:$0xff] }
  0x57   :  { %4002 = vmatprep.mubr.msk.f32.mxu0 %vm167_vm0, %v68_v52  ;;  %v4849_v52 = vld [vmem:[%s6278_s2] ss:$0 sm:$0xff] }
  0x5a   :  { %4003 = vmatmul.mubr.msk.f32.gmra.mxu0 %vm167_vm0, %v69_v53  ;;  %v129_v53 = vld [vmem:[%s6276_s0 + $0x328] sm:$0xff] }
  0x5b   :  { %4005 = vmatprep.mubr.msk.f32.mxu0 %vm167_vm0, %v70_v54 }
  0x5e   :  { %4006 = vmatmul.mubr.msk.f32.gmra.mxu0 %vm167_vm0, %v71_v55 }
  0x5f   :  { %4008 = vmatprep.mubr.msk.f32.mxu0 %vm167_vm0, %v72_v56  ;;  %v130_v56 = vld [vmem:[%s6276_s0 + $0x330] sm:$0xff] }
  0x62   :  { %4009 = vmatmul.mubr.msk.f32.gmra.mxu0 %vm167_vm0, %v73_v57 }
  0x63   :  { %4011 = vmatprep.mubr.msk.f32.mxu0 %vm167_vm0, %v74_v58 }
  0x66   :  { %4012 = vmatmul.mubr.msk.f32.gmra.mxu0 %vm167_vm0, %v75_v59 }
  0x67   :  { %4014 = vmatprep.mubr.msk.f32.mxu0 %vm167_vm0, %v76_v60  ;;  %v131_v60 = vld [vmem:[%s6276_s0 + $0x338] sm:$0xff] }
  0x6a   :  { %4015 = vmatmul.mubr.msk.f32.gmra.mxu0 %vm167_vm0, %v77_v61 }
  0x6b   :  { %4017 = vmatprep.mubr.msk.f32.mxu0 %vm167_vm0, %v78_v62 }
  0x6e   :  { %4018 = vmatmul.mubr.msk.f32.gmra.mxu0 %vm167_vm0, %v79_v63 }
  0x6f   :  { %4020 = vmatprep.mubr.msk.f32.mxu0 %vm167_vm0, %v80_v0  ;;  %v132_v0 = vld [vmem:[%s6276_s0 + $0x340] sm:$0xff] }
  0x72   :  { %4021 = vmatmul.mubr.msk.f32.gmra.mxu0 %vm167_vm0, %v81_v1 }
  0x73   :  { %4023 = vmatprep.mubr.msk.f32.mxu0 %vm167_vm0, %v82_v2 }
  0x76   :  { %4024 = vmatmul.mubr.msk.f32.gmra.mxu0 %vm167_vm0, %v83_v3 }
  0x77   :  { %4026 = vmatprep.mubr.msk.f32.mxu0 %vm167_vm0, %v84_v4  ;;  %v133_v4 = vld [vmem:[%s6276_s0 + $0x348] sm:$0xff] }
  0x7a   :  { %4027 = vmatmul.mubr.msk.f32.gmra.mxu0 %vm167_vm0, %v85_v5 }
  0x7b   :  { %4029 = vmatprep.mubr.msk.f32.mxu0 %vm167_vm0, %v86_v6 }
  0x7e   :  { %4030 = vmatmul.mubr.msk.f32.gmra.mxu0 %vm167_vm0, %v87_v7 }
  0x7f   :  { %4032 = vmatprep.mubr.msk.f32.mxu0 %vm167_vm0, %v88_v8  ;;  %v134_v8 = vld [vmem:[%s6276_s0 + $0x350] sm:$0xff] }
  0x82   :  { %4033 = vmatmul.mubr.msk.f32.gmra.mxu0 %vm167_vm0, %v89_v9 }
  0x83   :  { %4035 = vmatprep.mubr.msk.f32.mxu0 %vm167_vm0, %v90_v10 }
  0x86   :  { %4036 = vmatmul.mubr.msk.f32.gmra.mxu0 %vm167_vm0, %v91_v11 }
  0x87   :  { %4038 = vmatprep.mubr.msk.f32.mxu0 %vm167_vm0, %v92_v12  ;;  %v135_v12 = vld [vmem:[%s6276_s0 + $0x358] sm:$0xff] }
  0x8a   :  { %4039 = vmatmul.mubr.msk.f32.gmra.mxu0 %vm167_vm0, %v93_v13 }
  0x8b   :  { %4041 = vmatprep.mubr.msk.f32.mxu0 %vm167_vm0, %v94_v14 }
  0x8e   :  { %4042 = vmatmul.mubr.msk.f32.gmra.mxu0 %vm167_vm0, %v95_v15 }
  0x8f   :  { %4044 = vmatprep.mubr.msk.f32.mxu0 %vm167_vm0, %v96_v16  ;;  %v136_v16 = vld [vmem:[%s6276_s0 + $0x360] sm:$0xff] }
  0x92   :  { %4045 = vmatmul.mubr.msk.f32.gmra.mxu0 %vm167_vm0, %v97_v17 }
  0x93   :  { %4047 = vmatprep.mubr.msk.f32.mxu0 %vm167_vm0, %v98_v18 }
  0x96   :  { %4048 = vmatmul.mubr.msk.f32.gmra.mxu0 %vm167_vm0, %v99_v19 }
  0x97   :  { %4050 = vmatprep.mubr.msk.f32.mxu0 %vm167_vm0, %v100_v20  ;;  %v137_v20 = vld [vmem:[%s6276_s0 + $0x368] sm:$0xff] }
  0x9a   :  { %4051 = vmatmul.mubr.msk.f32.gmra.mxu0 %vm167_vm0, %v101_v21 }
  0x9b   :  { %4053 = vmatprep.mubr.msk.f32.mxu0 %vm167_vm0, %v102_v22 }
  0x9e   :  { %4054 = vmatmul.mubr.msk.f32.gmra.mxu0 %vm167_vm0, %v103_v23 }
  0x9f   :  { %4056 = vmatprep.mubr.msk.f32.mxu0 %vm167_vm0, %v104_v24  ;;  %v138_v24 = vld [vmem:[%s6276_s0 + $0x370] sm:$0xff] }
  0xa2   :  { %4057 = vmatmul.mubr.msk.f32.gmra.mxu0 %vm167_vm0, %v105_v25 }
  0xa3   :  { %4059 = vmatprep.mubr.msk.f32.mxu0 %vm167_vm0, %v106_v26 }
  0xa6   :  { %4060 = vmatmul.mubr.msk.f32.gmra.mxu0 %vm167_vm0, %v107_v27 }
  0xa7   :  { %4062 = vmatprep.mubr.msk.f32.mxu0 %vm167_vm0, %v108_v28  ;;  %v139_v28 = vld [vmem:[%s6276_s0 + $0x378] sm:$0xff] }
  0xaa   :  { %4063 = vmatmul.mubr.msk.f32.gmra.mxu0 %vm167_vm0, %v109_v29 }
  0xab   :  { %4065 = vmatprep.mubr.msk.f32.mxu0 %vm167_vm0, %v110_v30 }
  0xae   :  { %4066 = vmatmul.mubr.msk.f32.gmra.mxu0 %vm167_vm0, %v111_v31 }
  0xaf   :  { %4068 = vmatprep.mubr.msk.f32.mxu0 %vm167_vm0, %v112_v32  ;;  %v140_v32 = vld [vmem:[%s6276_s0 + $0x380] sm:$0xff] }
  0xb2   :  { %4069 = vmatmul.mubr.msk.f32.gmra.mxu0 %vm167_vm0, %v113_v33 }
  0xb3   :  { %4071 = vmatprep.mubr.msk.f32.mxu0 %vm167_vm0, %v114_v34 }
  0xb6   :  { %4072 = vmatmul.mubr.msk.f32.gmra.mxu0 %vm167_vm0, %v115_v35 }
  0xb7   :  { %4074 = vmatprep.mubr.msk.f32.mxu0 %vm167_vm0, %v116_v36  ;;  %v141_v36 = vld [vmem:[%s6276_s0 + $0x388] sm:$0xff] }
  0xba   :  { %4075 = vmatmul.mubr.msk.f32.gmra.mxu0 %vm167_vm0, %v117_v37 }
  0xbb   :  { %4077 = vmatprep.mubr.msk.f32.mxu0 %vm167_vm0, %v118_v38 }
  0xbe   :  { %4078 = vmatmul.mubr.msk.f32.gmra.mxu0 %vm167_vm0, %v119_v39 }
  0xbf   :  { %4080 = vmatprep.mubr.msk.f32.mxu0 %vm167_vm0, %v120_v40  ;;  %v142_v40 = vld [vmem:[%s6276_s0 + $0x390] sm:$0xff] }
  0xc2   :  { %4081 = vmatmul.mubr.msk.f32.gmra.mxu0 %vm167_vm0, %v121_v41 }
  0xc3   :  { %4083 = vmatprep.mubr.msk.f32.mxu0 %vm167_vm0, %v122_v42 }
  0xc6   :  { %4084 = vmatmul.mubr.msk.f32.gmra.mxu0 %vm167_vm0, %v123_v43 }
  0xc7   :  { %4086 = vmatprep.mubr.msk.f32.mxu0 %vm167_vm0, %v124_v44  ;;  %v143_v44 = vld [vmem:[%s6276_s0 + $0x398] sm:$0xff] }
  0xca   :  { %v4833_v47 = vpop.f32.mrf.mxu0  ;;  %4087 = vmatmul.mubr.msk.f32.gmra.mxu0 %vm167_vm0, %v125_v45 }
  0xcb   :  { %4089 = vmatprep.mubr.msk.f32.mxu0 %vm167_vm0, %v126_v46 }
  0xcc   :  { %v4840_v49 = vpop.f32.mrf.mxu0 }
  0xce   :  { %v3947_v51 = vpop.f32.mrf.mxu0  ;;  %4090 = vmatmul.mubr.msk.f32.gmra.mxu0 %vm167_vm0, %v127_v48 }
  0xcf   :  { %4092 = vmatprep.mubr.msk.f32.mxu0 %vm167_vm0, %v128_v50  ;;  %v634_v54 = vadd.f32 %v3947_v51, %v4849_v52  ;;  %v144_v50 = vld [vmem:[%s6276_s0 + $0x3a0] sm:$0xff] }
  0xd0   :  { %v628_v55 = vpop.f32.mrf.mxu0 }
  0xd1   :  { %v629_v57 = vadd.f32 %v4849_v52, %v628_v55  ;;  %v1260_v61 = vmax.f32 %v634_v54, 0.0  ;;  %v145_v55 = vld [vmem:[%s6276_s0 + $0x3a8] sm:$0xff] }
  0xd2   :  { %v3950_v58 = vpop.f32.mrf.mxu0  ;;  %4093 = vmatmul.mubr.msk.f32.gmra.mxu0 %vm167_vm0, %v129_v53 }
  0xd3   :  { %4095 = vmatprep.mubr.msk.f32.mxu0 %vm167_vm0, %v130_v56  ;;  %v1259_v59 = vmax.f32 %v629_v57, 0.0  ;;  %v644_v62 = vadd.f32 %v3950_v58, %v4849_v52 }
  0xd4   :  { %v638_v63 = vpop.f32.mrf.mxu0 }
  0xd5   :  { %v639_v1 = vadd.f32 %v4849_v52, %v638_v63  ;;  %4153 = vmatprep.mubr.msk.f32.mxu1 %vm1400_vm1, %v1259_v59  ;;  %v1262_v5 = vmax.f32 %v644_v62, 0.0  ;;  %v146_v59 = vld [vmem:[%s6276_s0 + $0x3b0] sm:$0xff]  ;;  %v147_v63 = vld [vmem:[%s6276_s0 + $0x3b8] sm:$0xff] }
  0xd6   :  { %v3953_v2 = vpop.f32.mrf.mxu0  ;;  %4096 = vmatmul.mubr.msk.f32.gmra.mxu0 %vm167_vm0, %v131_v60  ;;  %4154 = vmatmul.mubr.msk.f32.vlgmr.msra.gmra.mxu1 %vm1400_vm1, %v1260_v61 }
  0xd7   :  { %v1261_v3 = vmax.f32 %v639_v1, 0.0  ;;  %4098 = vmatprep.mubr.msk.f32.mxu0 %vm167_vm0, %v132_v0  ;;  %v654_v6 = vadd.f32 %v3953_v2, %v4849_v52 }
  0xd8   :  { %v648_v7 = vpop.f32.mrf.mxu0 }
  0xd9   :  { %v649_v9 = vadd.f32 %v4849_v52, %v648_v7  ;;  %4156 = vmatprep.mubr.msk.f32.mxu1 %vm1400_vm1, %v1261_v3  ;;  %v1264_v13 = vmax.f32 %v654_v6, 0.0  ;;  %v148_v3 = vld [vmem:[%s6276_s0 + $0x3c0] sm:$0xff]  ;;  %v149_v7 = vld [vmem:[%s6276_s0 + $0x3c8] sm:$0xff] }
  0xda   :  { %v3956_v10 = vpop.f32.mrf.mxu0  ;;  %4099 = vmatmul.mubr.msk.f32.gmra.mxu0 %vm167_vm0, %v133_v4  ;;  %4157 = vmatmul.mubr.msk.f32.gmra.mxu1 %vm1400_vm1, %v1262_v5 }
  0xdb   :  { %v1263_v11 = vmax.f32 %v649_v9, 0.0  ;;  %4101 = vmatprep.mubr.msk.f32.mxu0 %vm167_vm0, %v134_v8  ;;  %v664_v14 = vadd.f32 %v3956_v10, %v4849_v52 }
  0xdc   :  { %v658_v15 = vpop.f32.mrf.mxu0 }
  0xdd   :  { %v659_v17 = vadd.f32 %v4849_v52, %v658_v15  ;;  %4159 = vmatprep.mubr.msk.f32.mxu1 %vm1400_vm1, %v1263_v11  ;;  %v1266_v21 = vmax.f32 %v664_v14, 0.0  ;;  %v150_v11 = vld [vmem:[%s6276_s0 + $0x3d0] sm:$0xff]  ;;  %v151_v15 = vld [vmem:[%s6276_s0 + $0x3d8] sm:$0xff] }
  0xde   :  { %v3959_v18 = vpop.f32.mrf.mxu0  ;;  %4102 = vmatmul.mubr.msk.f32.gmra.mxu0 %vm167_vm0, %v135_v12  ;;  %4160 = vmatmul.mubr.msk.f32.gmra.mxu1 %vm1400_vm1, %v1264_v13 }
  0xdf   :  { %v1265_v19 = vmax.f32 %v659_v17, 0.0  ;;  %4104 = vmatprep.mubr.msk.f32.mxu0 %vm167_vm0, %v136_v16  ;;  %v674_v22 = vadd.f32 %v3959_v18, %v4849_v52 }
  0xe0   :  { %v668_v23 = vpop.f32.mrf.mxu0 }
  0xe1   :  { %v669_v25 = vadd.f32 %v4849_v52, %v668_v23  ;;  %4162 = vmatprep.mubr.msk.f32.mxu1 %vm1400_vm1, %v1265_v19  ;;  %v1268_v29 = vmax.f32 %v674_v22, 0.0  ;;  %v152_v19 = vld [vmem:[%s6276_s0 + $0x3e0] sm:$0xff]  ;;  %v153_v23 = vld [vmem:[%s6276_s0 + $0x3e8] sm:$0xff] }
  0xe2   :  { %v3962_v26 = vpop.f32.mrf.mxu0  ;;  %4105 = vmatmul.mubr.msk.f32.gmra.mxu0 %vm167_vm0, %v137_v20  ;;  %4163 = vmatmul.mubr.msk.f32.gmra.mxu1 %vm1400_vm1, %v1266_v21 }
  0xe3   :  { %v1267_v27 = vmax.f32 %v669_v25, 0.0  ;;  %4107 = vmatprep.mubr.msk.f32.mxu0 %vm167_vm0, %v138_v24  ;;  %v684_v30 = vadd.f32 %v3962_v26, %v4849_v52 }
  0xe4   :  { %v678_v31 = vpop.f32.mrf.mxu0 }
  0xe5   :  { %v679_v33 = vadd.f32 %v4849_v52, %v678_v31  ;;  %4165 = vmatprep.mubr.msk.f32.mxu1 %vm1400_vm1, %v1267_v27  ;;  %v1270_v37 = vmax.f32 %v684_v30, 0.0  ;;  %v154_v27 = vld [vmem:[%s6276_s0 + $0x3f0] sm:$0xff] }
  0xe6   :  { %v3965_v34 = vpop.f32.mrf.mxu0  ;;  %4108 = vmatmul.mubr.msk.f32.gmra.mxu0 %vm167_vm0, %v139_v28  ;;  %4166 = vmatmul.mubr.msk.f32.gmra.mxu1 %vm1400_vm1, %v1268_v29  ;;  %v619_v28 = vadd.f32 %v4849_v52, %v4840_v49  ;;  %v624_v49 = vadd.f32 %v4833_v47, %v4849_v52 }
  0xe7   :  { %v1269_v35 = vmax.f32 %v679_v33, 0.0  ;;  %4110 = vmatprep.mubr.msk.f32.mxu0 %vm167_vm0, %v140_v32  ;;  %v694_v38 = vadd.f32 %v3965_v34, %v4849_v52  ;;  %v155_v33 = vld [vmem:[%s6276_s0 + $0x3f8] sm:$0xff] }
  0xe8   :  { %v688_v39 = vpop.f32.mrf.mxu0 }
  0xe9   :  { %v689_v41 = vadd.f32 %v4849_v52, %v688_v39  ;;  %4168 = vmatprep.mubr.msk.f32.mxu1 %vm1400_vm1, %v1269_v35  ;;  %v1272_v45 = vmax.f32 %v694_v38, 0.0 }
  0xea   :  { %v3968_v42 = vpop.f32.mrf.mxu0  ;;  %4111 = vmatmul.mubr.msk.f32.gmra.mxu0 %vm167_vm0, %v141_v36  ;;  %4169 = vmatmul.mubr.msk.f32.gmra.mxu1 %vm1400_vm1, %v1270_v37  ;;  %v1257_v36 = vmax.f32 %v619_v28, 0.0 }
  0xeb   :  { %v1271_v43 = vmax.f32 %v689_v41, 0.0  ;;  %4113 = vmatprep.mubr.msk.f32.mxu0 %vm167_vm0, %v142_v40  ;;  %v704_v46 = vadd.f32 %v3968_v42, %v4849_v52  ;;  %v1258_v42 = vmax.f32 %v624_v49, 0.0 }
  0xec   :  { %v698_v48 = vpop.f32.mrf.mxu0 }
  0xed   :  { %v699_v51 = vadd.f32 %v4849_v52, %v698_v48  ;;  %4171 = vmatprep.mubr.msk.f32.mxu1 %vm1400_vm1, %v1271_v43  ;;  %v1274_v56 = vmax.f32 %v704_v46, 0.0 }
  0xee   :  { %v3971_v53 = vpop.f32.mrf.mxu0  ;;  %4114 = vmatmul.mubr.msk.f32.gmra.mxu0 %vm167_vm0, %v143_v44  ;;  %4172 = vmatmul.mubr.msk.f32.gmra.mxu1 %vm1400_vm1, %v1272_v45 }
  0xef   :  { %v1273_v54 = vmax.f32 %v699_v51, 0.0  ;;  %4116 = vmatprep.mubr.msk.f32.mxu0 %vm167_vm0, %v144_v50  ;;  %v714_v57 = vadd.f32 %v3971_v53, %v4849_v52 }
  0xf0   :  { %v708_v58 = vpop.f32.mrf.mxu0 }
  0xf1   :  { %v709_v60 = vadd.f32 %v4849_v52, %v708_v58  ;;  %4174 = vmatprep.mubr.msk.f32.mxu1 %vm1400_vm1, %v1273_v54  ;;  %v1276_v0 = vmax.f32 %v714_v57, 0.0 }
  0xf2   :  { %v3974_v61 = vpop.f32.mrf.mxu0  ;;  %4117 = vmatmul.mubr.msk.f32.gmra.mxu0 %vm167_vm0, %v145_v55  ;;  %4175 = vmatmul.mubr.msk.f32.gmra.mxu1 %vm1400_vm1, %v1274_v56 }
  0xf3   :  { %v1275_v62 = vmax.f32 %v709_v60, 0.0  ;;  %4119 = vmatprep.mubr.msk.f32.mxu0 %vm167_vm0, %v146_v59  ;;  %v724_v1 = vadd.f32 %v3974_v61, %v4849_v52 }
  0xf4   :  { %v718_v2 = vpop.f32.mrf.mxu0 }
  0xf5   :  { %v719_v4 = vadd.f32 %v4849_v52, %v718_v2  ;;  %4177 = vmatprep.mubr.msk.f32.mxu1 %vm1400_vm1, %v1275_v62  ;;  %v1278_v8 = vmax.f32 %v724_v1, 0.0 }
  0xf6   :  { %v3977_v5 = vpop.f32.mrf.mxu0  ;;  %4120 = vmatmul.mubr.msk.f32.gmra.mxu0 %vm167_vm0, %v147_v63  ;;  %4178 = vmatmul.mubr.msk.f32.gmra.mxu1 %vm1400_vm1, %v1276_v0 }
  0xf7   :  { %v1277_v6 = vmax.f32 %v719_v4, 0.0  ;;  %4122 = vmatprep.mubr.msk.f32.mxu0 %vm167_vm0, %v148_v3  ;;  %v734_v9 = vadd.f32 %v3977_v5, %v4849_v52 }
  0xf8   :  { %v728_v10 = vpop.f32.mrf.mxu0 }
  0xf9   :  { %v729_v12 = vadd.f32 %v4849_v52, %v728_v10  ;;  %4180 = vmatprep.mubr.msk.f32.mxu1 %vm1400_vm1, %v1277_v6  ;;  %v1280_v16 = vmax.f32 %v734_v9, 0.0 }
  0xfa   :  { %v3980_v13 = vpop.f32.mrf.mxu0  ;;  %4123 = vmatmul.mubr.msk.f32.gmra.mxu0 %vm167_vm0, %v149_v7  ;;  %4181 = vmatmul.mubr.msk.f32.gmra.mxu1 %vm1400_vm1, %v1278_v8 }
  0xfb   :  { %v1279_v14 = vmax.f32 %v729_v12, 0.0  ;;  %4125 = vmatprep.mubr.msk.f32.mxu0 %vm167_vm0, %v150_v11  ;;  %v744_v17 = vadd.f32 %v3980_v13, %v4849_v52 }
  0xfc   :  { %v738_v18 = vpop.f32.mrf.mxu0 }
  0xfd   :  { %v739_v20 = vadd.f32 %v4849_v52, %v738_v18  ;;  %4183 = vmatprep.mubr.msk.f32.mxu1 %vm1400_vm1, %v1279_v14  ;;  %v1282_v24 = vmax.f32 %v744_v17, 0.0 }
  0xfe   :  { %v3983_v21 = vpop.f32.mrf.mxu0  ;;  %4126 = vmatmul.mubr.msk.f32.gmra.mxu0 %vm167_vm0, %v151_v15  ;;  %4184 = vmatmul.mubr.msk.f32.gmra.mxu1 %vm1400_vm1, %v1280_v16 }
  0xff   :  { %v1281_v22 = vmax.f32 %v739_v20, 0.0  ;;  %4128 = vmatprep.mubr.msk.f32.mxu0 %vm167_vm0, %v152_v19  ;;  %v754_v25 = vadd.f32 %v3983_v21, %v4849_v52 }
 0x100   :  { %v748_v26 = vpop.f32.mrf.mxu0 }
 0x101   :  { %v749_v29 = vadd.f32 %v4849_v52, %v748_v26  ;;  %4186 = vmatprep.mubr.msk.f32.mxu1 %vm1400_vm1, %v1281_v22  ;;  %v1284_v34 = vmax.f32 %v754_v25, 0.0 }
 0x102   :  { %v3986_v30 = vpop.f32.mrf.mxu0  ;;  %4129 = vmatmul.mubr.msk.f32.gmra.mxu0 %vm167_vm0, %v153_v23  ;;  %4187 = vmatmul.mubr.msk.f32.gmra.mxu1 %vm1400_vm1, %v1282_v24 }
 0x103   :  { %v1283_v31 = vmax.f32 %v749_v29, 0.0  ;;  %v764_v32 = vadd.f32 %v3986_v30, %v4849_v52  ;;  %4131 = vmatprep.mubr.msk.f32.mxu0 %vm167_vm0, %v154_v27 }
 0x104   :  { %v758_v35 = vpop.f32.mrf.mxu0 }
 0x105   :  { %v759_v37 = vadd.f32 %v4849_v52, %v758_v35  ;;  %4189 = vmatprep.mubr.msk.f32.mxu1 %vm1400_vm1, %v1283_v31  ;;  %v1286_v38 = vmax.f32 %v764_v32, 0.0 }
 0x106   :  { %v3989_v39 = vpop.f32.mrf.mxu0  ;;  %4132 = vmatmul.mubr.msk.f32.gmra.mxu0 %vm167_vm0, %v155_v33  ;;  %4190 = vmatmul.mubr.msk.f32.gmra.mxu1 %vm1400_vm1, %v1284_v34 }
 0x107   :  { %v1285_v40 = vmax.f32 %v759_v37, 0.0  ;;  %v774_v41 = vadd.f32 %v3989_v39, %v4849_v52  ;;  %4150 = vmatprep.mubr.msk.f32.mxu0 %vm1400_vm1, %v1257_v36 }
 0x108   :  { %v768_v47 = vpop.f32.mrf.mxu0 }
 0x109   :  { %v769_v43 = vadd.f32 %v4849_v52, %v768_v47  ;;  %4192 = vmatprep.mubr.msk.f32.mxu1 %vm1400_vm1, %v1285_v40  ;;  %v1288_v44 = vmax.f32 %v774_v41, 0.0 }
 0x10a   :  { %v3992_v45 = vpop.f32.mrf.mxu0  ;;  %4151 = vmatmul.mubr.msk.f32.vlgmr.msra.gmra.mxu0 %vm1400_vm1, %v1258_v42  ;;  %4193 = vmatmul.mubr.msk.f32.gmra.mxu1 %vm1400_vm1, %v1286_v38 }
 0x10b   :  { %v1287_v46 = vmax.f32 %v769_v43, 0.0  ;;  %v784_v48 = vadd.f32 %v3992_v45, %v4849_v52 }
 0x10c   :  { %v778_v50 = vpop.f32.mrf.mxu0 }
 0x10d   :  { %v779_v51 = vadd.f32 %v4849_v52, %v778_v50  ;;  %4195 = vmatprep.mubr.msk.f32.mxu1 %vm1400_vm1, %v1287_v46  ;;  %v1290_v53 = vmax.f32 %v784_v48, 0.0 }
 0x10e   :  { %v3995_v54 = vpop.f32.mrf.mxu0  ;;  %4196 = vmatmul.mubr.msk.f32.gmra.mxu1 %vm1400_vm1, %v1288_v44 }
 0x10f   :  { %v1289_v55 = vmax.f32 %v779_v51, 0.0  ;;  %v794_v56 = vadd.f32 %v3995_v54, %v4849_v52 }
 0x110   :  { %v788_v57 = vpop.f32.mrf.mxu0 }
 0x111   :  { %v789_v58 = vadd.f32 %v4849_v52, %v788_v57  ;;  %4198 = vmatprep.mubr.msk.f32.mxu1 %vm1400_vm1, %v1289_v55  ;;  %v1292_v59 = vmax.f32 %v794_v56, 0.0 }
 0x112   :  { %v3998_v60 = vpop.f32.mrf.mxu0  ;;  %4199 = vmatmul.mubr.msk.f32.gmra.mxu1 %vm1400_vm1, %v1290_v53 }
 0x113   :  { %v1291_v61 = vmax.f32 %v789_v58, 0.0  ;;  %v804_v62 = vadd.f32 %v3998_v60, %v4849_v52 }
 0x114   :  { %v798_v63 = vpop.f32.mrf.mxu0 }
 0x115   :  { %v799_v0 = vadd.f32 %v4849_v52, %v798_v63  ;;  %4201 = vmatprep.mubr.msk.f32.mxu1 %vm1400_vm1, %v1291_v61  ;;  %v1294_v1 = vmax.f32 %v804_v62, 0.0 }
 0x116   :  { %v4001_v2 = vpop.f32.mrf.mxu0  ;;  %4202 = vmatmul.mubr.msk.f32.gmra.mxu1 %vm1400_vm1, %v1292_v59 }
 0x117   :  { %v1293_v3 = vmax.f32 %v799_v0, 0.0  ;;  %v814_v4 = vadd.f32 %v4001_v2, %v4849_v52 }
 0x118   :  { %v808_v5 = vpop.f32.mrf.mxu0 }
 0x119   :  { %v809_v6 = vadd.f32 %v4849_v52, %v808_v5  ;;  %4204 = vmatprep.mubr.msk.f32.mxu1 %vm1400_vm1, %v1293_v3  ;;  %v1296_v7 = vmax.f32 %v814_v4, 0.0 }
 0x11a   :  { %v4004_v8 = vpop.f32.mrf.mxu0  ;;  %4205 = vmatmul.mubr.msk.f32.gmra.mxu1 %vm1400_vm1, %v1294_v1 }
 0x11b   :  { %v1295_v9 = vmax.f32 %v809_v6, 0.0  ;;  %v824_v10 = vadd.f32 %v4004_v8, %v4849_v52 }
 0x11c   :  { %v818_v11 = vpop.f32.mrf.mxu0 }
 0x11d   :  { %v819_v12 = vadd.f32 %v4849_v52, %v818_v11  ;;  %4207 = vmatprep.mubr.msk.f32.mxu1 %vm1400_vm1, %v1295_v9  ;;  %v1298_v13 = vmax.f32 %v824_v10, 0.0 }
 0x11e   :  { %v4007_v14 = vpop.f32.mrf.mxu0  ;;  %4208 = vmatmul.mubr.msk.f32.gmra.mxu1 %vm1400_vm1, %v1296_v7 }
 0x11f   :  { %v1297_v15 = vmax.f32 %v819_v12, 0.0  ;;  %v834_v16 = vadd.f32 %v4007_v14, %v4849_v52 }
 0x120   :  { %v828_v17 = vpop.f32.mrf.mxu0 }
 0x121   :  { %v829_v18 = vadd.f32 %v4849_v52, %v828_v17  ;;  %4210 = vmatprep.mubr.msk.f32.mxu1 %vm1400_vm1, %v1297_v15  ;;  %v1300_v19 = vmax.f32 %v834_v16, 0.0 }
 0x122   :  { %v4010_v20 = vpop.f32.mrf.mxu0  ;;  %4211 = vmatmul.mubr.msk.f32.gmra.mxu1 %vm1400_vm1, %v1298_v13 }
 0x123   :  { %v1299_v21 = vmax.f32 %v829_v18, 0.0  ;;  %v844_v22 = vadd.f32 %v4010_v20, %v4849_v52 }
 0x124   :  { %v838_v23 = vpop.f32.mrf.mxu0 }
 0x125   :  { %v839_v24 = vadd.f32 %v4849_v52, %v838_v23  ;;  %4213 = vmatprep.mubr.msk.f32.mxu1 %vm1400_vm1, %v1299_v21  ;;  %v1302_v25 = vmax.f32 %v844_v22, 0.0 }
 0x126   :  { %v4013_v26 = vpop.f32.mrf.mxu0  ;;  %4214 = vmatmul.mubr.msk.f32.gmra.mxu1 %vm1400_vm1, %v1300_v19 }
 0x127   :  { %v1301_v27 = vmax.f32 %v839_v24, 0.0  ;;  %v854_v28 = vadd.f32 %v4013_v26, %v4849_v52 }
 0x128   :  { %v848_v29 = vpop.f32.mrf.mxu0 }
 0x129   :  { %v849_v30 = vadd.f32 %v4849_v52, %v848_v29  ;;  %4216 = vmatprep.mubr.msk.f32.mxu1 %vm1400_vm1, %v1301_v27  ;;  %v1304_v31 = vmax.f32 %v854_v28, 0.0 }
 0x12a   :  { %v4016_v32 = vpop.f32.mrf.mxu0  ;;  %4217 = vmatmul.mubr.msk.f32.gmra.mxu1 %vm1400_vm1, %v1302_v25 }
 0x12b   :  { %v1303_v33 = vmax.f32 %v849_v30, 0.0  ;;  %v864_v49 = vadd.f32 %v4016_v32, %v4849_v52 }
 0x12c   :  { %v858_v34 = vpop.f32.mrf.mxu0 }
 0x12d   :  { %v859_v35 = vadd.f32 %v4849_v52, %v858_v34  ;;  %4219 = vmatprep.mubr.msk.f32.mxu1 %vm1400_vm1, %v1303_v33  ;;  %v1306_v36 = vmax.f32 %v864_v49, 0.0 }
 0x12e   :  { %v4019_v37 = vpop.f32.mrf.mxu0  ;;  %4220 = vmatmul.mubr.msk.f32.gmra.mxu1 %vm1400_vm1, %v1304_v31 }
 0x12f   :  { %v1305_v38 = vmax.f32 %v859_v35, 0.0  ;;  %v874_v39 = vadd.f32 %v4019_v37, %v4849_v52 }
 0x130   :  { %v868_v40 = vpop.f32.mrf.mxu0 }
 0x131   :  { %v869_v41 = vadd.f32 %v4849_v52, %v868_v40  ;;  %4222 = vmatprep.mubr.msk.f32.mxu1 %vm1400_vm1, %v1305_v38  ;;  %v1308_v42 = vmax.f32 %v874_v39, 0.0 }
 0x132   :  { %v4022_v47 = vpop.f32.mrf.mxu0  ;;  %4223 = vmatmul.mubr.msk.f32.gmra.mxu1 %vm1400_vm1, %v1306_v36 }
 0x133   :  { %v1307_v43 = vmax.f32 %v869_v41, 0.0  ;;  %v884_v44 = vadd.f32 %v4022_v47, %v4849_v52 }
 0x134   :  { %v878_v45 = vpop.f32.mrf.mxu0 }
 0x135   :  { %v879_v46 = vadd.f32 %v4849_v52, %v878_v45  ;;  %4225 = vmatprep.mubr.msk.f32.mxu1 %vm1400_vm1, %v1307_v43  ;;  %v1310_v48 = vmax.f32 %v884_v44, 0.0 }
 0x136   :  { %v4025_v50 = vpop.f32.mrf.mxu0  ;;  %4226 = vmatmul.mubr.msk.f32.gmra.mxu1 %vm1400_vm1, %v1308_v42 }
 0x137   :  { %v1309_v51 = vmax.f32 %v879_v46, 0.0  ;;  %v894_v53 = vadd.f32 %v4025_v50, %v4849_v52 }
 0x138   :  { %v888_v54 = vpop.f32.mrf.mxu0 }
 0x139   :  { %v889_v55 = vadd.f32 %v4849_v52, %v888_v54  ;;  %4228 = vmatprep.mubr.msk.f32.mxu1 %vm1400_vm1, %v1309_v51  ;;  %v1312_v56 = vmax.f32 %v894_v53, 0.0 }
 0x13a   :  { %v4028_v57 = vpop.f32.mrf.mxu0  ;;  %4229 = vmatmul.mubr.msk.f32.gmra.mxu1 %vm1400_vm1, %v1310_v48 }
 0x13b   :  { %v1311_v58 = vmax.f32 %v889_v55, 0.0  ;;  %v904_v59 = vadd.f32 %v4028_v57, %v4849_v52 }
 0x13c   :  { %v898_v60 = vpop.f32.mrf.mxu0 }
 0x13d   :  { %v899_v61 = vadd.f32 %v4849_v52, %v898_v60  ;;  %4231 = vmatprep.mubr.msk.f32.mxu1 %vm1400_vm1, %v1311_v58  ;;  %v1314_v62 = vmax.f32 %v904_v59, 0.0 }
 0x13e   :  { %v4031_v63 = vpop.f32.mrf.mxu0  ;;  %4232 = vmatmul.mubr.msk.f32.gmra.mxu1 %vm1400_vm1, %v1312_v56 }
 0x13f   :  { %v1313_v0 = vmax.f32 %v899_v61, 0.0  ;;  %v914_v1 = vadd.f32 %v4031_v63, %v4849_v52 }
 0x140   :  { %v908_v2 = vpop.f32.mrf.mxu0 }
 0x141   :  { %v909_v3 = vadd.f32 %v4849_v52, %v908_v2  ;;  %4234 = vmatprep.mubr.msk.f32.mxu1 %vm1400_vm1, %v1313_v0  ;;  %v1316_v4 = vmax.f32 %v914_v1, 0.0 }
 0x142   :  { %v4034_v5 = vpop.f32.mrf.mxu0  ;;  %4235 = vmatmul.mubr.msk.f32.gmra.mxu1 %vm1400_vm1, %v1314_v62 }
 0x143   :  { %v1315_v6 = vmax.f32 %v909_v3, 0.0  ;;  %v924_v7 = vadd.f32 %v4034_v5, %v4849_v52 }
 0x144   :  { %v918_v8 = vpop.f32.mrf.mxu0 }
 0x145   :  { %v919_v9 = vadd.f32 %v4849_v52, %v918_v8  ;;  %4237 = vmatprep.mubr.msk.f32.mxu1 %vm1400_vm1, %v1315_v6  ;;  %v1318_v10 = vmax.f32 %v924_v7, 0.0 }
 0x146   :  { %v4037_v11 = vpop.f32.mrf.mxu0  ;;  %4238 = vmatmul.mubr.msk.f32.gmra.mxu1 %vm1400_vm1, %v1316_v4 }
 0x147   :  { %v1317_v12 = vmax.f32 %v919_v9, 0.0  ;;  %v934_v13 = vadd.f32 %v4037_v11, %v4849_v52 }
 0x148   :  { %v928_v14 = vpop.f32.mrf.mxu0 }
 0x149   :  { %v929_v15 = vadd.f32 %v4849_v52, %v928_v14  ;;  %4240 = vmatprep.mubr.msk.f32.mxu1 %vm1400_vm1, %v1317_v12  ;;  %v1320_v16 = vmax.f32 %v934_v13, 0.0 }
 0x14a   :  { %v4040_v17 = vpop.f32.mrf.mxu0  ;;  %4241 = vmatmul.mubr.msk.f32.gmra.mxu1 %vm1400_vm1, %v1318_v10 }
 0x14b   :  { %v1319_v18 = vmax.f32 %v929_v15, 0.0  ;;  %v944_v19 = vadd.f32 %v4040_v17, %v4849_v52 }
 0x14c   :  { %v938_v20 = vpop.f32.mrf.mxu0 }
 0x14d   :  { %v939_v21 = vadd.f32 %v4849_v52, %v938_v20  ;;  %4243 = vmatprep.mubr.msk.f32.mxu1 %vm1400_vm1, %v1319_v18  ;;  %v1322_v22 = vmax.f32 %v944_v19, 0.0 }
 0x14e   :  { %v4043_v23 = vpop.f32.mrf.mxu0  ;;  %4244 = vmatmul.mubr.msk.f32.gmra.mxu1 %vm1400_vm1, %v1320_v16 }
 0x14f   :  { %v1321_v24 = vmax.f32 %v939_v21, 0.0  ;;  %v954_v25 = vadd.f32 %v4043_v23, %v4849_v52 }
 0x150   :  { %v948_v26 = vpop.f32.mrf.mxu0 }
 0x151   :  { %v949_v27 = vadd.f32 %v4849_v52, %v948_v26  ;;  %4246 = vmatprep.mubr.msk.f32.mxu1 %vm1400_vm1, %v1321_v24  ;;  %v1324_v28 = vmax.f32 %v954_v25, 0.0 }
 0x152   :  { %v4046_v29 = vpop.f32.mrf.mxu0  ;;  %4247 = vmatmul.mubr.msk.f32.gmra.mxu1 %vm1400_vm1, %v1322_v22 }
 0x153   :  { %v1323_v30 = vmax.f32 %v949_v27, 0.0  ;;  %v964_v31 = vadd.f32 %v4046_v29, %v4849_v52 }
 0x154   :  { %v958_v32 = vpop.f32.mrf.mxu0 }
 0x155   :  { %v959_v33 = vadd.f32 %v4849_v52, %v958_v32  ;;  %4249 = vmatprep.mubr.msk.f32.mxu1 %vm1400_vm1, %v1323_v30  ;;  %v1326_v49 = vmax.f32 %v964_v31, 0.0 }
 0x156   :  { %v4049_v34 = vpop.f32.mrf.mxu0  ;;  %4250 = vmatmul.mubr.msk.f32.gmra.mxu1 %vm1400_vm1, %v1324_v28 }
 0x157   :  { %v1325_v35 = vmax.f32 %v959_v33, 0.0  ;;  %v974_v36 = vadd.f32 %v4049_v34, %v4849_v52 }
 0x158   :  { %v968_v37 = vpop.f32.mrf.mxu0 }
 0x159   :  { %v969_v38 = vadd.f32 %v4849_v52, %v968_v37  ;;  %4252 = vmatprep.mubr.msk.f32.mxu1 %vm1400_vm1, %v1325_v35  ;;  %v1328_v39 = vmax.f32 %v974_v36, 0.0 }
 0x15a   :  { %v4052_v40 = vpop.f32.mrf.mxu0  ;;  %4253 = vmatmul.mubr.msk.f32.gmra.mxu1 %vm1400_vm1, %v1326_v49 }
 0x15b   :  { %v1327_v41 = vmax.f32 %v969_v38, 0.0  ;;  %v984_v42 = vadd.f32 %v4052_v40, %v4849_v52 }
 0x15c   :  { %v978_v47 = vpop.f32.mrf.mxu0 }
 0x15d   :  { %v979_v43 = vadd.f32 %v4849_v52, %v978_v47  ;;  %4255 = vmatprep.mubr.msk.f32.mxu1 %vm1400_vm1, %v1327_v41  ;;  %v1330_v44 = vmax.f32 %v984_v42, 0.0 }
 0x15e   :  { %v4055_v45 = vpop.f32.mrf.mxu0  ;;  %4256 = vmatmul.mubr.msk.f32.gmra.mxu1 %vm1400_vm1, %v1328_v39 }
 0x15f   :  { %v1329_v46 = vmax.f32 %v979_v43, 0.0  ;;  %v994_v48 = vadd.f32 %v4055_v45, %v4849_v52 }
 0x160   :  { %v988_v50 = vpop.f32.mrf.mxu0 }
 0x161   :  { %v989_v51 = vadd.f32 %v4849_v52, %v988_v50  ;;  %4258 = vmatprep.mubr.msk.f32.mxu1 %vm1400_vm1, %v1329_v46  ;;  %v1332_v53 = vmax.f32 %v994_v48, 0.0 }
 0x162   :  { %v4058_v54 = vpop.f32.mrf.mxu0  ;;  %4259 = vmatmul.mubr.msk.f32.gmra.mxu1 %vm1400_vm1, %v1330_v44 }
 0x163   :  { %v1331_v55 = vmax.f32 %v989_v51, 0.0  ;;  %v1004_v56 = vadd.f32 %v4058_v54, %v4849_v52 }
 0x164   :  { %v998_v57 = vpop.f32.mrf.mxu0 }
 0x165   :  { %v999_v58 = vadd.f32 %v4849_v52, %v998_v57  ;;  %4261 = vmatprep.mubr.msk.f32.mxu1 %vm1400_vm1, %v1331_v55  ;;  %v1334_v59 = vmax.f32 %v1004_v56, 0.0 }
 0x166   :  { %v4061_v60 = vpop.f32.mrf.mxu0  ;;  %4262 = vmatmul.mubr.msk.f32.gmra.mxu1 %vm1400_vm1, %v1332_v53 }
 0x167   :  { %v1333_v61 = vmax.f32 %v999_v58, 0.0  ;;  %v1014_v62 = vadd.f32 %v4061_v60, %v4849_v52 }
 0x168   :  { %v1008_v63 = vpop.f32.mrf.mxu0 }
 0x169   :  { %v1009_v0 = vadd.f32 %v4849_v52, %v1008_v63  ;;  %4264 = vmatprep.mubr.msk.f32.mxu1 %vm1400_vm1, %v1333_v61  ;;  %v1336_v1 = vmax.f32 %v1014_v62, 0.0 }
 0x16a   :  { %v4064_v2 = vpop.f32.mrf.mxu0  ;;  %4265 = vmatmul.mubr.msk.f32.gmra.mxu1 %vm1400_vm1, %v1334_v59 }
 0x16b   :  { %v1335_v3 = vmax.f32 %v1009_v0, 0.0  ;;  %v1024_v4 = vadd.f32 %v4064_v2, %v4849_v52 }
 0x16c   :  { %v1018_v5 = vpop.f32.mrf.mxu0 }
 0x16d   :  { %v1019_v6 = vadd.f32 %v4849_v52, %v1018_v5  ;;  %4267 = vmatprep.mubr.msk.f32.mxu1 %vm1400_vm1, %v1335_v3  ;;  %v1338_v7 = vmax.f32 %v1024_v4, 0.0  ;;  %v5164_v3 = vld [vmem:[%s6279_s4] ss:$0 sm:$0xff] }
 0x16e   :  { %v4067_v8 = vpop.f32.mrf.mxu0  ;;  %4268 = vmatmul.mubr.msk.f32.gmra.mxu1 %vm1400_vm1, %v1336_v1 }
 0x16f   :  { %v1337_v9 = vmax.f32 %v1019_v6, 0.0  ;;  %v1034_v10 = vadd.f32 %v4067_v8, %v4849_v52 }
 0x170   :  { %v1028_v11 = vpop.f32.mrf.mxu0 }
 0x171   :  { %v1029_v12 = vadd.f32 %v4849_v52, %v1028_v11  ;;  %4270 = vmatprep.mubr.msk.f32.mxu1 %vm1400_vm1, %v1337_v9  ;;  %v1340_v13 = vmax.f32 %v1034_v10, 0.0 }
 0x172   :  { %v4070_v14 = vpop.f32.mrf.mxu0  ;;  %4271 = vmatmul.mubr.msk.f32.gmra.mxu1 %vm1400_vm1, %v1338_v7 }
 0x173   :  { %v1339_v15 = vmax.f32 %v1029_v12, 0.0  ;;  %v1044_v16 = vadd.f32 %v4070_v14, %v4849_v52 }
 0x174   :  { %v1038_v17 = vpop.f32.mrf.mxu0 }
 0x175   :  { %v1039_v18 = vadd.f32 %v4849_v52, %v1038_v17  ;;  %4273 = vmatprep.mubr.msk.f32.mxu1 %vm1400_vm1, %v1339_v15  ;;  %v1342_v19 = vmax.f32 %v1044_v16, 0.0  ;;  %v5177_v16 = vld [vmem:[%s6280_s5] ss:$0 sm:$0xff] }
 0x176   :  { %v4073_v20 = vpop.f32.mrf.mxu0  ;;  %4274 = vmatmul.mubr.msk.f32.gmra.mxu1 %vm1400_vm1, %v1340_v13 }
 0x177   :  { %v1341_v21 = vmax.f32 %v1039_v18, 0.0  ;;  %v1054_v22 = vadd.f32 %v4073_v20, %v4849_v52 }
 0x178   :  { %v1048_v23 = vpop.f32.mrf.mxu0 }
 0x179   :  { %v1049_v24 = vadd.f32 %v4849_v52, %v1048_v23  ;;  %4276 = vmatprep.mubr.msk.f32.mxu1 %vm1400_vm1, %v1341_v21  ;;  %v1344_v25 = vmax.f32 %v1054_v22, 0.0 }
 0x17a   :  { %v4076_v26 = vpop.f32.mrf.mxu0  ;;  %4277 = vmatmul.mubr.msk.f32.gmra.mxu1 %vm1400_vm1, %v1342_v19 }
 0x17b   :  { %v1343_v27 = vmax.f32 %v1049_v24, 0.0  ;;  %v1064_v28 = vadd.f32 %v4076_v26, %v4849_v52 }
 0x17c   :  { %v1058_v29 = vpop.f32.mrf.mxu0 }
 0x17d   :  { %v1059_v30 = vadd.f32 %v4849_v52, %v1058_v29  ;;  %4279 = vmatprep.mubr.msk.f32.mxu1 %vm1400_vm1, %v1343_v27  ;;  %v1346_v31 = vmax.f32 %v1064_v28, 0.0 }
 0x17e   :  { %v4079_v32 = vpop.f32.mrf.mxu0  ;;  %4280 = vmatmul.mubr.msk.f32.gmra.mxu1 %vm1400_vm1, %v1344_v25 }
 0x17f   :  { %v1345_v33 = vmax.f32 %v1059_v30, 0.0  ;;  %v1074_v49 = vadd.f32 %v4079_v32, %v4849_v52 }
 0x180   :  { %v1068_v34 = vpop.f32.mrf.mxu0 }
 0x181   :  { %v1069_v35 = vadd.f32 %v4849_v52, %v1068_v34  ;;  %4282 = vmatprep.mubr.msk.f32.mxu1 %vm1400_vm1, %v1345_v33  ;;  %v1348_v36 = vmax.f32 %v1074_v49, 0.0 }
 0x182   :  { %v4082_v37 = vpop.f32.mrf.mxu0  ;;  %4283 = vmatmul.mubr.msk.f32.gmra.mxu1 %vm1400_vm1, %v1346_v31 }
 0x183   :  { %v1347_v38 = vmax.f32 %v1069_v35, 0.0  ;;  %v1084_v39 = vadd.f32 %v4082_v37, %v4849_v52 }
 0x184   :  { %v1078_v40 = vpop.f32.mrf.mxu0 }
 0x185   :  { %v1079_v41 = vadd.f32 %v4849_v52, %v1078_v40  ;;  %4285 = vmatprep.mubr.msk.f32.mxu1 %vm1400_vm1, %v1347_v38  ;;  %v1350_v42 = vmax.f32 %v1084_v39, 0.0  ;;  %v12_v40 = vstv %s6281_s6 }
 0x186   :  { %v4085_v47 = vpop.f32.mrf.mxu0  ;;  %4286 = vmatmul.mubr.msk.f32.gmra.mxu1 %vm1400_vm1, %v1348_v36  ;;  %13 = vst [vmem:[#allocation2] sm:$0x1] %v12_v40 }
 0x187   :  { %v1349_v43 = vmax.f32 %v1079_v41, 0.0  ;;  %v1094_v44 = vadd.f32 %v4085_v47, %v4849_v52 }
 0x188   :  { %v1088_v45 = vpop.f32.mrf.mxu0 }
 0x189   :  { %v1089_v46 = vadd.f32 %v4849_v52, %v1088_v45  ;;  %4288 = vmatprep.mubr.msk.f32.mxu1 %vm1400_vm1, %v1349_v43  ;;  %v1352_v48 = vmax.f32 %v1094_v44, 0.0 }
 0x18a   :  { %v4088_v50 = vpop.f32.mrf.mxu0  ;;  %4289 = vmatmul.mubr.msk.f32.gmra.mxu1 %vm1400_vm1, %v1350_v42 }
 0x18b   :  { %v1351_v51 = vmax.f32 %v1089_v46, 0.0  ;;  %v1104_v53 = vadd.f32 %v4088_v50, %v4849_v52 }
 0x18c   :  { %v1098_v54 = vpop.f32.mrf.mxu0 }
 0x18d   :  { %v1099_v55 = vadd.f32 %v4849_v52, %v1098_v54  ;;  %4291 = vmatprep.mubr.msk.f32.mxu1 %vm1400_vm1, %v1351_v51  ;;  %v1354_v56 = vmax.f32 %v1104_v53, 0.0 }
 0x18e   :  { %v4091_v57 = vpop.f32.mrf.mxu0  ;;  %4292 = vmatmul.mubr.msk.f32.gmra.mxu1 %vm1400_vm1, %v1352_v48 }
 0x18f   :  { %v1353_v58 = vmax.f32 %v1099_v55, 0.0  ;;  %v1114_v59 = vadd.f32 %v4091_v57, %v4849_v52 }
 0x190   :  { %v1108_v60 = vpop.f32.mrf.mxu0 }
 0x191   :  { %v1109_v61 = vadd.f32 %v4849_v52, %v1108_v60  ;;  %4294 = vmatprep.mubr.msk.f32.mxu1 %vm1400_vm1, %v1353_v58  ;;  %v1356_v62 = vmax.f32 %v1114_v59, 0.0 }
 0x192   :  { %v4094_v63 = vpop.f32.mrf.mxu0  ;;  %4295 = vmatmul.mubr.msk.f32.gmra.mxu1 %vm1400_vm1, %v1354_v56 }
 0x193   :  { %v1355_v0 = vmax.f32 %v1109_v61, 0.0  ;;  %v1124_v1 = vadd.f32 %v4094_v63, %v4849_v52 }
 0x194   :  { %v1118_v2 = vpop.f32.mrf.mxu0 }
 0x195   :  { %v1119_v4 = vadd.f32 %v4849_v52, %v1118_v2  ;;  %4297 = vmatprep.mubr.msk.f32.mxu1 %vm1400_vm1, %v1355_v0  ;;  %v1358_v5 = vmax.f32 %v1124_v1, 0.0 }
 0x196   :  { %v4097_v6 = vpop.f32.mrf.mxu0  ;;  %v4155_v7 = vpop.f32.mrf.mxu1  ;;  %4298 = vmatmul.mubr.msk.f32.gmra.mxu1 %vm1400_vm1, %v1356_v62 }
 0x197   :  { %v1357_v8 = vmax.f32 %v1119_v4, 0.0  ;;  %v1134_v9 = vadd.f32 %v4097_v6, %v4849_v52  ;;  %v1867_v10 = vadd.f32 %v4155_v7, %v5164_v3 }
 0x198   :  { %v1128_v11 = vpop.f32.mrf.mxu0  ;;  %v1861_v12 = vpop.f32.mrf.mxu1 }
 0x199   :  { %v2493_v13 = vmax.f32 %v1867_v10, 0.0  ;;  %v1129_v14 = vadd.f32 %v4849_v52, %v1128_v11  ;;  %v1862_v15 = vadd.f32 %v5164_v3, %v1861_v12  ;;  %4300 = vmatprep.mubr.msk.f32.mxu1 %vm1400_vm1, %v1357_v8  ;;  %v1360_v17 = vmax.f32 %v1134_v9, 0.0 }
 0x19a   :  { %v4100_v18 = vpop.f32.mrf.mxu0  ;;  %v4158_v19 = vpop.f32.mrf.mxu1  ;;  %4301 = vmatmul.mubr.msk.f32.gmra.mxu1 %vm1400_vm1, %v1358_v5 }
 0x19b   :  { %v1359_v20 = vmax.f32 %v1129_v14, 0.0  ;;  %v2492_v21 = vmax.f32 %v1862_v15, 0.0  ;;  %v1144_v22 = vadd.f32 %v4100_v18, %v4849_v52  ;;  %v1877_v23 = vadd.f32 %v4158_v19, %v5164_v3 }
 0x19c   :  { %v1138_v24 = vpop.f32.mrf.mxu0  ;;  %v1871_v25 = vpop.f32.mrf.mxu1  ;;  %v2628_v26 = vmul.f32 %v5177_v16, %v2493_v13 }
 0x19d   :  { %v2495_v27 = vmax.f32 %v1877_v23, 0.0  ;;  %v1139_v28 = vadd.f32 %v4849_v52, %v1138_v24  ;;  %v1872_v29 = vadd.f32 %v5164_v3, %v1871_v25  ;;  %4303 = vmatprep.mubr.msk.f32.mxu1 %vm1400_vm1, %v1359_v20  ;;  %v1362_v30 = vmax.f32 %v1144_v22, 0.0 }
 0x19e   :  { %v4103_v31 = vpop.f32.mrf.mxu0  ;;  %4304 = vmatmul.mubr.msk.f32.gmra.mxu1 %vm1400_vm1, %v1360_v17  ;;  %v2763_v32 = vsel %vm2753_vm2, %v2628_v26, 0.0  ;;  %v4161_v33 = vpop.f32.mrf.mxu1  ;;  %v2627_v49 = vmul.f32 %v5177_v16, %v2492_v21 }
 0x19f   :  { %v1361_v34 = vmax.f32 %v1139_v28, 0.0  ;;  %v2494_v35 = vmax.f32 %v1872_v29, 0.0  ;;  %v1154_v36 = vadd.f32 %v4103_v31, %v4849_v52  ;;  %2764 = vadd.xlane.f32.xlu1 %v2763_v32  ;;  %v1887_v37 = vadd.f32 %v4161_v33, %v5164_v3 }
 0x1a0   :  { %v1148_v38 = vpop.f32.mrf.mxu0  ;;  %v1881_v39 = vpop.f32.mrf.mxu1  ;;  %v2630_v47 = vmul.f32 %v5177_v16, %v2495_v27  ;;  %v2760_v48 = vsel %vm2753_vm2, %v2627_v49, 0.0 }
 0x1a1   :  { %v1149_v41 = vadd.f32 %v4849_v52, %v1148_v38  ;;  %v1882_v42 = vadd.f32 %v5164_v3, %v1881_v39  ;;  %4306 = vmatprep.mubr.msk.f32.mxu1 %vm1400_vm1, %v1361_v34  ;;  %v1364_v43 = vmax.f32 %v1154_v36, 0.0  ;;  %v2497_v44 = vmax.f32 %v1887_v37, 0.0  ;;  %v5204_v52 = vld [vmem:[%s6278_s2] ss:$0 sm:$0xff] }
 0x1a2   :  { %v4106_v45 = vpop.f32.mrf.mxu0  ;;  %v4164_v46 = vpop.f32.mrf.mxu1  ;;  %4307 = vmatmul.mubr.msk.f32.gmra.mxu1 %vm1400_vm1, %v1362_v30  ;;  %v2629_v50 = vmul.f32 %v5177_v16, %v2494_v35  ;;  %v2769_v61 = vsel %vm2753_vm2, %v2630_v47, 0.0 }
 0x1a3   :  { %v1363_v51 = vmax.f32 %v1149_v41, 0.0  ;;  %v2496_v53 = vmax.f32 %v1882_v42, 0.0  ;;  %v1164_v54 = vadd.f32 %v5204_v52, %v4106_v45  ;;  %v1897_v55 = vadd.f32 %v4164_v46, %v5164_v3  ;;  %2761 = vadd.xlane.f32.xlu1 %v2760_v48 }
 0x1a4   :  { %v1158_v56 = vpop.f32.mrf.mxu0  ;;  %v1891_v57 = vpop.f32.mrf.mxu1  ;;  %v2766_v58 = vsel %vm2753_vm2, %v2629_v50, 0.0  ;;  %v2632_v4 = vmul.f32 %v5177_v16, %v2497_v44 }
 0x1a5   :  { %v1159_v59 = vadd.f32 %v5204_v52, %v1158_v56  ;;  %v1892_v60 = vadd.f32 %v5164_v3, %v1891_v57  ;;  %2767 = vadd.xlane.f32.xlu0 %v2766_v58  ;;  %4309 = vmatprep.mubr.msk.f32.mxu1 %vm1400_vm1, %v1363_v51  ;;  %v1366_v62 = vmax.f32 %v1164_v54, 0.0  ;;  %v2499_v63 = vmax.f32 %v1897_v55, 0.0 }
 0x1a6   :  { %v4109_v0 = vpop.f32.mrf.mxu0  ;;  %v4167_v1 = vpop.f32.mrf.mxu1  ;;  %4310 = vmatmul.mubr.msk.f32.gmra.mxu1 %vm1400_vm1, %v1364_v43  ;;  %v2631_v2 = vmul.f32 %v5177_v16, %v2496_v53  ;;  %v2775_v19 = vsel %vm2753_vm2, %v2632_v4, 0.0 }
 0x1a7   :  { %v1365_v5 = vmax.f32 %v1159_v59, 0.0  ;;  %v2498_v6 = vmax.f32 %v1892_v60, 0.0  ;;  %v1174_v7 = vadd.f32 %v5204_v52, %v4109_v0  ;;  %v1907_v8 = vadd.f32 %v4167_v1, %v5164_v3  ;;  %2770 = vadd.xlane.f32.xlu1 %v2769_v61 }
 0x1a8   :  { %v1168_v9 = vpop.f32.mrf.mxu0  ;;  %v1901_v10 = vpop.f32.mrf.mxu1  ;;  %v2772_v11 = vsel %vm2753_vm2, %v2631_v2, 0.0  ;;  %v2634_v21 = vmul.f32 %v5177_v16, %v2499_v63 }
 0x1a9   :  { %v2501_v12 = vmax.f32 %v1907_v8, 0.0  ;;  %v1169_v13 = vadd.f32 %v5204_v52, %v1168_v9  ;;  %v1902_v14 = vadd.f32 %v5164_v3, %v1901_v10  ;;  %2773 = vadd.xlane.f32.xlu0 %v2772_v11  ;;  %4312 = vmatprep.mubr.msk.f32.mxu1 %vm1400_vm1, %v1365_v5  ;;  %v1368_v15 = vmax.f32 %v1174_v7, 0.0 }
 0x1aa   :  { %v4112_v17 = vpop.f32.mrf.mxu0  ;;  %v4170_v18 = vpop.f32.mrf.mxu1  ;;  %4313 = vmatmul.mubr.msk.f32.gmra.mxu1 %vm1400_vm1, %v1366_v62  ;;  %v2633_v20 = vmul.f32 %v5177_v16, %v2498_v6  ;;  %v2781_v35 = vsel %vm2753_vm2, %v2634_v21, 0.0 }
 0x1ab   :  { %v1367_v22 = vmax.f32 %v1169_v13, 0.0  ;;  %v2500_v23 = vmax.f32 %v1902_v14, 0.0  ;;  %v1184_v24 = vadd.f32 %v5204_v52, %v4112_v17  ;;  %v1917_v25 = vadd.f32 %v4170_v18, %v5164_v3  ;;  %2776 = vadd.xlane.f32.xlu1 %v2775_v19 }
 0x1ac   :  { %v1178_v26 = vpop.f32.mrf.mxu0  ;;  %v1911_v27 = vpop.f32.mrf.mxu1  ;;  %v2778_v28 = vsel %vm2753_vm2, %v2633_v20, 0.0  ;;  %v2636_v31 = vmul.f32 %v5177_v16, %v2501_v12 }
 0x1ad   :  { %v1179_v29 = vadd.f32 %v5204_v52, %v1178_v26  ;;  %v1912_v30 = vadd.f32 %v5164_v3, %v1911_v27  ;;  %2779 = vadd.xlane.f32.xlu0 %v2778_v28  ;;  %4315 = vmatprep.mubr.msk.f32.mxu1 %vm1400_vm1, %v1367_v22  ;;  %v1370_v32 = vmax.f32 %v1184_v24, 0.0  ;;  %v2503_v33 = vmax.f32 %v1917_v25, 0.0 }
 0x1ae   :  { %v4115_v49 = vpop.f32.mrf.mxu0  ;;  %v4173_v34 = vpop.f32.mrf.mxu1  ;;  %4316 = vmatmul.mubr.msk.f32.gmra.mxu1 %vm1400_vm1, %v1368_v15  ;;  %v2635_v36 = vmul.f32 %v5177_v16, %v2500_v23  ;;  %v2787_v45 = vsel %vm2753_vm2, %v2636_v31, 0.0 }
 0x1af   :  { %v1369_v37 = vmax.f32 %v1179_v29, 0.0  ;;  %v2502_v38 = vmax.f32 %v1912_v30, 0.0  ;;  %v1194_v39 = vadd.f32 %v5204_v52, %v4115_v49  ;;  %v1927_v40 = vadd.f32 %v4173_v34, %v5164_v3  ;;  %2782 = vadd.xlane.f32.xlu1 %v2781_v35 }
 0x1b0   :  { %v1188_v41 = vpop.f32.mrf.mxu0  ;;  %v1921_v42 = vpop.f32.mrf.mxu1  ;;  %v2784_v47 = vsel %vm2753_vm2, %v2635_v36, 0.0  ;;  %v2638_v54 = vmul.f32 %v5177_v16, %v2503_v33 }
 0x1b1   :  { %v1189_v43 = vadd.f32 %v5204_v52, %v1188_v41  ;;  %v1922_v44 = vadd.f32 %v5164_v3, %v1921_v42  ;;  %2785 = vadd.xlane.f32.xlu0 %v2784_v47  ;;  %4318 = vmatprep.mubr.msk.f32.mxu1 %vm1400_vm1, %v1369_v37  ;;  %v1372_v46 = vmax.f32 %v1194_v39, 0.0  ;;  %v2505_v48 = vmax.f32 %v1927_v40, 0.0 }
 0x1b2   :  { %v4118_v50 = vpop.f32.mrf.mxu0  ;;  %v4176_v51 = vpop.f32.mrf.mxu1  ;;  %4319 = vmatmul.mubr.msk.f32.gmra.mxu1 %vm1400_vm1, %v1370_v32  ;;  %v2637_v53 = vmul.f32 %v5177_v16, %v2502_v38  ;;  %v2793_v5 = vsel %vm2753_vm2, %v2638_v54, 0.0 }
 0x1b3   :  { %v1371_v55 = vmax.f32 %v1189_v43, 0.0  ;;  %v2504_v56 = vmax.f32 %v1922_v44, 0.0  ;;  %v1204_v57 = vadd.f32 %v5204_v52, %v4118_v50  ;;  %v1937_v58 = vadd.f32 %v4176_v51, %v5164_v3  ;;  %2788 = vadd.xlane.f32.xlu1 %v2787_v45 }
 0x1b4   :  { %v1198_v59 = vpop.f32.mrf.mxu0  ;;  %v1931_v60 = vpop.f32.mrf.mxu1  ;;  %v2790_v61 = vsel %vm2753_vm2, %v2637_v53, 0.0  ;;  %v2640_v7 = vmul.f32 %v5177_v16, %v2505_v48 }
 0x1b5   :  { %v2507_v62 = vmax.f32 %v1937_v58, 0.0  ;;  %v1199_v63 = vadd.f32 %v5204_v52, %v1198_v59  ;;  %v1932_v0 = vadd.f32 %v5164_v3, %v1931_v60  ;;  %2791 = vadd.xlane.f32.xlu0 %v2790_v61  ;;  %4321 = vmatprep.mubr.msk.f32.mxu1 %vm1400_vm1, %v1371_v55  ;;  %v1374_v1 = vmax.f32 %v1204_v57, 0.0 }
 0x1b6   :  { %v4121_v2 = vpop.f32.mrf.mxu0  ;;  %v4179_v4 = vpop.f32.mrf.mxu1  ;;  %4322 = vmatmul.mubr.msk.f32.gmra.mxu1 %vm1400_vm1, %v1372_v46  ;;  %v2639_v6 = vmul.f32 %v5177_v16, %v2504_v56  ;;  %v2799_v23 = vsel %vm2753_vm2, %v2640_v7, 0.0 }
 0x1b7   :  { %v1373_v8 = vmax.f32 %v1199_v63, 0.0  ;;  %v2506_v9 = vmax.f32 %v1932_v0, 0.0  ;;  %v1214_v10 = vadd.f32 %v5204_v52, %v4121_v2  ;;  %v1947_v11 = vadd.f32 %v4179_v4, %v5164_v3  ;;  %2794 = vadd.xlane.f32.xlu1 %v2793_v5 }
 0x1b8   :  { %v1208_v12 = vpop.f32.mrf.mxu0  ;;  %v1941_v13 = vpop.f32.mrf.mxu1  ;;  %v2796_v14 = vsel %vm2753_vm2, %v2639_v6, 0.0  ;;  %v2642_v18 = vmul.f32 %v5177_v16, %v2507_v62 }
 0x1b9   :  { %v1209_v15 = vadd.f32 %v5204_v52, %v1208_v12  ;;  %v1942_v17 = vadd.f32 %v5164_v3, %v1941_v13  ;;  %2797 = vadd.xlane.f32.xlu0 %v2796_v14  ;;  %4324 = vmatprep.mubr.msk.f32.mxu1 %vm1400_vm1, %v1373_v8  ;;  %v1376_v19 = vmax.f32 %v1214_v10, 0.0  ;;  %v2509_v20 = vmax.f32 %v1947_v11, 0.0 }
 0x1ba   :  { %v4124_v21 = vpop.f32.mrf.mxu0  ;;  %v4182_v22 = vpop.f32.mrf.mxu1  ;;  %4325 = vmatmul.mubr.msk.f32.gmra.mxu1 %vm1400_vm1, %v1374_v1  ;;  %v2641_v24 = vmul.f32 %v5177_v16, %v2506_v9  ;;  %v2805_v49 = vsel %vm2753_vm2, %v2642_v18, 0.0 }
 0x1bb   :  { %v1375_v25 = vmax.f32 %v1209_v15, 0.0  ;;  %v2508_v26 = vmax.f32 %v1942_v17, 0.0  ;;  %v1224_v27 = vadd.f32 %v5204_v52, %v4124_v21  ;;  %v1957_v28 = vadd.f32 %v4182_v22, %v5164_v3  ;;  %2800 = vadd.xlane.f32.xlu1 %v2799_v23 }
 0x1bc   :  { %v1218_v29 = vpop.f32.mrf.mxu0  ;;  %v1951_v30 = vpop.f32.mrf.mxu1  ;;  %v2802_v31 = vsel %vm2753_vm2, %v2641_v24, 0.0  ;;  %v2644_v39 = vmul.f32 %v5177_v16, %v2509_v20 }
 0x1bd   :  { %v1219_v32 = vadd.f32 %v5204_v52, %v1218_v29  ;;  %v1952_v33 = vadd.f32 %v5164_v3, %v1951_v30  ;;  %2803 = vadd.xlane.f32.xlu0 %v2802_v31  ;;  %4327 = vmatprep.mubr.msk.f32.mxu1 %vm1400_vm1, %v1375_v25  ;;  %v1378_v34 = vmax.f32 %v1224_v27, 0.0  ;;  %v2511_v35 = vmax.f32 %v1957_v28, 0.0 }
 0x1be   :  { %v4127_v36 = vpop.f32.mrf.mxu0  ;;  %v4185_v37 = vpop.f32.mrf.mxu1  ;;  %4328 = vmatmul.mubr.msk.f32.gmra.mxu1 %vm1400_vm1, %v1376_v19  ;;  %v2643_v38 = vmul.f32 %v5177_v16, %v2508_v26  ;;  %v2811_v55 = vsel %vm2753_vm2, %v2644_v39, 0.0 }
 0x1bf   :  { %v1377_v40 = vmax.f32 %v1219_v32, 0.0  ;;  %v2510_v41 = vmax.f32 %v1952_v33, 0.0  ;;  %v1234_v42 = vadd.f32 %v5204_v52, %v4127_v36  ;;  %v1967_v47 = vadd.f32 %v4185_v37, %v5164_v3  ;;  %2806 = vadd.xlane.f32.xlu1 %v2805_v49 }
 0x1c0   :  { %v1228_v43 = vpop.f32.mrf.mxu0  ;;  %v1961_v44 = vpop.f32.mrf.mxu1  ;;  %v2808_v45 = vsel %vm2753_vm2, %v2643_v38, 0.0  ;;  %v2646_v57 = vmul.f32 %v5177_v16, %v2511_v35 }
 0x1c1   :  { %v2513_v46 = vmax.f32 %v1967_v47, 0.0  ;;  %v1229_v48 = vadd.f32 %v5204_v52, %v1228_v43  ;;  %v1962_v50 = vadd.f32 %v5164_v3, %v1961_v44  ;;  %2809 = vadd.xlane.f32.xlu0 %v2808_v45  ;;  %4330 = vmatprep.mubr.msk.f32.mxu1 %vm1400_vm1, %v1377_v40  ;;  %v1380_v51 = vmax.f32 %v1234_v42, 0.0 }
 0x1c2   :  { %v4130_v53 = vpop.f32.mrf.mxu0  ;;  %v4188_v54 = vpop.f32.mrf.mxu1  ;;  %4331 = vmatmul.mubr.msk.f32.gmra.mxu1 %vm1400_vm1, %v1378_v34  ;;  %v2645_v56 = vmul.f32 %v5177_v16, %v2510_v41  ;;  %v2817_v9 = vsel %vm2753_vm2, %v2646_v57, 0.0 }
 0x1c3   :  { %v1379_v58 = vmax.f32 %v1229_v48, 0.0  ;;  %v2512_v59 = vmax.f32 %v1962_v50, 0.0  ;;  %v1244_v60 = vadd.f32 %v5204_v52, %v4130_v53  ;;  %v1977_v61 = vadd.f32 %v4188_v54, %v5164_v3  ;;  %2812 = vadd.xlane.f32.xlu1 %v2811_v55 }
 0x1c4   :  { %v1238_v62 = vpop.f32.mrf.mxu0  ;;  %v1971_v63 = vpop.f32.mrf.mxu1  ;;  %v2814_v0 = vsel %vm2753_vm2, %v2645_v56, 0.0  ;;  %v2648_v4 = vmul.f32 %v5177_v16, %v2513_v46 }
 0x1c5   :  { %v1239_v1 = vadd.f32 %v5204_v52, %v1238_v62  ;;  %v1972_v2 = vadd.f32 %v5164_v3, %v1971_v63  ;;  %2815 = vadd.xlane.f32.xlu0 %v2814_v0  ;;  %4333 = vmatprep.mubr.msk.f32.mxu1 %vm1400_vm1, %v1379_v58  ;;  %v1382_v5 = vmax.f32 %v1244_v60, 0.0  ;;  %v2515_v6 = vmax.f32 %v1977_v61, 0.0 }
 0x1c6   :  { %v4133_v7 = vpop.f32.mrf.mxu0  ;;  %v4191_v8 = vpop.f32.mrf.mxu1  ;;  %4334 = vmatmul.mubr.msk.f32.gmra.mxu1 %vm1400_vm1, %v1380_v51  ;;  %v2647_v10 = vmul.f32 %v5177_v16, %v2512_v59  ;;  %v2823_v21 = vsel %vm2753_vm2, %v2648_v4, 0.0 }
 0x1c7   :  { %v1381_v11 = vmax.f32 %v1239_v1, 0.0  ;;  %v2514_v12 = vmax.f32 %v1972_v2, 0.0  ;;  %v1254_v13 = vadd.f32 %v5204_v52, %v4133_v7  ;;  %v1987_v14 = vadd.f32 %v4191_v8, %v5164_v3  ;;  %2818 = vadd.xlane.f32.xlu1 %v2817_v9 }
 0x1c8   :  { %v1248_v15 = vpop.f32.mrf.mxu0  ;;  %v1981_v17 = vpop.f32.mrf.mxu1  ;;  %v2820_v18 = vsel %vm2753_vm2, %v2647_v10, 0.0  ;;  %v2650_v27 = vmul.f32 %v5177_v16, %v2515_v6 }
 0x1c9   :  { %v1249_v19 = vadd.f32 %v5204_v52, %v1248_v15  ;;  %v1982_v20 = vadd.f32 %v5164_v3, %v1981_v17  ;;  %2821 = vadd.xlane.f32.xlu0 %v2820_v18  ;;  %4336 = vmatprep.mubr.msk.f32.mxu1 %vm1400_vm1, %v1381_v11  ;;  %v1384_v22 = vmax.f32 %v1254_v13, 0.0  ;;  %v2517_v23 = vmax.f32 %v1987_v14, 0.0 }
 0x1ca   :  { %v4194_v24 = vpop.f32.mrf.mxu1  ;;  %4337 = vmatmul.mubr.msk.f32.gmra.mxu1 %vm1400_vm1, %v1382_v5  ;;  %v4152_v25 = vpop.f32.mrf.mxu0  ;;  %v2649_v26 = vmul.f32 %v5177_v16, %v2514_v12  ;;  %v2829_v37 = vsel %vm2753_vm2, %v2650_v27, 0.0 }
 0x1cb   :  { %v1383_v28 = vmax.f32 %v1249_v19, 0.0  ;;  %v2516_v29 = vmax.f32 %v1982_v20, 0.0  ;;  %v1997_v52 = vadd.f32 %v4194_v24, %v5164_v3  ;;  %2824 = vadd.xlane.f32.xlu1 %v2823_v21  ;;  %v1857_v30 = vadd.f32 %v4152_v25, %v5164_v3 }
 0x1cc   :  { %v1991_v31 = vpop.f32.mrf.mxu1  ;;  %v2826_v32 = vsel %vm2753_vm2, %v2649_v26, 0.0  ;;  %v1851_v33 = vpop.f32.mrf.mxu0  ;;  %v2652_v39 = vmul.f32 %v5177_v16, %v2517_v23 }
 0x1cd   :  { %v2491_v49 = vmax.f32 %v1857_v30, 0.0  ;;  %2827 = vadd.xlane.f32.xlu0 %v2826_v32  ;;  %v1852_v34 = vadd.f32 %v5164_v3, %v1851_v33  ;;  %4339 = vmatprep.mubr.msk.f32.mxu1 %vm1400_vm1, %v1383_v28  ;;  %v2519_v35 = vmax.f32 %v1997_v52, 0.0  ;;  %v2651_v38 = vmul.f32 %v5177_v16, %v2516_v29 }
 0x1ce   :  { %v4197_v36 = vpop.f32.mrf.mxu1  ;;  %4340 = vmatmul.mubr.msk.f32.gmra.mxu1 %vm1400_vm1, %v1384_v22  ;;  %v1992_v41 = vadd.f32 %v5164_v3, %v1991_v31  ;;  %v2835_v48 = vsel %vm2753_vm2, %v2652_v39, 0.0 }
 0x1cf   :  { %v2007_v40 = vadd.f32 %v4197_v36, %v5164_v3  ;;  %2830 = vadd.xlane.f32.xlu1 %v2829_v37  ;;  %v2490_v42 = vmax.f32 %v1852_v34, 0.0  ;;  %v2832_v43 = vsel %vm2753_vm2, %v2651_v38, 0.0  ;;  %v2626_v44 = vmul.f32 %v5177_v16, %v2491_v49 }
 0x1d0   :  { %v2001_v47 = vpop.f32.mrf.mxu1  ;;  %v2654_v50 = vmul.f32 %v5177_v16, %v2519_v35  ;;  %v2518_v53 = vmax.f32 %v1992_v41, 0.0 }
 0x1d1   :  { %2833 = vadd.xlane.f32.xlu0 %v2832_v43  ;;  %v2521_v45 = vmax.f32 %v2007_v40, 0.0  ;;  %v2002_v54 = vadd.f32 %v5164_v3, %v2001_v47  ;;  %v2757_v56 = vsel %vm2753_vm2, %v2626_v44, 0.0  ;;  %v2625_v57 = vmul.f32 %v5177_v16, %v2490_v42 }
 0x1d2   :  { %v4200_v46 = vpop.f32.mrf.mxu1  ;;  %v2841_v60 = vsel %vm2753_vm2, %v2654_v50, 0.0  ;;  %v2653_v4 = vmul.f32 %v5177_v16, %v2518_v53 }
 0x1d3   :  { %v2017_v51 = vadd.f32 %v4200_v46, %v5164_v3  ;;  %2836 = vadd.xlane.f32.xlu1 %v2835_v48  ;;  %v2656_v61 = vmul.f32 %v5177_v16, %v2521_v45  ;;  %v2520_v63 = vmax.f32 %v2002_v54, 0.0  ;;  %v2754_v2 = vsel %vm2753_vm2, %v2625_v57, 0.0 }
 0x1d4   :  { %v2011_v55 = vpop.f32.mrf.mxu1  ;;  %v2838_v13 = vsel %vm2753_vm2, %v2653_v4, 0.0 }
 0x1d5   :  { %2758 = vadd.xlane.f32.xlu0 %v2757_v56  ;;  %v2523_v58 = vmax.f32 %v2017_v51, 0.0  ;;  %v2012_v0 = vadd.f32 %v5164_v3, %v2011_v55  ;;  %v2847_v7 = vsel %vm2753_vm2, %v2656_v61, 0.0  ;;  %v2655_v14 = vmul.f32 %v5177_v16, %v2520_v63 }
 0x1d6   :  { %v4203_v59 = vpop.f32.mrf.mxu1 }
 0x1d7   :  { %v2027_v62 = vadd.f32 %v4203_v59, %v5164_v3  ;;  %2842 = vadd.xlane.f32.xlu1 %v2841_v60  ;;  %v2658_v8 = vmul.f32 %v5177_v16, %v2523_v58  ;;  %v2522_v10 = vmax.f32 %v2012_v0, 0.0  ;;  %v2844_v24 = vsel %vm2753_vm2, %v2655_v14, 0.0 }
 0x1d8   :  { %v2021_v1 = vpop.f32.mrf.mxu1 }
 0x1d9   :  { %2755 = vadd.xlane.f32.xlu0 %v2754_v2  ;;  %v2525_v5 = vmax.f32 %v2027_v62, 0.0  ;;  %v2022_v11 = vadd.f32 %v5164_v3, %v2021_v1  ;;  %v2853_v18 = vsel %vm2753_vm2, %v2658_v8, 0.0  ;;  %v2657_v25 = vmul.f32 %v5177_v16, %v2522_v10 }
 0x1da   :  { %v4206_v6 = vpop.f32.mrf.mxu1 }
 0x1db   :  { %v2037_v9 = vadd.f32 %v4206_v6, %v5164_v3  ;;  %2848 = vadd.xlane.f32.xlu1 %v2847_v7  ;;  %v2660_v19 = vmul.f32 %v5177_v16, %v2525_v5  ;;  %v2524_v21 = vmax.f32 %v2022_v11, 0.0  ;;  %v2850_v33 = vsel %vm2753_vm2, %v2657_v25, 0.0 }
 0x1dc   :  { %v2031_v12 = vpop.f32.mrf.mxu1 }
 0x1dd   :  { %2839 = vadd.xlane.f32.xlu0 %v2838_v13  ;;  %v2527_v15 = vmax.f32 %v2037_v9, 0.0  ;;  %v2032_v22 = vadd.f32 %v5164_v3, %v2031_v12  ;;  %v2859_v28 = vsel %vm2753_vm2, %v2660_v19, 0.0  ;;  %v2659_v49 = vmul.f32 %v5177_v16, %v2524_v21 }
 0x1de   :  { %v4209_v17 = vpop.f32.mrf.mxu1 }
 0x1df   :  { %v2047_v20 = vadd.f32 %v4209_v17, %v5164_v3  ;;  %2854 = vadd.xlane.f32.xlu1 %v2853_v18  ;;  %v2662_v29 = vmul.f32 %v5177_v16, %v2527_v15  ;;  %v2526_v30 = vmax.f32 %v2032_v22, 0.0  ;;  %v2856_v42 = vsel %vm2753_vm2, %v2659_v49, 0.0 }
 0x1e0   :  { %v2041_v23 = vpop.f32.mrf.mxu1 }
 0x1e1   :  { %2845 = vadd.xlane.f32.xlu0 %v2844_v24  ;;  %v2529_v26 = vmax.f32 %v2047_v20, 0.0  ;;  %v2042_v31 = vadd.f32 %v5164_v3, %v2041_v23  ;;  %v2865_v36 = vsel %vm2753_vm2, %v2662_v29, 0.0  ;;  %v2661_v47 = vmul.f32 %v5177_v16, %v2526_v30 }
 0x1e2   :  { %v4212_v27 = vpop.f32.mrf.mxu1 }
 0x1e3   :  { %v2057_v52 = vadd.f32 %v4212_v27, %v5164_v3  ;;  %2860 = vadd.xlane.f32.xlu1 %v2859_v28  ;;  %v2664_v37 = vmul.f32 %v5177_v16, %v2529_v26  ;;  %v2528_v39 = vmax.f32 %v2042_v31, 0.0  ;;  %v2862_v54 = vsel %vm2753_vm2, %v2661_v47, 0.0 }
 0x1e4   :  { %v2051_v32 = vpop.f32.mrf.mxu1 }
 0x1e5   :  { %2851 = vadd.xlane.f32.xlu0 %v2850_v33  ;;  %v2531_v34 = vmax.f32 %v2057_v52, 0.0  ;;  %v2052_v40 = vadd.f32 %v5164_v3, %v2051_v32  ;;  %v2871_v45 = vsel %vm2753_vm2, %v2664_v37, 0.0  ;;  %v2663_v55 = vmul.f32 %v5177_v16, %v2528_v39 }
 0x1e6   :  { %v4215_v35 = vpop.f32.mrf.mxu1 }
 0x1e7   :  { %v2067_v38 = vadd.f32 %v4215_v35, %v5164_v3  ;;  %2866 = vadd.xlane.f32.xlu1 %v2865_v36  ;;  %v2666_v46 = vmul.f32 %v5177_v16, %v2531_v34  ;;  %v2530_v50 = vmax.f32 %v2052_v40, 0.0  ;;  %v2868_v0 = vsel %vm2753_vm2, %v2663_v55, 0.0 }
 0x1e8   :  { %v2061_v41 = vpop.f32.mrf.mxu1 }
 0x1e9   :  { %2857 = vadd.xlane.f32.xlu0 %v2856_v42  ;;  %v2533_v43 = vmax.f32 %v2067_v38, 0.0  ;;  %v2062_v51 = vadd.f32 %v5164_v3, %v2061_v41  ;;  %v2877_v58 = vsel %vm2753_vm2, %v2666_v46, 0.0  ;;  %v2665_v1 = vmul.f32 %v5177_v16, %v2530_v50 }
 0x1ea   :  { %v4218_v44 = vpop.f32.mrf.mxu1 }
 0x1eb   :  { %v2077_v48 = vadd.f32 %v4218_v44, %v5164_v3  ;;  %2872 = vadd.xlane.f32.xlu1 %v2871_v45  ;;  %v2668_v59 = vmul.f32 %v5177_v16, %v2533_v43  ;;  %v2532_v61 = vmax.f32 %v2062_v51, 0.0  ;;  %v2874_v11 = vsel %vm2753_vm2, %v2665_v1, 0.0 }
 0x1ec   :  { %v2071_v53 = vpop.f32.mrf.mxu1 }
 0x1ed   :  { %2863 = vadd.xlane.f32.xlu0 %v2862_v54  ;;  %v2535_v56 = vmax.f32 %v2077_v48, 0.0  ;;  %v2072_v62 = vadd.f32 %v5164_v3, %v2071_v53  ;;  %v2883_v5 = vsel %vm2753_vm2, %v2668_v59, 0.0  ;;  %v2667_v12 = vmul.f32 %v5177_v16, %v2532_v61 }
 0x1ee   :  { %v4221_v57 = vpop.f32.mrf.mxu1 }
 0x1ef   :  { %v2087_v60 = vadd.f32 %v4221_v57, %v5164_v3  ;;  %2878 = vadd.xlane.f32.xlu1 %v2877_v58  ;;  %v2670_v6 = vmul.f32 %v5177_v16, %v2535_v56  ;;  %v2534_v8 = vmax.f32 %v2072_v62, 0.0  ;;  %v2880_v22 = vsel %vm2753_vm2, %v2667_v12, 0.0 }
 0x1f0   :  { %v2081_v63 = vpop.f32.mrf.mxu1 }
 0x1f1   :  { %2869 = vadd.xlane.f32.xlu0 %v2868_v0  ;;  %v2537_v2 = vmax.f32 %v2087_v60, 0.0  ;;  %v2082_v9 = vadd.f32 %v5164_v3, %v2081_v63  ;;  %v2889_v15 = vsel %vm2753_vm2, %v2670_v6, 0.0  ;;  %v2669_v23 = vmul.f32 %v5177_v16, %v2534_v8 }
 0x1f2   :  { %v4224_v4 = vpop.f32.mrf.mxu1 }
 0x1f3   :  { %v2097_v7 = vadd.f32 %v4224_v4, %v5164_v3  ;;  %2884 = vadd.xlane.f32.xlu1 %v2883_v5  ;;  %v2672_v17 = vmul.f32 %v5177_v16, %v2537_v2  ;;  %v2536_v19 = vmax.f32 %v2082_v9, 0.0  ;;  %v2886_v31 = vsel %vm2753_vm2, %v2669_v23, 0.0 }
 0x1f4   :  { %v2091_v10 = vpop.f32.mrf.mxu1 }
 0x1f5   :  { %2875 = vadd.xlane.f32.xlu0 %v2874_v11  ;;  %v2539_v13 = vmax.f32 %v2097_v7, 0.0  ;;  %v2092_v20 = vadd.f32 %v5164_v3, %v2091_v10  ;;  %v2895_v26 = vsel %vm2753_vm2, %v2672_v17, 0.0  ;;  %v2671_v32 = vmul.f32 %v5177_v16, %v2536_v19 }
 0x1f6   :  { %v4227_v14 = vpop.f32.mrf.mxu1 }
 0x1f7   :  { %v2107_v18 = vadd.f32 %v4227_v14, %v5164_v3  ;;  %2890 = vadd.xlane.f32.xlu1 %v2889_v15  ;;  %v2674_v27 = vmul.f32 %v5177_v16, %v2539_v13  ;;  %v2538_v29 = vmax.f32 %v2092_v20, 0.0  ;;  %v2892_v40 = vsel %vm2753_vm2, %v2671_v32, 0.0 }
 0x1f8   :  { %v2101_v21 = vpop.f32.mrf.mxu1 }
 0x1f9   :  { %2881 = vadd.xlane.f32.xlu0 %v2880_v22  ;;  %v2541_v24 = vmax.f32 %v2107_v18, 0.0  ;;  %v2102_v52 = vadd.f32 %v5164_v3, %v2101_v21  ;;  %v2901_v34 = vsel %vm2753_vm2, %v2674_v27, 0.0  ;;  %v2673_v41 = vmul.f32 %v5177_v16, %v2538_v29 }
 0x1fa   :  { %v4230_v25 = vpop.f32.mrf.mxu1 }
 0x1fb   :  { %v2117_v28 = vadd.f32 %v4230_v25, %v5164_v3  ;;  %2896 = vadd.xlane.f32.xlu1 %v2895_v26  ;;  %v2676_v35 = vmul.f32 %v5177_v16, %v2541_v24  ;;  %v2540_v37 = vmax.f32 %v2102_v52, 0.0  ;;  %v2898_v51 = vsel %vm2753_vm2, %v2673_v41, 0.0 }
 0x1fc   :  { %v2111_v30 = vpop.f32.mrf.mxu1 }
 0x1fd   :  { %2887 = vadd.xlane.f32.xlu0 %v2886_v31  ;;  %v2543_v33 = vmax.f32 %v2117_v28, 0.0  ;;  %v2112_v38 = vadd.f32 %v5164_v3, %v2111_v30  ;;  %v2907_v43 = vsel %vm2753_vm2, %v2676_v35, 0.0  ;;  %v2675_v53 = vmul.f32 %v5177_v16, %v2540_v37 }
 0x1fe   :  { %v4233_v49 = vpop.f32.mrf.mxu1 }
 0x1ff   :  { %v2127_v36 = vadd.f32 %v4233_v49, %v5164_v3  ;;  %2902 = vadd.xlane.f32.xlu1 %v2901_v34  ;;  %v2678_v44 = vmul.f32 %v5177_v16, %v2543_v33  ;;  %v2542_v46 = vmax.f32 %v2112_v38, 0.0  ;;  %v2904_v62 = vsel %vm2753_vm2, %v2675_v53, 0.0 }
 0x200   :  { %v2121_v39 = vpop.f32.mrf.mxu1 }
 0x201   :  { %2893 = vadd.xlane.f32.xlu0 %v2892_v40  ;;  %v2545_v42 = vmax.f32 %v2127_v36, 0.0  ;;  %v2122_v48 = vadd.f32 %v5164_v3, %v2121_v39  ;;  %v2913_v56 = vsel %vm2753_vm2, %v2678_v44, 0.0  ;;  %v2677_v63 = vmul.f32 %v5177_v16, %v2542_v46 }
 0x202   :  { %v4236_v47 = vpop.f32.mrf.mxu1 }
 0x203   :  { %v2137_v45 = vadd.f32 %v4236_v47, %v5164_v3  ;;  %2908 = vadd.xlane.f32.xlu1 %v2907_v43  ;;  %v2680_v57 = vmul.f32 %v5177_v16, %v2545_v42  ;;  %v2544_v59 = vmax.f32 %v2122_v48, 0.0  ;;  %v2910_v9 = vsel %vm2753_vm2, %v2677_v63, 0.0 }
 0x204   :  { %v2131_v50 = vpop.f32.mrf.mxu1 }
 0x205   :  { %2899 = vadd.xlane.f32.xlu0 %v2898_v51  ;;  %v2547_v54 = vmax.f32 %v2137_v45, 0.0  ;;  %v2132_v60 = vadd.f32 %v5164_v3, %v2131_v50  ;;  %v2919_v2 = vsel %vm2753_vm2, %v2680_v57, 0.0  ;;  %v2679_v10 = vmul.f32 %v5177_v16, %v2544_v59 }
 0x206   :  { %v4239_v55 = vpop.f32.mrf.mxu1 }
 0x207   :  { %v2147_v58 = vadd.f32 %v4239_v55, %v5164_v3  ;;  %2914 = vadd.xlane.f32.xlu1 %v2913_v56  ;;  %v2682_v4 = vmul.f32 %v5177_v16, %v2547_v54  ;;  %v2546_v6 = vmax.f32 %v2132_v60, 0.0  ;;  %v2916_v20 = vsel %vm2753_vm2, %v2679_v10, 0.0  ;;  %v5438_v56 = vld [vmem:[%s6279_s4] ss:$0 sm:$0xff] }
 0x208   :  { %v2141_v61 = vpop.f32.mrf.mxu1 }
 0x209   :  { %2905 = vadd.xlane.f32.xlu0 %v2904_v62  ;;  %v2549_v0 = vmax.f32 %v2147_v58, 0.0  ;;  %v2142_v7 = vadd.f32 %v5164_v3, %v2141_v61  ;;  %v2925_v13 = vsel %vm2753_vm2, %v2682_v4, 0.0  ;;  %v2681_v21 = vmul.f32 %v5177_v16, %v2546_v6 }
 0x20a   :  { %v4242_v1 = vpop.f32.mrf.mxu1 }
 0x20b   :  { %v2157_v5 = vadd.f32 %v4242_v1, %v5164_v3  ;;  %2920 = vadd.xlane.f32.xlu1 %v2919_v2  ;;  %v2684_v14 = vmul.f32 %v5177_v16, %v2549_v0  ;;  %v2548_v17 = vmax.f32 %v2142_v7, 0.0  ;;  %v2922_v52 = vsel %vm2753_vm2, %v2681_v21, 0.0  ;;  %v5448_v1 = vld [vmem:[%s6280_s5] ss:$0 sm:$0xff] }
 0x20c   :  { %v2151_v8 = vpop.f32.mrf.mxu1 }
 0x20d   :  { %2911 = vadd.xlane.f32.xlu0 %v2910_v9  ;;  %v2551_v11 = vmax.f32 %v2157_v5, 0.0  ;;  %v2152_v18 = vadd.f32 %v5164_v3, %v2151_v8  ;;  %v2931_v24 = vsel %vm2753_vm2, %v2684_v14, 0.0  ;;  %v2683_v30 = vmul.f32 %v5177_v16, %v2548_v17 }
 0x20e   :  { %v4245_v12 = vpop.f32.mrf.mxu1 }
 0x20f   :  { %v2167_v15 = vadd.f32 %v4245_v12, %v5164_v3  ;;  %2926 = vadd.xlane.f32.xlu1 %v2925_v13  ;;  %v2686_v25 = vmul.f32 %v5177_v16, %v2551_v11  ;;  %v2550_v27 = vmax.f32 %v2152_v18, 0.0  ;;  %v2928_v38 = vsel %vm2753_vm2, %v2683_v30, 0.0  ;;  %v5456_v12 = vld [vmem:[#allocation2] ss:$0 sm:$0xff] }
 0x210   :  { %v2161_v19 = vpop.f32.mrf.mxu1 }
 0x211   :  { %2917 = vadd.xlane.f32.xlu0 %v2916_v20  ;;  %v2553_v22 = vmax.f32 %v2167_v15, 0.0  ;;  %v2162_v28 = vadd.f32 %v5164_v3, %v2161_v19  ;;  %v2937_v33 = vsel %vm2753_vm2, %v2686_v25, 0.0  ;;  %v2685_v39 = vmul.f32 %v5177_v16, %v2550_v27 }
 0x212   :  { %v4248_v23 = vpop.f32.mrf.mxu1 }
 0x213   :  { %v2177_v26 = vadd.f32 %v4248_v23, %v5164_v3  ;;  %2932 = vadd.xlane.f32.xlu1 %v2931_v24  ;;  %v2688_v49 = vmul.f32 %v5177_v16, %v2553_v22  ;;  %v2552_v35 = vmax.f32 %v2162_v28, 0.0  ;;  %v2934_v48 = vsel %vm2753_vm2, %v2685_v39, 0.0 }
 0x214   :  { %v2171_v29 = vpop.f32.mrf.mxu1 }
 0x215   :  { %2923 = vadd.xlane.f32.xlu0 %v2922_v52  ;;  %v2555_v31 = vmax.f32 %v2177_v26, 0.0  ;;  %v2172_v36 = vadd.f32 %v5164_v3, %v2171_v29  ;;  %v2943_v42 = vsel %vm2753_vm2, %v2688_v49, 0.0  ;;  %v2687_v50 = vmul.f32 %v5177_v16, %v2552_v35 }
 0x216   :  { %v4251_v32 = vpop.f32.mrf.mxu1 }
 0x217   :  { %v2187_v34 = vadd.f32 %v4251_v32, %v5164_v3  ;;  %2938 = vadd.xlane.f32.xlu1 %v2937_v33  ;;  %v2690_v47 = vmul.f32 %v5177_v16, %v2555_v31  ;;  %v2554_v44 = vmax.f32 %v2172_v36, 0.0  ;;  %v2940_v60 = vsel %vm2753_vm2, %v2687_v50, 0.0 }
 0x218   :  { %v2181_v37 = vpop.f32.mrf.mxu1 }
 0x219   :  { %2929 = vadd.xlane.f32.xlu0 %v2928_v38  ;;  %v2557_v40 = vmax.f32 %v2187_v34, 0.0  ;;  %v2182_v45 = vadd.f32 %v5164_v3, %v2181_v37  ;;  %v2949_v54 = vsel %vm2753_vm2, %v2690_v47, 0.0  ;;  %v2689_v61 = vmul.f32 %v5177_v16, %v2554_v44 }
 0x21a   :  { %v4254_v41 = vpop.f32.mrf.mxu1 }
 0x21b   :  { %v2197_v43 = vadd.f32 %v4254_v41, %v5164_v3  ;;  %2944 = vadd.xlane.f32.xlu1 %v2943_v42  ;;  %v2692_v55 = vmul.f32 %v5177_v16, %v2557_v40  ;;  %v2556_v3 = vmax.f32 %v2182_v45, 0.0  ;;  %v2946_v16 = vsel %vm2753_vm2, %v2689_v61, 0.0 }
 0x21c   :  { %v2191_v46 = vpop.f32.mrf.mxu1 }
 0x21d   :  { %2935 = vadd.xlane.f32.xlu0 %v2934_v48  ;;  %v2559_v51 = vmax.f32 %v2197_v43, 0.0  ;;  %v2192_v58 = vadd.f32 %v5438_v56, %v2191_v46  ;;  %v2955_v0 = vsel %vm2753_vm2, %v2692_v55, 0.0  ;;  %v2691_v8 = vmul.f32 %v5448_v1, %v2556_v3 }
 0x21e   :  { %v4257_v53 = vpop.f32.mrf.mxu1 }
 0x21f   :  { %v2207_v57 = vadd.f32 %v5438_v56, %v4257_v53  ;;  %2950 = vadd.xlane.f32.xlu1 %v2949_v54  ;;  %v2694_v2 = vmul.f32 %v5448_v1, %v2559_v51  ;;  %v2558_v5 = vmax.f32 %v2192_v58, 0.0  ;;  %v2952_v20 = vsel %vm2753_vm2, %v2691_v8, 0.0 }
 0x220   :  { %v2201_v59 = vpop.f32.mrf.mxu1 }
 0x221   :  { %2941 = vadd.xlane.f32.xlu0 %v2940_v60  ;;  %v2561_v62 = vmax.f32 %v2207_v57, 0.0  ;;  %v2202_v6 = vadd.f32 %v5438_v56, %v2201_v59  ;;  %v2961_v11 = vsel %vm2753_vm2, %v2694_v2, 0.0  ;;  %v2693_v21 = vmul.f32 %v5448_v1, %v2558_v5 }
 0x222   :  { %v4260_v63 = vpop.f32.mrf.mxu1 }
 0x223   :  { %v2217_v4 = vadd.f32 %v5438_v56, %v4260_v63  ;;  %2956 = vadd.xlane.f32.xlu1 %v2955_v0  ;;  %v2696_v13 = vmul.f32 %v5448_v1, %v2561_v62  ;;  %v2560_v15 = vmax.f32 %v2202_v6, 0.0  ;;  %v2958_v31 = vsel %vm2753_vm2, %v2693_v21, 0.0 }
 0x224   :  { %v2211_v7 = vpop.f32.mrf.mxu1 }
 0x225   :  { %2947 = vadd.xlane.f32.xlu0 %v2946_v16  ;;  %v2563_v9 = vmax.f32 %v2217_v4, 0.0  ;;  %v2212_v17 = vadd.f32 %v5438_v56, %v2211_v7  ;;  %v2967_v25 = vsel %vm2753_vm2, %v2696_v13, 0.0  ;;  %v2695_v32 = vmul.f32 %v5448_v1, %v2560_v15 }
 0x226   :  { %v4263_v10 = vpop.f32.mrf.mxu1 }
 0x227   :  { %v2227_v14 = vadd.f32 %v5438_v56, %v4263_v10  ;;  %2962 = vadd.xlane.f32.xlu1 %v2961_v11  ;;  %v2698_v26 = vmul.f32 %v5448_v1, %v2563_v9  ;;  %v2562_v28 = vmax.f32 %v2212_v17, 0.0  ;;  %v2964_v43 = vsel %vm2753_vm2, %v2695_v32, 0.0 }
 0x228   :  { %v2765_v18 = vpop.xlane.xlu1 %2764  ;;  %v2221_v19 = vpop.f32.mrf.mxu1 }
 0x229   :  { %v3148_v22 = vadd.f32 %v5456_v12, %v2765_v18  ;;  %2953 = vadd.xlane.f32.xlu0 %v2952_v20  ;;  %v2565_v23 = vmax.f32 %v2227_v14, 0.0  ;;  %v2222_v29 = vadd.f32 %v5438_v56, %v2221_v19  ;;  %v2973_v36 = vsel %vm2753_vm2, %v2698_v26, 0.0 }
 0x22a   :  { %v4266_v24 = vpop.f32.mrf.mxu1  ;;  %v2697_v44 = vmul.f32 %v5448_v1, %v2562_v28 }
 0x22b   :  { %3277 = vst.msk [vmem:[%s6282_s7 + $0x18] sm:$0xff] %vm3273_vm3, %v3148_v22  ;;  %v2237_v27 = vadd.f32 %v5438_v56, %v4266_v24  ;;  %2968 = vadd.xlane.f32.xlu1 %v2967_v25  ;;  %v2700_v37 = vmul.f32 %v5448_v1, %v2565_v23  ;;  %v2564_v40 = vmax.f32 %v2222_v29, 0.0 }
 0x22c   :  { %v2762_v52 = vpop.xlane.xlu1 %2761  ;;  %v2231_v30 = vpop.f32.mrf.mxu1  ;;  %v2970_v60 = vsel %vm2753_vm2, %v2697_v44, 0.0 }
 0x22d   :  { %v3147_v33 = vadd.f32 %v5456_v12, %v2762_v52  ;;  %2959 = vadd.xlane.f32.xlu0 %v2958_v31  ;;  %v2567_v49 = vmax.f32 %v2237_v27, 0.0  ;;  %v2232_v41 = vadd.f32 %v5438_v56, %v2231_v30  ;;  %v2979_v51 = vsel %vm2753_vm2, %v2700_v37, 0.0 }
 0x22e   :  { %v2768_v34 = vpop.xlane.xlu0 %2767  ;;  %v4269_v35 = vpop.f32.mrf.mxu1  ;;  %v2699_v61 = vmul.f32 %v5448_v1, %v2564_v40 }
 0x22f   :  { %3276 = vst.msk [vmem:[%s6282_s7 + $0x10] sm:$0xff] %vm3273_vm3, %v3147_v33  ;;  %v3149_v38 = vadd.f32 %v5456_v12, %v2768_v34  ;;  %v2247_v39 = vadd.f32 %v5438_v56, %v4269_v35  ;;  %2974 = vadd.xlane.f32.xlu1 %v2973_v36  ;;  %v2702_v53 = vmul.f32 %v5448_v1, %v2567_v49  ;;  %v2566_v57 = vmax.f32 %v2232_v41, 0.0 }
 0x230   :  { %v2771_v42 = vpop.xlane.xlu1 %2770  ;;  %v2241_v47 = vpop.f32.mrf.mxu1  ;;  %v2976_v11 = vsel %vm2753_vm2, %v2699_v61, 0.0 }
 0x231   :  { %3278 = vst.msk [vmem:[%s6282_s7 + $0x20] sm:$0xff] %vm3273_vm3, %v3149_v38  ;;  %v3150_v45 = vadd.f32 %v5456_v12, %v2771_v42  ;;  %2965 = vadd.xlane.f32.xlu0 %v2964_v43  ;;  %v2569_v46 = vmax.f32 %v2247_v39, 0.0  ;;  %v2242_v3 = vadd.f32 %v5438_v56, %v2241_v47  ;;  %v2985_v4 = vsel %vm2753_vm2, %v2702_v53, 0.0 }
 0x232   :  { %v2774_v48 = vpop.xlane.xlu0 %2773  ;;  %v4272_v50 = vpop.f32.mrf.mxu1  ;;  %v2701_v13 = vmul.f32 %v5448_v1, %v2566_v57 }
 0x233   :  { %3279 = vst.msk [vmem:[%s6282_s7 + $0x28] sm:$0xff] %vm3273_vm3, %v3150_v45  ;;  %v3151_v54 = vadd.f32 %v5456_v12, %v2774_v48  ;;  %v2257_v55 = vadd.f32 %v5438_v56, %v4272_v50  ;;  %2980 = vadd.xlane.f32.xlu1 %v2979_v51  ;;  %v2704_v5 = vmul.f32 %v5448_v1, %v2569_v46  ;;  %v2568_v16 = vmax.f32 %v2242_v3, 0.0 }
 0x234   :  { %v2777_v58 = vpop.xlane.xlu1 %2776  ;;  %v2251_v59 = vpop.f32.mrf.mxu1  ;;  %v2982_v27 = vsel %vm2753_vm2, %v2701_v13, 0.0 }
 0x235   :  { %3280 = vst.msk [vmem:[%s6282_s7 + $0x30] sm:$0xff] %vm3273_vm3, %v3151_v54  ;;  %v3152_v62 = vadd.f32 %v5456_v12, %v2777_v58  ;;  %2971 = vadd.xlane.f32.xlu0 %v2970_v60  ;;  %v2571_v63 = vmax.f32 %v2257_v55, 0.0  ;;  %v2252_v8 = vadd.f32 %v5438_v56, %v2251_v59  ;;  %v2991_v19 = vsel %vm2753_vm2, %v2704_v5, 0.0 }
 0x236   :  { %v2780_v0 = vpop.xlane.xlu0 %2779  ;;  %v4275_v2 = vpop.f32.mrf.mxu1  ;;  %v2703_v28 = vmul.f32 %v5448_v1, %v2568_v16 }
 0x237   :  { %3281 = vst.msk [vmem:[%s6282_s7 + $0x38] sm:$0xff] %vm3273_vm3, %v3152_v62  ;;  %v3153_v6 = vadd.f32 %v5456_v12, %v2780_v0  ;;  %v2267_v7 = vadd.f32 %v5438_v56, %v4275_v2  ;;  %2986 = vadd.xlane.f32.xlu1 %v2985_v4  ;;  %v2706_v20 = vmul.f32 %v5448_v1, %v2571_v63  ;;  %v2570_v23 = vmax.f32 %v2252_v8, 0.0 }
 0x238   :  { %v2783_v9 = vpop.xlane.xlu1 %2782  ;;  %v2261_v10 = vpop.f32.mrf.mxu1  ;;  %v2988_v39 = vsel %vm2753_vm2, %v2703_v28, 0.0 }
 0x239   :  { %3282 = vst.msk [vmem:[%s6282_s7 + $0x40] sm:$0xff] %vm3273_vm3, %v3153_v6  ;;  %v3154_v14 = vadd.f32 %v5456_v12, %v2783_v9  ;;  %2977 = vadd.xlane.f32.xlu0 %v2976_v11  ;;  %v2573_v15 = vmax.f32 %v2267_v7, 0.0  ;;  %v2262_v24 = vadd.f32 %v5438_v56, %v2261_v10  ;;  %v2997_v32 = vsel %vm2753_vm2, %v2706_v20, 0.0 }
 0x23a   :  { %v2786_v17 = vpop.xlane.xlu0 %2785  ;;  %v4278_v18 = vpop.f32.mrf.mxu1  ;;  %v2705_v40 = vmul.f32 %v5448_v1, %v2570_v23 }
 0x23b   :  { %3283 = vst.msk [vmem:[%s6282_s7 + $0x48] sm:$0xff] %vm3273_vm3, %v3154_v14  ;;  %v3155_v21 = vadd.f32 %v5456_v12, %v2786_v17  ;;  %v2277_v22 = vadd.f32 %v5438_v56, %v4278_v18  ;;  %2992 = vadd.xlane.f32.xlu1 %v2991_v19  ;;  %v2708_v33 = vmul.f32 %v5448_v1, %v2573_v15  ;;  %v2572_v35 = vmax.f32 %v2262_v24, 0.0 }
 0x23c   :  { %v2789_v25 = vpop.xlane.xlu1 %2788  ;;  %v2271_v26 = vpop.f32.mrf.mxu1  ;;  %v2994_v55 = vsel %vm2753_vm2, %v2705_v40, 0.0 }
 0x23d   :  { %3284 = vst.msk [vmem:[%s6282_s7 + $0x50] sm:$0xff] %vm3273_vm3, %v3155_v21  ;;  %v3156_v29 = vadd.f32 %v5456_v12, %v2789_v25  ;;  %2983 = vadd.xlane.f32.xlu0 %v2982_v27  ;;  %v2575_v52 = vmax.f32 %v2277_v22, 0.0  ;;  %v2272_v36 = vadd.f32 %v5438_v56, %v2271_v26  ;;  %v3003_v44 = vsel %vm2753_vm2, %v2708_v33, 0.0 }
 0x23e   :  { %v2792_v30 = vpop.xlane.xlu0 %2791  ;;  %v4281_v31 = vpop.f32.mrf.mxu1  ;;  %v2707_v57 = vmul.f32 %v5448_v1, %v2572_v35 }
 0x23f   :  { %3285 = vst.msk [vmem:[%s6282_s7 + $0x58] sm:$0xff] %vm3273_vm3, %v3156_v29  ;;  %v3157_v49 = vadd.f32 %v5456_v12, %v2792_v30  ;;  %v2287_v34 = vadd.f32 %v5438_v56, %v4281_v31  ;;  %2998 = vadd.xlane.f32.xlu1 %v2997_v32  ;;  %v2710_v45 = vmul.f32 %v5448_v1, %v2575_v52  ;;  %v2574_v50 = vmax.f32 %v2272_v36, 0.0 }
 0x240   :  { %v2795_v37 = vpop.xlane.xlu1 %2794  ;;  %v2281_v38 = vpop.f32.mrf.mxu1  ;;  %v3000_v7 = vsel %vm2753_vm2, %v2707_v57, 0.0 }
 0x241   :  { %3286 = vst.msk [vmem:[%s6282_s7 + $0x60] sm:$0xff] %vm3273_vm3, %v3157_v49  ;;  %v3158_v41 = vadd.f32 %v5456_v12, %v2795_v37  ;;  %2989 = vadd.xlane.f32.xlu0 %v2988_v39  ;;  %v2577_v42 = vmax.f32 %v2287_v34, 0.0  ;;  %v2282_v51 = vadd.f32 %v5438_v56, %v2281_v38  ;;  %v3009_v61 = vsel %vm2753_vm2, %v2710_v45, 0.0 }
 0x242   :  { %v2798_v47 = vpop.xlane.xlu0 %2797  ;;  %v4284_v43 = vpop.f32.mrf.mxu1  ;;  %v2709_v16 = vmul.f32 %v5448_v1, %v2574_v50 }
 0x243   :  { %3287 = vst.msk [vmem:[%s6282_s7 + $0x68] sm:$0xff] %vm3273_vm3, %v3158_v41  ;;  %v3159_v46 = vadd.f32 %v5456_v12, %v2798_v47  ;;  %v2297_v48 = vadd.f32 %v5438_v56, %v4284_v43  ;;  %3004 = vadd.xlane.f32.xlu1 %v3003_v44  ;;  %v2712_v62 = vmul.f32 %v5448_v1, %v2577_v42  ;;  %v2576_v2 = vmax.f32 %v2282_v51, 0.0 }
 0x244   :  { %v2801_v53 = vpop.xlane.xlu1 %2800  ;;  %v2291_v54 = vpop.f32.mrf.mxu1  ;;  %v3006_v22 = vsel %vm2753_vm2, %v2709_v16, 0.0 }
 0x245   :  { %3288 = vst.msk [vmem:[%s6282_s7 + $0x70] sm:$0xff] %vm3273_vm3, %v3159_v46  ;;  %v3160_v3 = vadd.f32 %v5456_v12, %v2801_v53  ;;  %2995 = vadd.xlane.f32.xlu0 %v2994_v55  ;;  %v2579_v58 = vmax.f32 %v2297_v48, 0.0  ;;  %v2292_v4 = vadd.f32 %v5438_v56, %v2291_v54  ;;  %v3015_v13 = vsel %vm2753_vm2, %v2712_v62, 0.0 }
 0x246   :  { %v2804_v59 = vpop.xlane.xlu0 %2803  ;;  %v4287_v60 = vpop.f32.mrf.mxu1  ;;  %v2711_v23 = vmul.f32 %v5448_v1, %v2576_v2 }
 0x247   :  { %3289 = vst.msk [vmem:[%s6282_s7 + $0x78] sm:$0xff] %vm3273_vm3, %v3160_v3  ;;  %v3161_v63 = vadd.f32 %v5456_v12, %v2804_v59  ;;  %v2307_v0 = vadd.f32 %v5438_v56, %v4287_v60  ;;  %3010 = vadd.xlane.f32.xlu1 %v3009_v61  ;;  %v2714_v14 = vmul.f32 %v5448_v1, %v2579_v58  ;;  %v2578_v18 = vmax.f32 %v2292_v4, 0.0 }
 0x248   :  { %v2807_v5 = vpop.xlane.xlu1 %2806  ;;  %v2301_v6 = vpop.f32.mrf.mxu1  ;;  %v3012_v34 = vsel %vm2753_vm2, %v2711_v23, 0.0 }
 0x249   :  { %3290 = vst.msk [vmem:[%s6282_s7 + $0x80] sm:$0xff] %vm3273_vm3, %v3161_v63  ;;  %v3162_v8 = vadd.f32 %v5456_v12, %v2807_v5  ;;  %3001 = vadd.xlane.f32.xlu0 %v3000_v7  ;;  %v2581_v9 = vmax.f32 %v2307_v0, 0.0  ;;  %v2302_v19 = vadd.f32 %v5438_v56, %v2301_v6  ;;  %v3021_v28 = vsel %vm2753_vm2, %v2714_v14, 0.0 }
 0x24a   :  { %v2810_v10 = vpop.xlane.xlu0 %2809  ;;  %v4290_v11 = vpop.f32.mrf.mxu1  ;;  %v2713_v35 = vmul.f32 %v5448_v1, %v2578_v18 }
 0x24b   :  { %3291 = vst.msk [vmem:[%s6282_s7 + $0x88] sm:$0xff] %vm3273_vm3, %v3162_v8  ;;  %v3163_v15 = vadd.f32 %v5456_v12, %v2810_v10  ;;  %v2317_v17 = vadd.f32 %v5438_v56, %v4290_v11  ;;  %3016 = vadd.xlane.f32.xlu1 %v3015_v13  ;;  %v2716_v29 = vmul.f32 %v5448_v1, %v2581_v9  ;;  %v2580_v31 = vmax.f32 %v2302_v19, 0.0 }
 0x24c   :  { %v2813_v20 = vpop.xlane.xlu1 %2812  ;;  %v2311_v21 = vpop.f32.mrf.mxu1  ;;  %v3018_v48 = vsel %vm2753_vm2, %v2713_v35, 0.0 }
 0x24d   :  { %3292 = vst.msk [vmem:[%s6282_s7 + $0x90] sm:$0xff] %vm3273_vm3, %v3163_v15  ;;  %v3164_v24 = vadd.f32 %v5456_v12, %v2813_v20  ;;  %3007 = vadd.xlane.f32.xlu0 %v3006_v22  ;;  %v2583_v25 = vmax.f32 %v2317_v17, 0.0  ;;  %v2312_v32 = vadd.f32 %v5438_v56, %v2311_v21  ;;  %v3027_v40 = vsel %vm2753_vm2, %v2716_v29, 0.0 }
 0x24e   :  { %v2816_v26 = vpop.xlane.xlu0 %2815  ;;  %v4293_v27 = vpop.f32.mrf.mxu1  ;;  %v2715_v50 = vmul.f32 %v5448_v1, %v2580_v31 }
 0x24f   :  { %3293 = vst.msk [vmem:[%s6282_s7 + $0x98] sm:$0xff] %vm3273_vm3, %v3164_v24  ;;  %v3165_v52 = vadd.f32 %v5456_v12, %v2816_v26  ;;  %v2327_v30 = vadd.f32 %v5438_v56, %v4293_v27  ;;  %3022 = vadd.xlane.f32.xlu1 %v3021_v28  ;;  %v2718_v41 = vmul.f32 %v5448_v1, %v2583_v25  ;;  %v2582_v43 = vmax.f32 %v2312_v32, 0.0 }
 0x250   :  { %v2819_v33 = vpop.xlane.xlu1 %2818  ;;  %v2321_v49 = vpop.f32.mrf.mxu1  ;;  %v3024_v0 = vsel %vm2753_vm2, %v2715_v50, 0.0 }
 0x251   :  { %3294 = vst.msk [vmem:[%s6282_s7 + $0xa0] sm:$0xff] %vm3273_vm3, %v3165_v52  ;;  %v3166_v36 = vadd.f32 %v5456_v12, %v2819_v33  ;;  %3013 = vadd.xlane.f32.xlu0 %v3012_v34  ;;  %v2585_v37 = vmax.f32 %v2327_v30, 0.0  ;;  %v2322_v44 = vadd.f32 %v5438_v56, %v2321_v49  ;;  %v3033_v57 = vsel %vm2753_vm2, %v2718_v41, 0.0 }
 0x252   :  { %v2822_v38 = vpop.xlane.xlu0 %2821  ;;  %v4296_v39 = vpop.f32.mrf.mxu1  ;;  %v2717_v2 = vmul.f32 %v5448_v1, %v2582_v43 }
 0x253   :  { %3295 = vst.msk [vmem:[%s6282_s7 + $0xa8] sm:$0xff] %vm3273_vm3, %v3166_v36  ;;  %v3167_v42 = vadd.f32 %v5456_v12, %v2822_v38  ;;  %v2337_v47 = vadd.f32 %v5438_v56, %v4296_v39  ;;  %3028 = vadd.xlane.f32.xlu1 %v3027_v40  ;;  %v2720_v3 = vmul.f32 %v5448_v1, %v2585_v37  ;;  %v2584_v60 = vmax.f32 %v2322_v44, 0.0 }
 0x254   :  { %v2825_v45 = vpop.xlane.xlu1 %2824  ;;  %v2331_v46 = vpop.f32.mrf.mxu1  ;;  %v3030_v17 = vsel %vm2753_vm2, %v2717_v2, 0.0 }
 0x255   :  { %3296 = vst.msk [vmem:[%s6282_s7 + $0xb0] sm:$0xff] %vm3273_vm3, %v3167_v42  ;;  %v3168_v51 = vadd.f32 %v5456_v12, %v2825_v45  ;;  %3019 = vadd.xlane.f32.xlu0 %v3018_v48  ;;  %v2587_v53 = vmax.f32 %v2337_v47, 0.0  ;;  %v2332_v61 = vadd.f32 %v5438_v56, %v2331_v46  ;;  %v3039_v16 = vsel %vm2753_vm2, %v2720_v3, 0.0 }
 0x256   :  { %v2828_v54 = vpop.xlane.xlu0 %2827  ;;  %v4299_v55 = vpop.f32.mrf.mxu1  ;;  %v2719_v18 = vmul.f32 %v5448_v1, %v2584_v60 }
 0x257   :  { %3297 = vst.msk [vmem:[%s6282_s7 + $0xb8] sm:$0xff] %vm3273_vm3, %v3168_v51  ;;  %v3169_v58 = vadd.f32 %v5456_v12, %v2828_v54  ;;  %v2347_v59 = vadd.f32 %v5438_v56, %v4299_v55  ;;  %3034 = vadd.xlane.f32.xlu1 %v3033_v57  ;;  %v2722_v8 = vmul.f32 %v5448_v1, %v2587_v53  ;;  %v2586_v11 = vmax.f32 %v2332_v61, 0.0 }
 0x258   :  { %v2831_v62 = vpop.xlane.xlu1 %2830  ;;  %v2341_v63 = vpop.f32.mrf.mxu1  ;;  %v3036_v30 = vsel %vm2753_vm2, %v2719_v18, 0.0 }
 0x259   :  { %3298 = vst.msk [vmem:[%s6282_s7 + $0xc0] sm:$0xff] %vm3273_vm3, %v3169_v58  ;;  %v3170_v4 = vadd.f32 %v5456_v12, %v2831_v62  ;;  %3025 = vadd.xlane.f32.xlu0 %v3024_v0  ;;  %v2589_v5 = vmax.f32 %v2347_v59, 0.0  ;;  %v2342_v13 = vadd.f32 %v5438_v56, %v2341_v63  ;;  %v3045_v24 = vsel %vm2753_vm2, %v2722_v8, 0.0 }
 0x25a   :  { %v2834_v6 = vpop.xlane.xlu0 %2833  ;;  %v4302_v7 = vpop.f32.mrf.mxu1  ;;  %v2721_v31 = vmul.f32 %v5448_v1, %v2586_v11 }
 0x25b   :  { %3299 = vst.msk [vmem:[%s6282_s7 + $0xc8] sm:$0xff] %vm3273_vm3, %v3170_v4  ;;  %v3171_v9 = vadd.f32 %v5456_v12, %v2834_v6  ;;  %v2357_v10 = vadd.f32 %v5438_v56, %v4302_v7  ;;  %3040 = vadd.xlane.f32.xlu1 %v3039_v16  ;;  %v2724_v20 = vmul.f32 %v5448_v1, %v2589_v5  ;;  %v2588_v27 = vmax.f32 %v2342_v13, 0.0 }
 0x25c   :  { %v2837_v14 = vpop.xlane.xlu1 %2836  ;;  %v2351_v15 = vpop.f32.mrf.mxu1  ;;  %v3042_v43 = vsel %vm2753_vm2, %v2721_v31, 0.0 }
 0x25d   :  { %3300 = vst.msk [vmem:[%s6282_s7 + $0xd0] sm:$0xff] %vm3273_vm3, %v3171_v9  ;;  %v3172_v19 = vadd.f32 %v5456_v12, %v2837_v14  ;;  %3031 = vadd.xlane.f32.xlu0 %v3030_v17  ;;  %v2591_v21 = vmax.f32 %v2357_v10, 0.0  ;;  %v2352_v28 = vadd.f32 %v5438_v56, %v2351_v15  ;;  %v3051_v36 = vsel %vm2753_vm2, %v2724_v20, 0.0 }
 0x25e   :  { %v2759_v22 = vpop.xlane.xlu0 %2758  ;;  %v4305_v23 = vpop.f32.mrf.mxu1  ;;  %v2723_v39 = vmul.f32 %v5448_v1, %v2588_v27 }
 0x25f   :  { %3301 = vst.msk [vmem:[%s6282_s7 + $0xd8] sm:$0xff] %vm3273_vm3, %v3172_v19  ;;  %v3146_v25 = vadd.f32 %v5456_v12, %v2759_v22  ;;  %v2367_v26 = vadd.f32 %v5438_v56, %v4305_v23  ;;  %3046 = vadd.xlane.f32.xlu1 %v3045_v24  ;;  %v2726_v33 = vmul.f32 %v5448_v1, %v2591_v21  ;;  %v2590_v40 = vmax.f32 %v2352_v28, 0.0 }
 0x260   :  { %v2843_v29 = vpop.xlane.xlu1 %2842  ;;  %v2361_v52 = vpop.f32.mrf.mxu1  ;;  %v3048_v60 = vsel %vm2753_vm2, %v2723_v39, 0.0 }
 0x261   :  { %3275 = vst.msk [vmem:[%s6282_s7 + $0x8] sm:$0xff] %vm3273_vm3, %v3146_v25  ;;  %v3174_v32 = vadd.f32 %v5456_v12, %v2843_v29  ;;  %3037 = vadd.xlane.f32.xlu0 %v3036_v30  ;;  %v2593_v49 = vmax.f32 %v2367_v26, 0.0  ;;  %v2362_v41 = vadd.f32 %v5438_v56, %v2361_v52  ;;  %v3057_v51 = vsel %vm2753_vm2, %v2726_v33, 0.0 }
 0x262   :  { %v2756_v34 = vpop.xlane.xlu0 %2755  ;;  %v4308_v35 = vpop.f32.mrf.mxu1  ;;  %v2725_v55 = vmul.f32 %v5448_v1, %v2590_v40 }
 0x263   :  { %3303 = vst.msk [vmem:[%s6282_s7 + $0xe8] sm:$0xff] %vm3273_vm3, %v3174_v32  ;;  %v3145_v37 = vadd.f32 %v5456_v12, %v2756_v34  ;;  %v2377_v38 = vadd.f32 %v5438_v56, %v4308_v35  ;;  %3052 = vadd.xlane.f32.xlu1 %v3051_v36  ;;  %v2728_v45 = vmul.f32 %v5448_v1, %v2593_v49  ;;  %v2592_v57 = vmax.f32 %v2362_v41, 0.0 }
 0x264   :  { %v2849_v42 = vpop.xlane.xlu1 %2848  ;;  %v2371_v47 = vpop.f32.mrf.mxu1  ;;  %v3054_v11 = vsel %vm2753_vm2, %v2725_v55, 0.0 }
 0x265   :  { %3274 = vst.msk [vmem:[%s6282_s7] sm:$0xff] %vm3273_vm3, %v3145_v37  ;;  %v3176_v44 = vadd.f32 %v5456_v12, %v2849_v42  ;;  %3043 = vadd.xlane.f32.xlu0 %v3042_v43  ;;  %v2595_v46 = vmax.f32 %v2377_v38, 0.0  ;;  %v2372_v3 = vadd.f32 %v5438_v56, %v2371_v47  ;;  %v3063_v4 = vsel %vm2753_vm2, %v2728_v45, 0.0 }
 0x266   :  { %v2840_v48 = vpop.xlane.xlu0 %2839  ;;  %v4311_v50 = vpop.f32.mrf.mxu1  ;;  %v2727_v7 = vmul.f32 %v5448_v1, %v2592_v57 }
 0x267   :  { %3305 = vst.msk [vmem:[%s6282_s7 + $0xf8] sm:$0xff] %vm3273_vm3, %v3176_v44  ;;  %v3173_v53 = vadd.f32 %v5456_v12, %v2840_v48  ;;  %v2387_v54 = vadd.f32 %v5438_v56, %v4311_v50  ;;  %3058 = vadd.xlane.f32.xlu1 %v3057_v51  ;;  %v2730_v62 = vmul.f32 %v5448_v1, %v2595_v46  ;;  %v2594_v16 = vmax.f32 %v2372_v3, 0.0 }
 0x268   :  { %v2855_v58 = vpop.xlane.xlu1 %2854  ;;  %v2381_v59 = vpop.f32.mrf.mxu1  ;;  %v3060_v27 = vsel %vm2753_vm2, %v2727_v7, 0.0 }
 0x269   :  { %3302 = vst.msk [vmem:[%s6282_s7 + $0xe0] sm:$0xff] %vm3273_vm3, %v3173_v53  ;;  %v3178_v61 = vadd.f32 %v5456_v12, %v2855_v58  ;;  %3049 = vadd.xlane.f32.xlu0 %v3048_v60  ;;  %v2597_v63 = vmax.f32 %v2387_v54, 0.0  ;;  %v2382_v8 = vadd.f32 %v5438_v56, %v2381_v59  ;;  %v3069_v19 = vsel %vm2753_vm2, %v2730_v62, 0.0 }
 0x26a   :  { %v2846_v0 = vpop.xlane.xlu0 %2845  ;;  %v4314_v2 = vpop.f32.mrf.mxu1  ;;  %v2729_v22 = vmul.f32 %v5448_v1, %v2594_v16 }
 0x26b   :  { %3307 = vst.msk [vmem:[%s6282_s7 + $0x108] sm:$0xff] %vm3273_vm3, %v3178_v61  ;;  %v3175_v5 = vadd.f32 %v5456_v12, %v2846_v0  ;;  %v2397_v6 = vadd.f32 %v5438_v56, %v4314_v2  ;;  %3064 = vadd.xlane.f32.xlu1 %v3063_v4  ;;  %v2732_v14 = vmul.f32 %v5448_v1, %v2597_v63  ;;  %v2596_v23 = vmax.f32 %v2382_v8, 0.0 }
 0x26c   :  { %v2861_v9 = vpop.xlane.xlu1 %2860  ;;  %v2391_v10 = vpop.f32.mrf.mxu1  ;;  %v3066_v39 = vsel %vm2753_vm2, %v2729_v22, 0.0 }
 0x26d   :  { %3304 = vst.msk [vmem:[%s6282_s7 + $0xf0] sm:$0xff] %vm3273_vm3, %v3175_v5  ;;  %v3180_v13 = vadd.f32 %v5456_v12, %v2861_v9  ;;  %3055 = vadd.xlane.f32.xlu0 %v3054_v11  ;;  %v2599_v15 = vmax.f32 %v2397_v6, 0.0  ;;  %v2392_v24 = vadd.f32 %v5438_v56, %v2391_v10  ;;  %v3075_v32 = vsel %vm2753_vm2, %v2732_v14, 0.0 }
 0x26e   :  { %v2852_v17 = vpop.xlane.xlu0 %2851  ;;  %v4317_v18 = vpop.f32.mrf.mxu1  ;;  %v2731_v34 = vmul.f32 %v5448_v1, %v2596_v23 }
 0x26f   :  { %3309 = vst.msk [vmem:[%s6282_s7 + $0x118] sm:$0xff] %vm3273_vm3, %v3180_v13  ;;  %v3177_v20 = vadd.f32 %v5456_v12, %v2852_v17  ;;  %v2407_v21 = vadd.f32 %v5438_v56, %v4317_v18  ;;  %3070 = vadd.xlane.f32.xlu1 %v3069_v19  ;;  %v2734_v29 = vmul.f32 %v5448_v1, %v2599_v15  ;;  %v2598_v35 = vmax.f32 %v2392_v24, 0.0 }
 0x270   :  { %v2867_v25 = vpop.xlane.xlu1 %2866  ;;  %v2401_v26 = vpop.f32.mrf.mxu1  ;;  %v3072_v55 = vsel %vm2753_vm2, %v2731_v34, 0.0 }
 0x271   :  { %3306 = vst.msk [vmem:[%s6282_s7 + $0x100] sm:$0xff] %vm3273_vm3, %v3177_v20  ;;  %v3182_v28 = vadd.f32 %v5456_v12, %v2867_v25  ;;  %3061 = vadd.xlane.f32.xlu0 %v3060_v27  ;;  %v2601_v52 = vmax.f32 %v2407_v21, 0.0  ;;  %v2402_v36 = vadd.f32 %v5438_v56, %v2401_v26  ;;  %v3081_v44 = vsel %vm2753_vm2, %v2734_v29, 0.0 }
 0x272   :  { %v2858_v30 = vpop.xlane.xlu0 %2857  ;;  %v4320_v31 = vpop.f32.mrf.mxu1  ;;  %v2733_v48 = vmul.f32 %v5448_v1, %v2598_v35 }
 0x273   :  { %3311 = vst.msk [vmem:[%s6282_s7 + $0x128] sm:$0xff] %vm3273_vm3, %v3182_v28  ;;  %v3179_v33 = vadd.f32 %v5456_v12, %v2858_v30  ;;  %v2417_v49 = vadd.f32 %v5438_v56, %v4320_v31  ;;  %3076 = vadd.xlane.f32.xlu1 %v3075_v32  ;;  %v2736_v41 = vmul.f32 %v5448_v1, %v2601_v52  ;;  %v2600_v50 = vmax.f32 %v2402_v36, 0.0 }
 0x274   :  { %v2873_v37 = vpop.xlane.xlu1 %2872  ;;  %v2411_v38 = vpop.f32.mrf.mxu1  ;;  %v3078_v7 = vsel %vm2753_vm2, %v2733_v48, 0.0 }
 0x275   :  { %3308 = vst.msk [vmem:[%s6282_s7 + $0x110] sm:$0xff] %vm3273_vm3, %v3179_v33  ;;  %v3184_v40 = vadd.f32 %v5456_v12, %v2873_v37  ;;  %3067 = vadd.xlane.f32.xlu0 %v3066_v39  ;;  %v2603_v42 = vmax.f32 %v2417_v49, 0.0  ;;  %v2412_v51 = vadd.f32 %v5438_v56, %v2411_v38  ;;  %v3087_v61 = vsel %vm2753_vm2, %v2736_v41, 0.0 }
 0x276   :  { %v2864_v47 = vpop.xlane.xlu0 %2863  ;;  %v4323_v43 = vpop.f32.mrf.mxu1  ;;  %v2735_v0 = vmul.f32 %v5448_v1, %v2600_v50 }
 0x277   :  { %3313 = vst.msk [vmem:[%s6282_s7 + $0x138] sm:$0xff] %vm3273_vm3, %v3184_v40  ;;  %v3181_v45 = vadd.f32 %v5456_v12, %v2864_v47  ;;  %v2427_v46 = vadd.f32 %v5438_v56, %v4323_v43  ;;  %3082 = vadd.xlane.f32.xlu1 %v3081_v44  ;;  %v2738_v3 = vmul.f32 %v5448_v1, %v2603_v42  ;;  %v2602_v2 = vmax.f32 %v2412_v51, 0.0 }
 0x278   :  { %v2879_v53 = vpop.xlane.xlu1 %2878  ;;  %v2421_v54 = vpop.f32.mrf.mxu1  ;;  %v3084_v22 = vsel %vm2753_vm2, %v2735_v0, 0.0 }
 0x279   :  { %3310 = vst.msk [vmem:[%s6282_s7 + $0x120] sm:$0xff] %vm3273_vm3, %v3181_v45  ;;  %v3186_v57 = vadd.f32 %v5456_v12, %v2879_v53  ;;  %3073 = vadd.xlane.f32.xlu0 %v3072_v55  ;;  %v2605_v58 = vmax.f32 %v2427_v46, 0.0  ;;  %v2422_v4 = vadd.f32 %v5438_v56, %v2421_v54  ;;  %v3093_v13 = vsel %vm2753_vm2, %v2738_v3, 0.0 }
 0x27a   :  { %v2870_v59 = vpop.xlane.xlu0 %2869  ;;  %v4326_v60 = vpop.f32.mrf.mxu1  ;;  %v2737_v17 = vmul.f32 %v5448_v1, %v2602_v2 }
 0x27b   :  { %3315 = vst.msk [vmem:[%s6282_s7 + $0x148] sm:$0xff] %vm3273_vm3, %v3186_v57  ;;  %v3183_v62 = vadd.f32 %v5456_v12, %v2870_v59  ;;  %v2437_v63 = vadd.f32 %v5438_v56, %v4326_v60  ;;  %3088 = vadd.xlane.f32.xlu1 %v3087_v61  ;;  %v2740_v8 = vmul.f32 %v5448_v1, %v2605_v58  ;;  %v2604_v18 = vmax.f32 %v2422_v4, 0.0 }
 0x27c   :  { %v2885_v5 = vpop.xlane.xlu1 %2884  ;;  %v2431_v6 = vpop.f32.mrf.mxu1  ;;  %v3090_v34 = vsel %vm2753_vm2, %v2737_v17, 0.0 }
 0x27d   :  { %3312 = vst.msk [vmem:[%s6282_s7 + $0x130] sm:$0xff] %vm3273_vm3, %v3183_v62  ;;  %v3188_v16 = vadd.f32 %v5456_v12, %v2885_v5  ;;  %3079 = vadd.xlane.f32.xlu0 %v3078_v7  ;;  %v2607_v9 = vmax.f32 %v2437_v63, 0.0  ;;  %v2432_v19 = vadd.f32 %v5438_v56, %v2431_v6  ;;  %v3099_v28 = vsel %vm2753_vm2, %v2740_v8, 0.0 }
 0x27e   :  { %v2876_v10 = vpop.xlane.xlu0 %2875  ;;  %v4329_v11 = vpop.f32.mrf.mxu1  ;;  %v2739_v30 = vmul.f32 %v5448_v1, %v2604_v18 }
 0x27f   :  { %3317 = vst.msk [vmem:[%s6282_s7 + $0x158] sm:$0xff] %vm3273_vm3, %v3188_v16  ;;  %v3185_v14 = vadd.f32 %v5456_v12, %v2876_v10  ;;  %v2447_v15 = vadd.f32 %v5438_v56, %v4329_v11  ;;  %3094 = vadd.xlane.f32.xlu1 %v3093_v13  ;;  %v2742_v24 = vmul.f32 %v5448_v1, %v2607_v9  ;;  %v2606_v31 = vmax.f32 %v2432_v19, 0.0 }
 0x280   :  { %v2891_v20 = vpop.xlane.xlu1 %2890  ;;  %v2441_v21 = vpop.f32.mrf.mxu1  ;;  %v3096_v48 = vsel %vm2753_vm2, %v2739_v30, 0.0 }
 0x281   :  { %3314 = vst.msk [vmem:[%s6282_s7 + $0x140] sm:$0xff] %vm3273_vm3, %v3185_v14  ;;  %v3190_v23 = vadd.f32 %v5456_v12, %v2891_v20  ;;  %3085 = vadd.xlane.f32.xlu0 %v3084_v22  ;;  %v2609_v25 = vmax.f32 %v2447_v15, 0.0  ;;  %v2442_v32 = vadd.f32 %v5438_v56, %v2441_v21  ;;  %v3105_v40 = vsel %vm2753_vm2, %v2742_v24, 0.0 }
 0x282   :  { %v2882_v26 = vpop.xlane.xlu0 %2881  ;;  %v4332_v27 = vpop.f32.mrf.mxu1  ;;  %v2741_v47 = vmul.f32 %v5448_v1, %v2606_v31 }
 0x283   :  { %3319 = vst.msk [vmem:[%s6282_s7 + $0x168] sm:$0xff] %vm3273_vm3, %v3190_v23  ;;  %v3187_v29 = vadd.f32 %v5456_v12, %v2882_v26  ;;  %v2457_v52 = vadd.f32 %v5438_v56, %v4332_v27  ;;  %3100 = vadd.xlane.f32.xlu1 %v3099_v28  ;;  %v2744_v36 = vmul.f32 %v5448_v1, %v2609_v25  ;;  %v2608_v43 = vmax.f32 %v2442_v32, 0.0  ;;  %v4361_v32 = vld [vmem:[%s6280_s5] ss:$0 sm:$0xff] }
 0x284   :  { %v2897_v33 = vpop.xlane.xlu1 %2896  ;;  %v2451_v49 = vpop.f32.mrf.mxu1  ;;  %v3102_v0 = vsel %vm2753_vm2, %v2741_v47, 0.0 }
 0x285   :  { %3316 = vst.msk [vmem:[%s6282_s7 + $0x150] sm:$0xff] %vm3273_vm3, %v3187_v29  ;;  %v3192_v35 = vadd.f32 %v5456_v12, %v2897_v33  ;;  %3091 = vadd.xlane.f32.xlu0 %v3090_v34  ;;  %v2611_v37 = vmax.f32 %v2457_v52, 0.0  ;;  %v2452_v44 = vadd.f32 %v5438_v56, %v2451_v49  ;;  %v3111_v57 = vsel %vm2753_vm2, %v2744_v36, 0.0 }
 0x286   :  { %v2888_v38 = vpop.xlane.xlu0 %2887  ;;  %v4335_v39 = vpop.f32.mrf.mxu1  ;;  %v2743_v59 = vmul.f32 %v5448_v1, %v2608_v43 }
 0x287   :  { %3321 = vst.msk [vmem:[%s6282_s7 + $0x178] sm:$0xff] %vm3273_vm3, %v3192_v35  ;;  %v3189_v41 = vadd.f32 %v5456_v12, %v2888_v38  ;;  %v2467_v42 = vadd.f32 %v5438_v56, %v4335_v39  ;;  %3106 = vadd.xlane.f32.xlu1 %v3105_v40  ;;  %v2746_v51 = vmul.f32 %v5448_v1, %v2611_v37  ;;  %v2610_v60 = vmax.f32 %v2452_v44, 0.0 }
 0x288   :  { %v2903_v45 = vpop.xlane.xlu1 %2902  ;;  %v2461_v46 = vpop.f32.mrf.mxu1  ;;  %v3108_v15 = vsel %vm2753_vm2, %v2743_v59, 0.0 }
 0x289   :  { %3318 = vst.msk [vmem:[%s6282_s7 + $0x160] sm:$0xff] %vm3273_vm3, %v3189_v41  ;;  %v3194_v50 = vadd.f32 %v5456_v12, %v2903_v45  ;;  %3097 = vadd.xlane.f32.xlu0 %v3096_v48  ;;  %v2613_v53 = vmax.f32 %v2467_v42, 0.0  ;;  %v2462_v61 = vadd.f32 %v5438_v56, %v2461_v46  ;;  %v3117_v16 = vsel %vm2753_vm2, %v2746_v51, 0.0  ;;  %v5917_v42 = vld [vmem:[#allocation2] ss:$0 sm:$0xff] }
 0x28a   :  { %v2894_v54 = vpop.xlane.xlu0 %2893  ;;  %v4338_v55 = vpop.f32.mrf.mxu1  ;;  %v2745_v10 = vmul.f32 %v5448_v1, %v2610_v60 }
 0x28b   :  { %3323 = vst.msk [vmem:[%s6282_s7 + $0x188] sm:$0xff] %vm3273_vm3, %v3194_v50  ;;  %v3191_v3 = vadd.f32 %v5456_v12, %v2894_v54  ;;  %v2477_v58 = vadd.f32 %v5438_v56, %v4338_v55  ;;  %3112 = vadd.xlane.f32.xlu1 %v3111_v57  ;;  %v2748_v4 = vmul.f32 %v5448_v1, %v2613_v53  ;;  %v2612_v11 = vmax.f32 %v2462_v61, 0.0 }
 0x28c   :  { %v2909_v62 = vpop.xlane.xlu1 %2908  ;;  %v2471_v63 = vpop.f32.mrf.mxu1  ;;  %v3114_v28 = vsel %vm2753_vm2, %v2745_v10, 0.0 }
 0x28d   :  { %3320 = vst.msk [vmem:[%s6282_s7 + $0x170] sm:$0xff] %vm3273_vm3, %v3191_v3  ;;  %v3196_v2 = vadd.f32 %v5456_v12, %v2909_v62  ;;  %3103 = vadd.xlane.f32.xlu0 %v3102_v0  ;;  %v2615_v5 = vmax.f32 %v2477_v58, 0.0  ;;  %v2472_v13 = vadd.f32 %v5438_v56, %v2471_v63  ;;  %v3123_v22 = vsel %vm2753_vm2, %v2748_v4, 0.0 }
 0x28e   :  { %v2900_v6 = vpop.xlane.xlu0 %2899  ;;  %v4341_v7 = vpop.f32.mrf.mxu1  ;;  %v2747_v24 = vmul.f32 %v5448_v1, %v2612_v11 }
 0x28f   :  { %3325 = vst.msk [vmem:[%s6282_s7 + $0x198] sm:$0xff] %vm3273_vm3, %v3196_v2  ;;  %v3193_v8 = vadd.f32 %v5456_v12, %v2900_v6  ;;  %v2487_v9 = vadd.f32 %v5438_v56, %v4341_v7  ;;  %3118 = vadd.xlane.f32.xlu1 %v3117_v16  ;;  %v2750_v19 = vmul.f32 %v5448_v1, %v2615_v5  ;;  %v2614_v25 = vmax.f32 %v2472_v13, 0.0 }
 0x290   :  { %v2915_v14 = vpop.xlane.xlu1 %2914  ;;  %v2481_v18 = vpop.f32.mrf.mxu1 }
 0x291   :  { %3322 = vst.msk [vmem:[%s6282_s7 + $0x180] sm:$0xff] %vm3273_vm3, %v3193_v8  ;;  %v3198_v17 = vadd.f32 %v5456_v12, %v2915_v14  ;;  %3109 = vadd.xlane.f32.xlu0 %v3108_v15  ;;  %v2617_v20 = vmax.f32 %v2487_v9, 0.0  ;;  %v2482_v26 = vadd.f32 %v5438_v56, %v2481_v18  ;;  %v3129_v31 = vsel %vm2753_vm2, %v2750_v19, 0.0 }
 0x292   :  { %v2906_v21 = vpop.xlane.xlu0 %2905  ;;  %v2749_v33 = vmul.f32 %v4361_v32, %v2614_v25 }
 0x293   :  { %3327 = vst.msk [vmem:[%s6282_s7 + $0x1a8] sm:$0xff] %vm3273_vm3, %v3198_v17  ;;  %v3195_v23 = vadd.f32 %v5456_v12, %v2906_v21  ;;  %3124 = vadd.xlane.f32.xlu1 %v3123_v22  ;;  %v2752_v52 = vmul.f32 %v5448_v1, %v2617_v20  ;;  %v2616_v49 = vmax.f32 %v2482_v26, 0.0  ;;  %v3120_v1 = vsel %vm2753_vm2, %v2747_v24, 0.0 }
 0x294   :  { %v2921_v27 = vpop.xlane.xlu1 %2920  ;;  %v3126_v41 = vsel %vm2753_vm2, %v2749_v33, 0.0 }
 0x295   :  { %3324 = vst.msk [vmem:[%s6282_s7 + $0x190] sm:$0xff] %vm3273_vm3, %v3195_v23  ;;  %v3200_v29 = vadd.f32 %v5456_v12, %v2921_v27  ;;  %3115 = vadd.xlane.f32.xlu0 %v3114_v28  ;;  %v3135_v37 = vsel %vm2753_vm2, %v2752_v52, 0.0  ;;  %v2751_v39 = vmul.f32 %v4361_v32, %v2616_v49 }
 0x296   :  { %v2912_v30 = vpop.xlane.xlu0 %2911 }
 0x297   :  { %3329 = vst.msk [vmem:[%s6282_s7 + $0x1b8] sm:$0xff] %vm3273_vm3, %v3200_v29  ;;  %v3197_v56 = vadd.f32 %v5456_v12, %v2912_v30  ;;  %3130 = vadd.xlane.f32.xlu1 %v3129_v31  ;;  %v3132_v45 = vsel %vm2753_vm2, %v2751_v39, 0.0 }
 0x298   :  { %v2927_v34 = vpop.xlane.xlu1 %2926 }
 0x299   :  { %3326 = vst.msk [vmem:[%s6282_s7 + $0x1a0] sm:$0xff] %vm3273_vm3, %v3197_v56  ;;  %v3202_v35 = vadd.f32 %v5456_v12, %v2927_v34  ;;  %3121 = vadd.xlane.f32.xlu0 %v3120_v1 }
 0x29a   :  { %v2918_v36 = vpop.xlane.xlu0 %2917 }
 0x29b   :  { %3331 = vst.msk [vmem:[%s6282_s7 + $0x1c8] sm:$0xff] %vm3273_vm3, %v3202_v35  ;;  %v3199_v38 = vadd.f32 %v5456_v12, %v2918_v36  ;;  %3136 = vadd.xlane.f32.xlu1 %v3135_v37 }
 0x29c   :  { %v2933_v40 = vpop.xlane.xlu1 %2932 }
 0x29d   :  { %3328 = vst.msk [vmem:[%s6282_s7 + $0x1b0] sm:$0xff] %vm3273_vm3, %v3199_v38  ;;  %v3204_v47 = vadd.f32 %v5917_v42, %v2933_v40  ;;  %3127 = vadd.xlane.f32.xlu0 %v3126_v41 }
 0x29e   :  { %v2924_v43 = vpop.xlane.xlu0 %2923 }
 0x29f   :  { %3333 = vst.msk [vmem:[%s6282_s7 + $0x1d8] sm:$0xff] %vm3273_vm3, %v3204_v47  ;;  %v3201_v12 = vadd.f32 %v5917_v42, %v2924_v43 }
 0x2a0   :  { %v2939_v44 = vpop.xlane.xlu1 %2938 }
 0x2a1   :  { %3330 = vst.msk [vmem:[%s6282_s7 + $0x1c0] sm:$0xff] %vm3273_vm3, %v3201_v12  ;;  %v3206_v46 = vadd.f32 %v5917_v42, %v2939_v44  ;;  %3133 = vadd.xlane.f32.xlu0 %v3132_v45 }
 0x2a2   :  { %v2930_v48 = vpop.xlane.xlu0 %2929 }
 0x2a3   :  { %3335 = vst.msk [vmem:[%s6282_s7 + $0x1e8] sm:$0xff] %vm3273_vm3, %v3206_v46  ;;  %v3203_v50 = vadd.f32 %v5917_v42, %v2930_v48 }
 0x2a4   :  { %v2945_v51 = vpop.xlane.xlu1 %2944 }
 0x2a5   :  { %3332 = vst.msk [vmem:[%s6282_s7 + $0x1d0] sm:$0xff] %vm3273_vm3, %v3203_v50  ;;  %v3208_v53 = vadd.f32 %v5917_v42, %v2945_v51 }
 0x2a6   :  { %v2936_v54 = vpop.xlane.xlu0 %2935 }
 0x2a7   :  { %3337 = vst.msk [vmem:[%s6282_s7 + $0x1f8] sm:$0xff] %vm3273_vm3, %v3208_v53  ;;  %v3205_v55 = vadd.f32 %v5917_v42, %v2936_v54 }
 0x2a8   :  { %v2951_v57 = vpop.xlane.xlu1 %2950 }
 0x2a9   :  { %3334 = vst.msk [vmem:[%s6282_s7 + $0x1e0] sm:$0xff] %vm3273_vm3, %v3205_v55  ;;  %v3210_v3 = vadd.f32 %v5917_v42, %v2951_v57 }
 0x2aa   :  { %v2942_v58 = vpop.xlane.xlu0 %2941 }
 0x2ab   :  { %3339 = vst.msk [vmem:[%s6282_s7 + $0x208] sm:$0xff] %vm3273_vm3, %v3210_v3  ;;  %v3207_v59 = vadd.f32 %v5917_v42, %v2942_v58 }
 0x2ac   :  { %v2957_v60 = vpop.xlane.xlu1 %2956 }
 0x2ad   :  { %3336 = vst.msk [vmem:[%s6282_s7 + $0x1f0] sm:$0xff] %vm3273_vm3, %v3207_v59  ;;  %v3212_v61 = vadd.f32 %v5917_v42, %v2957_v60 }
 0x2ae   :  { %v2948_v62 = vpop.xlane.xlu0 %2947 }
 0x2af   :  { %3341 = vst.msk [vmem:[%s6282_s7 + $0x218] sm:$0xff] %vm3273_vm3, %v3212_v61  ;;  %v3209_v63 = vadd.f32 %v5917_v42, %v2948_v62 }
 0x2b0   :  { %v2963_v0 = vpop.xlane.xlu1 %2962 }
 0x2b1   :  { %3338 = vst.msk [vmem:[%s6282_s7 + $0x200] sm:$0xff] %vm3273_vm3, %v3209_v63  ;;  %v3214_v2 = vadd.f32 %v5917_v42, %v2963_v0 }
 0x2b2   :  { %v2954_v4 = vpop.xlane.xlu0 %2953 }
 0x2b3   :  { %3343 = vst.msk [vmem:[%s6282_s7 + $0x228] sm:$0xff] %vm3273_vm3, %v3214_v2  ;;  %v3211_v5 = vadd.f32 %v5917_v42, %v2954_v4 }
 0x2b4   :  { %v2969_v6 = vpop.xlane.xlu1 %2968 }
 0x2b5   :  { %3340 = vst.msk [vmem:[%s6282_s7 + $0x210] sm:$0xff] %vm3273_vm3, %v3211_v5  ;;  %v3216_v7 = vadd.f32 %v5917_v42, %v2969_v6 }
 0x2b6   :  { %v2960_v16 = vpop.xlane.xlu0 %2959 }
 0x2b7   :  { %3345 = vst.msk [vmem:[%s6282_s7 + $0x238] sm:$0xff] %vm3273_vm3, %v3216_v7  ;;  %v3213_v8 = vadd.f32 %v5917_v42, %v2960_v16 }
 0x2b8   :  { %v2975_v9 = vpop.xlane.xlu1 %2974 }
 0x2b9   :  { %3342 = vst.msk [vmem:[%s6282_s7 + $0x220] sm:$0xff] %vm3273_vm3, %v3213_v8  ;;  %v3218_v10 = vadd.f32 %v5917_v42, %v2975_v9 }
 0x2ba   :  { %v2966_v11 = vpop.xlane.xlu0 %2965 }
 0x2bb   :  { %3347 = vst.msk [vmem:[%s6282_s7 + $0x248] sm:$0xff] %vm3273_vm3, %v3218_v10  ;;  %v3215_v13 = vadd.f32 %v5917_v42, %v2966_v11 }
 0x2bc   :  { %v2981_v14 = vpop.xlane.xlu1 %2980 }
 0x2bd   :  { %3344 = vst.msk [vmem:[%s6282_s7 + $0x230] sm:$0xff] %vm3273_vm3, %v3215_v13  ;;  %v3220_v15 = vadd.f32 %v5917_v42, %v2981_v14 }
 0x2be   :  { %v2972_v17 = vpop.xlane.xlu0 %2971 }
 0x2bf   :  { %3349 = vst.msk [vmem:[%s6282_s7 + $0x258] sm:$0xff] %vm3273_vm3, %v3220_v15  ;;  %v3217_v18 = vadd.f32 %v5917_v42, %v2972_v17 }
 0x2c0   :  { %v2987_v19 = vpop.xlane.xlu1 %2986 }
 0x2c1   :  { %3346 = vst.msk [vmem:[%s6282_s7 + $0x240] sm:$0xff] %vm3273_vm3, %v3217_v18  ;;  %v3222_v20 = vadd.f32 %v5917_v42, %v2987_v19 }
 0x2c2   :  { %v2978_v21 = vpop.xlane.xlu0 %2977 }
 0x2c3   :  { %3351 = vst.msk [vmem:[%s6282_s7 + $0x268] sm:$0xff] %vm3273_vm3, %v3222_v20  ;;  %v3219_v22 = vadd.f32 %v5917_v42, %v2978_v21 }
 0x2c4   :  { %v2993_v23 = vpop.xlane.xlu1 %2992 }
 0x2c5   :  { %3348 = vst.msk [vmem:[%s6282_s7 + $0x250] sm:$0xff] %vm3273_vm3, %v3219_v22  ;;  %v3224_v24 = vadd.f32 %v5917_v42, %v2993_v23 }
 0x2c6   :  { %v2984_v25 = vpop.xlane.xlu0 %2983 }
 0x2c7   :  { %3353 = vst.msk [vmem:[%s6282_s7 + $0x278] sm:$0xff] %vm3273_vm3, %v3224_v24  ;;  %v3221_v26 = vadd.f32 %v5917_v42, %v2984_v25 }
 0x2c8   :  { %v2999_v27 = vpop.xlane.xlu1 %2998 }
 0x2c9   :  { %3350 = vst.msk [vmem:[%s6282_s7 + $0x260] sm:$0xff] %vm3273_vm3, %v3221_v26  ;;  %v3226_v28 = vadd.f32 %v5917_v42, %v2999_v27 }
 0x2ca   :  { %v2990_v29 = vpop.xlane.xlu0 %2989 }
 0x2cb   :  { %3355 = vst.msk [vmem:[%s6282_s7 + $0x288] sm:$0xff] %vm3273_vm3, %v3226_v28  ;;  %v3223_v52 = vadd.f32 %v5917_v42, %v2990_v29 }
 0x2cc   :  { %v3005_v30 = vpop.xlane.xlu1 %3004 }
 0x2cd   :  { %3352 = vst.msk [vmem:[%s6282_s7 + $0x270] sm:$0xff] %vm3273_vm3, %v3223_v52  ;;  %v3228_v31 = vadd.f32 %v5917_v42, %v3005_v30 }
 0x2ce   :  { %v2996_v56 = vpop.xlane.xlu0 %2995 }
 0x2cf   :  { %3357 = vst.msk [vmem:[%s6282_s7 + $0x298] sm:$0xff] %vm3273_vm3, %v3228_v31  ;;  %v3225_v32 = vadd.f32 %v5917_v42, %v2996_v56 }
 0x2d0   :  { %v3011_v33 = vpop.xlane.xlu1 %3010 }
 0x2d1   :  { %3354 = vst.msk [vmem:[%s6282_s7 + $0x280] sm:$0xff] %vm3273_vm3, %v3225_v32  ;;  %v3230_v49 = vadd.f32 %v5917_v42, %v3011_v33 }
 0x2d2   :  { %v3002_v34 = vpop.xlane.xlu0 %3001 }
 0x2d3   :  { %3359 = vst.msk [vmem:[%s6282_s7 + $0x2a8] sm:$0xff] %vm3273_vm3, %v3230_v49  ;;  %v3227_v1 = vadd.f32 %v5917_v42, %v3002_v34 }
 0x2d4   :  { %v3017_v35 = vpop.xlane.xlu1 %3016 }
 0x2d5   :  { %3356 = vst.msk [vmem:[%s6282_s7 + $0x290] sm:$0xff] %vm3273_vm3, %v3227_v1  ;;  %v3232_v36 = vadd.f32 %v5917_v42, %v3017_v35 }
 0x2d6   :  { %v3008_v37 = vpop.xlane.xlu0 %3007 }
 0x2d7   :  { %3361 = vst.msk [vmem:[%s6282_s7 + $0x2b8] sm:$0xff] %vm3273_vm3, %v3232_v36  ;;  %v3229_v38 = vadd.f32 %v5917_v42, %v3008_v37 }
 0x2d8   :  { %v3023_v39 = vpop.xlane.xlu1 %3022 }
 0x2d9   :  { %3358 = vst.msk [vmem:[%s6282_s7 + $0x2a0] sm:$0xff] %vm3273_vm3, %v3229_v38  ;;  %v3234_v40 = vadd.f32 %v5917_v42, %v3023_v39 }
 0x2da   :  { %v3014_v41 = vpop.xlane.xlu0 %3013 }
 0x2db   :  { %3363 = vst.msk [vmem:[%s6282_s7 + $0x2c8] sm:$0xff] %vm3273_vm3, %v3234_v40  ;;  %v3231_v47 = vadd.f32 %v5917_v42, %v3014_v41 }
 0x2dc   :  { %v3029_v43 = vpop.xlane.xlu1 %3028 }
 0x2dd   :  { %3360 = vst.msk [vmem:[%s6282_s7 + $0x2b0] sm:$0xff] %vm3273_vm3, %v3231_v47  ;;  %v3236_v12 = vadd.f32 %v5917_v42, %v3029_v43 }
 0x2de   :  { %v3020_v44 = vpop.xlane.xlu0 %3019 }
 0x2df   :  { %3365 = vst.msk [vmem:[%s6282_s7 + $0x2d8] sm:$0xff] %vm3273_vm3, %v3236_v12  ;;  %v3233_v45 = vadd.f32 %v5917_v42, %v3020_v44 }
 0x2e0   :  { %v3035_v46 = vpop.xlane.xlu1 %3034 }
 0x2e1   :  { %3362 = vst.msk [vmem:[%s6282_s7 + $0x2c0] sm:$0xff] %vm3273_vm3, %v3233_v45  ;;  %v3238_v48 = vadd.f32 %v5917_v42, %v3035_v46 }
 0x2e2   :  { %v3026_v50 = vpop.xlane.xlu0 %3025 }
 0x2e3   :  { %3367 = vst.msk [vmem:[%s6282_s7 + $0x2e8] sm:$0xff] %vm3273_vm3, %v3238_v48  ;;  %v3235_v51 = vadd.f32 %v5917_v42, %v3026_v50 }
 0x2e4   :  { %v3041_v53 = vpop.xlane.xlu1 %3040 }
 0x2e5   :  { %3364 = vst.msk [vmem:[%s6282_s7 + $0x2d0] sm:$0xff] %vm3273_vm3, %v3235_v51  ;;  %v3240_v54 = vadd.f32 %v5917_v42, %v3041_v53 }
 0x2e6   :  { %v3032_v55 = vpop.xlane.xlu0 %3031 }
 0x2e7   :  { %3369 = vst.msk [vmem:[%s6282_s7 + $0x2f8] sm:$0xff] %vm3273_vm3, %v3240_v54  ;;  %v3237_v57 = vadd.f32 %v5917_v42, %v3032_v55 }
 0x2e8   :  { %v3047_v3 = vpop.xlane.xlu1 %3046 }
 0x2e9   :  { %3366 = vst.msk [vmem:[%s6282_s7 + $0x2e0] sm:$0xff] %vm3273_vm3, %v3237_v57  ;;  %v3242_v58 = vadd.f32 %v5917_v42, %v3047_v3 }
 0x2ea   :  { %v3038_v59 = vpop.xlane.xlu0 %3037 }
 0x2eb   :  { %3371 = vst.msk [vmem:[%s6282_s7 + $0x308] sm:$0xff] %vm3273_vm3, %v3242_v58  ;;  %v3239_v60 = vadd.f32 %v5917_v42, %v3038_v59 }
 0x2ec   :  { %v3053_v61 = vpop.xlane.xlu1 %3052 }
 0x2ed   :  { %3368 = vst.msk [vmem:[%s6282_s7 + $0x2f0] sm:$0xff] %vm3273_vm3, %v3239_v60  ;;  %v3244_v62 = vadd.f32 %v5917_v42, %v3053_v61 }
 0x2ee   :  { %v3044_v63 = vpop.xlane.xlu0 %3043 }
 0x2ef   :  { %3373 = vst.msk [vmem:[%s6282_s7 + $0x318] sm:$0xff] %vm3273_vm3, %v3244_v62  ;;  %v3241_v0 = vadd.f32 %v5917_v42, %v3044_v63 }
 0x2f0   :  { %v3059_v2 = vpop.xlane.xlu1 %3058 }
 0x2f1   :  { %3370 = vst.msk [vmem:[%s6282_s7 + $0x300] sm:$0xff] %vm3273_vm3, %v3241_v0  ;;  %v3246_v4 = vadd.f32 %v5917_v42, %v3059_v2 }
 0x2f2   :  { %v3050_v5 = vpop.xlane.xlu0 %3049 }
 0x2f3   :  { %3375 = vst.msk [vmem:[%s6282_s7 + $0x328] sm:$0xff] %vm3273_vm3, %v3246_v4  ;;  %v3243_v6 = vadd.f32 %v5917_v42, %v3050_v5 }
 0x2f4   :  { %v3065_v7 = vpop.xlane.xlu1 %3064 }
 0x2f5   :  { %3372 = vst.msk [vmem:[%s6282_s7 + $0x310] sm:$0xff] %vm3273_vm3, %v3243_v6  ;;  %v3248_v16 = vadd.f32 %v5917_v42, %v3065_v7 }
 0x2f6   :  { %v3056_v8 = vpop.xlane.xlu0 %3055 }
 0x2f7   :  { %3377 = vst.msk [vmem:[%s6282_s7 + $0x338] sm:$0xff] %vm3273_vm3, %v3248_v16  ;;  %v3245_v9 = vadd.f32 %v5917_v42, %v3056_v8 }
 0x2f8   :  { %v3071_v10 = vpop.xlane.xlu1 %3070 }
 0x2f9   :  { %3374 = vst.msk [vmem:[%s6282_s7 + $0x320] sm:$0xff] %vm3273_vm3, %v3245_v9  ;;  %v3250_v11 = vadd.f32 %v5917_v42, %v3071_v10 }
 0x2fa   :  { %v3062_v13 = vpop.xlane.xlu0 %3061 }
 0x2fb   :  { %3379 = vst.msk [vmem:[%s6282_s7 + $0x348] sm:$0xff] %vm3273_vm3, %v3250_v11  ;;  %v3247_v14 = vadd.f32 %v5917_v42, %v3062_v13 }
 0x2fc   :  { %v3077_v15 = vpop.xlane.xlu1 %3076 }
 0x2fd   :  { %3376 = vst.msk [vmem:[%s6282_s7 + $0x330] sm:$0xff] %vm3273_vm3, %v3247_v14  ;;  %v3252_v17 = vadd.f32 %v5917_v42, %v3077_v15 }
 0x2fe   :  { %v3068_v18 = vpop.xlane.xlu0 %3067 }
 0x2ff   :  { %3381 = vst.msk [vmem:[%s6282_s7 + $0x358] sm:$0xff] %vm3273_vm3, %v3252_v17  ;;  %v3249_v19 = vadd.f32 %v5917_v42, %v3068_v18 }
 0x300   :  { %v3083_v20 = vpop.xlane.xlu1 %3082 }
 0x301   :  { %3378 = vst.msk [vmem:[%s6282_s7 + $0x340] sm:$0xff] %vm3273_vm3, %v3249_v19  ;;  %v3254_v21 = vadd.f32 %v5917_v42, %v3083_v20 }
 0x302   :  { %v3074_v22 = vpop.xlane.xlu0 %3073 }
 0x303   :  { %3383 = vst.msk [vmem:[%s6282_s7 + $0x368] sm:$0xff] %vm3273_vm3, %v3254_v21  ;;  %v3251_v23 = vadd.f32 %v5917_v42, %v3074_v22 }
 0x304   :  { %v3089_v24 = vpop.xlane.xlu1 %3088 }
 0x305   :  { %3380 = vst.msk [vmem:[%s6282_s7 + $0x350] sm:$0xff] %vm3273_vm3, %v3251_v23  ;;  %v3256_v25 = vadd.f32 %v5917_v42, %v3089_v24 }
 0x306   :  { %v3080_v26 = vpop.xlane.xlu0 %3079 }
 0x307   :  { %3385 = vst.msk [vmem:[%s6282_s7 + $0x378] sm:$0xff] %vm3273_vm3, %v3256_v25  ;;  %v3253_v27 = vadd.f32 %v5917_v42, %v3080_v26 }
 0x308   :  { %v3095_v28 = vpop.xlane.xlu1 %3094 }
 0x309   :  { %3382 = vst.msk [vmem:[%s6282_s7 + $0x360] sm:$0xff] %vm3273_vm3, %v3253_v27  ;;  %v3258_v29 = vadd.f32 %v5917_v42, %v3095_v28 }
 0x30a   :  { %v3086_v52 = vpop.xlane.xlu0 %3085 }
 0x30b   :  { %3387 = vst.msk [vmem:[%s6282_s7 + $0x388] sm:$0xff] %vm3273_vm3, %v3258_v29  ;;  %v3255_v30 = vadd.f32 %v5917_v42, %v3086_v52 }
 0x30c   :  { %v3101_v31 = vpop.xlane.xlu1 %3100 }
 0x30d   :  { %3384 = vst.msk [vmem:[%s6282_s7 + $0x370] sm:$0xff] %vm3273_vm3, %v3255_v30  ;;  %v3260_v56 = vadd.f32 %v5917_v42, %v3101_v31 }
 0x30e   :  { %v3092_v32 = vpop.xlane.xlu0 %3091 }
 0x30f   :  { %3389 = vst.msk [vmem:[%s6282_s7 + $0x398] sm:$0xff] %vm3273_vm3, %v3260_v56  ;;  %v3257_v33 = vadd.f32 %v5917_v42, %v3092_v32 }
 0x310   :  { %v3107_v49 = vpop.xlane.xlu1 %3106 }
 0x311   :  { %3386 = vst.msk [vmem:[%s6282_s7 + $0x380] sm:$0xff] %vm3273_vm3, %v3257_v33  ;;  %v3262_v34 = vadd.f32 %v5917_v42, %v3107_v49 }
 0x312   :  { %v3098_v1 = vpop.xlane.xlu0 %3097 }
 0x313   :  { %3391 = vst.msk [vmem:[%s6282_s7 + $0x3a8] sm:$0xff] %vm3273_vm3, %v3262_v34  ;;  %v3259_v35 = vadd.f32 %v5917_v42, %v3098_v1 }
 0x314   :  { %v3113_v36 = vpop.xlane.xlu1 %3112 }
 0x315   :  { %3388 = vst.msk [vmem:[%s6282_s7 + $0x390] sm:$0xff] %vm3273_vm3, %v3259_v35  ;;  %v3264_v37 = vadd.f32 %v5917_v42, %v3113_v36 }
 0x316   :  { %v3104_v38 = vpop.xlane.xlu0 %3103 }
 0x317   :  { %3393 = vst.msk [vmem:[%s6282_s7 + $0x3b8] sm:$0xff] %vm3273_vm3, %v3264_v37  ;;  %v3261_v39 = vadd.f32 %v5917_v42, %v3104_v38 }
 0x318   :  { %v3119_v40 = vpop.xlane.xlu1 %3118 }
 0x319   :  { %3390 = vst.msk [vmem:[%s6282_s7 + $0x3a0] sm:$0xff] %vm3273_vm3, %v3261_v39  ;;  %v3266_v41 = vadd.f32 %v5917_v42, %v3119_v40 }
 0x31a   :  { %v3110_v47 = vpop.xlane.xlu0 %3109 }
 0x31b   :  { %3395 = vst.msk [vmem:[%s6282_s7 + $0x3c8] sm:$0xff] %vm3273_vm3, %v3266_v41  ;;  %v3263_v43 = vadd.f32 %v5917_v42, %v3110_v47 }
 0x31c   :  { %v3125_v12 = vpop.xlane.xlu1 %3124 }
 0x31d   :  { %3392 = vst.msk [vmem:[%s6282_s7 + $0x3b0] sm:$0xff] %vm3273_vm3, %v3263_v43  ;;  %v3268_v44 = vadd.f32 %v5917_v42, %v3125_v12 }
 0x31e   :  { %v3116_v45 = vpop.xlane.xlu0 %3115 }
 0x31f   :  { %3397 = vst.msk [vmem:[%s6282_s7 + $0x3d8] sm:$0xff] %vm3273_vm3, %v3268_v44  ;;  %v3265_v46 = vadd.f32 %v5917_v42, %v3116_v45 }
 0x320   :  { %v3131_v48 = vpop.xlane.xlu1 %3130 }
 0x321   :  { %3394 = vst.msk [vmem:[%s6282_s7 + $0x3c0] sm:$0xff] %vm3273_vm3, %v3265_v46  ;;  %v3270_v50 = vadd.f32 %v5917_v42, %v3131_v48 }
 0x322   :  { %v3122_v51 = vpop.xlane.xlu0 %3121 }
 0x323   :  { %3399 = vst.msk [vmem:[%s6282_s7 + $0x3e8] sm:$0xff] %vm3273_vm3, %v3270_v50  ;;  %v3267_v53 = vadd.f32 %v5917_v42, %v3122_v51 }
 0x324   :  { %v3137_v54 = vpop.xlane.xlu1 %3136 }
 0x325   :  { %3396 = vst.msk [vmem:[%s6282_s7 + $0x3d0] sm:$0xff] %vm3273_vm3, %v3267_v53  ;;  %v3272_v55 = vadd.f32 %v5917_v42, %v3137_v54 }
 0x326   :  { %v3128_v57 = vpop.xlane.xlu0 %3127 }
 0x327   :  { %3401 = vst.msk [vmem:[%s6282_s7 + $0x3f8] sm:$0xff] %vm3273_vm3, %v3272_v55  ;;  %v3269_v3 = vadd.f32 %v5917_v42, %v3128_v57 }
 0x329   :  { %3398 = vst.msk [vmem:[%s6282_s7 + $0x3e0] sm:$0xff] %vm3273_vm3, %v3269_v3 }
 0x32a   :  { %v3134_v58 = vpop.xlane.xlu0 %3133 }
 0x32b   :  { %v3271_v59 = vadd.f32 %v5917_v42, %v3134_v58 }
 0x32d   :  { %3400 = vst.msk [vmem:[%s6282_s7 + $0x3f0] sm:$0xff] %vm3273_vm3, %v3271_v59 }

</bundles_post_ra>
